<compile_context>
chip_gen: v7x
topology: tpu7x:2x2x1
jax: 0.10.0
libtpu: 0.0.40
codegen_flags: <defaults>
</compile_context>

<pallas_src>
import functools

import jax
import jax.numpy as jnp
from jax.experimental import pallas as pl
from jax.experimental.pallas import tpu as pltpu


# ----------------------------------------------------------------------------
# Kernel 1: transposed, lane-dense conv GEMM:  O = prelu(W^T @ X^T + b)
#   x_ref : (K, TM)    w_ref : (Cout, K)    b_ref : (Cout, 1)    o_ref : (Cout, TM)
# ----------------------------------------------------------------------------
def _conv_gemm_t_kernel(x_ref, w_ref, b_ref, a_ref, o_ref):
    y = jnp.dot(w_ref[...], x_ref[...], preferred_element_type=jnp.float32)
    y = y + b_ref[...]                       # (Cout,1) broadcast over lanes
    a = a_ref[0]                             # scalar PReLU slope from SMEM
    o_ref[...] = jnp.where(y >= 0.0, y, a * y)


def conv_gemm_t(xt, w_flat, b, alpha, *, tm_lanes=2816):
    """xt: (K, M) transposed patches; w_flat: (K, Cout).  Returns (Cout, M)."""
    K, M = xt.shape
    Cout = w_flat.shape[1]
    TM = min(tm_lanes, pl.cdiv(M, 128) * 128)      # lane tile, multiple of 128
    Mp = pl.cdiv(M, TM) * TM
    if Mp != M:                                    # fuses into im2col producer under jit
        xt = jnp.pad(xt, ((0, 0), (0, Mp - M)))
    wt = jnp.asarray(w_flat, jnp.float32).T        # (Cout, K)
    bcol = jnp.asarray(b, jnp.float32).reshape(Cout, 1)

    out = pl.pallas_call(
        _conv_gemm_t_kernel,
        out_shape=jax.ShapeDtypeStruct((Cout, Mp), jnp.float32),
        grid=(Mp // TM,),
        in_specs=[
            pl.BlockSpec((K, TM), lambda i: (0, i)),
            pl.BlockSpec((Cout, K), lambda i: (0, 0)),
            pl.BlockSpec((Cout, 1), lambda i: (0, 0)),
            pl.BlockSpec(memory_space=pltpu.MemorySpace.SMEM),   # scalar alpha
        ],
        out_specs=pl.BlockSpec((Cout, TM), lambda i: (0, i)),
        compiler_params=pltpu.CompilerParams(
            dimension_semantics=("parallel",)),
    )(xt.astype(jnp.float32), wt, bcol,
      jnp.asarray(alpha, jnp.float32).reshape(1,))
    return out[:, :M]


# ----------------------------------------------------------------------------
# Kernel 2: generic single-block fused GEMM+bias+PReLU (everything in VMEM).
#   Used for conv2 (M=250, K=1000, N=16) and as the generic fallback path.
# ----------------------------------------------------------------------------
def _gemm_bias_prelu_kernel(x_ref, w_ref, b_ref, a_ref, o_ref):
    y = jnp.dot(x_ref[...], w_ref[...], preferred_element_type=jnp.float32)
    y = y + b_ref[...]
    a = a_ref[0]
    o_ref[...] = jnp.where(y >= 0.0, y, a * y)


def gemm_bias_prelu(x, w, b, alpha):
    """y = prelu(x @ w + b, alpha); single grid step, full-array blocks."""
    M, K = x.shape
    N = w.shape[1]
    # TODO(synk): at large INPUT_SIZE the first FC weight grows ~cubically; tile
    # the K axis with a f32 VMEM accumulator (pl.when init/finalize) instead of
    # a single full-K block to stay within v7x's 64 MiB VMEM.
    return pl.pallas_call(
        _gemm_bias_prelu_kernel,
        out_shape=jax.ShapeDtypeStruct((M, N), jnp.float32),
        grid=(1,),
        in_specs=[
            pl.BlockSpec((M, K), lambda i: (0, 0)),
            pl.BlockSpec((K, N), lambda i: (0, 0)),
            pl.BlockSpec((1, N), lambda i: (0, 0)),
            pl.BlockSpec(memory_space=pltpu.MemorySpace.SMEM),
        ],
        out_specs=pl.BlockSpec((M, N), lambda i: (0, 0)),
        compiler_params=pltpu.CompilerParams(
            dimension_semantics=("arbitrary",)),
    )(x.astype(jnp.float32), w.astype(jnp.float32),
      b.reshape(1, N).astype(jnp.float32),
      jnp.asarray(alpha, jnp.float32).reshape(1,))


# ----------------------------------------------------------------------------
# Kernel 3: fused tail  conv3 -> PReLU -> fc1 -> PReLU -> fc2
#   All intermediates stay in VMEM / registers; one launch, one HBM writeback.
# ----------------------------------------------------------------------------
def _head_kernel(x3_ref, w3_ref, b3_ref, wh1_ref, bh1_ref, wh2_ref, bh2_ref,
                 a_ref, o_ref):
    a3 = a_ref[0]
    ah = a_ref[1]
    y = jnp.dot(x3_ref[...], w3_ref[...],
                preferred_element_type=jnp.float32) + b3_ref[...]
    y = jnp.where(y >= 0.0, y, a3 * y)                       # conv3 PReLU
    z = jnp.dot(y, wh1_ref[...],
                preferred_element_type=jnp.float32) + bh1_ref[...]
    z = jnp.where(z >= 0.0, z, ah * z)                       # fc1 PReLU
    o_ref[...] = jnp.dot(z, wh2_ref[...],
                         preferred_element_type=jnp.float32) + bh2_ref[...]


def fused_head(x3, w3, b3, a3, wh1, bh1, ah, wh2, bh2):
    N, K3 = x3.shape
    C3 = w3.shape[1]
    H1 = wh1.shape[1]
    O = wh2.shape[1]
    alphas = jnp.stack([jnp.asarray(a3, jnp.float32),
                        jnp.asarray(ah, jnp.float32)])
    return pl.pallas_call(
        _head_kernel,
        out_shape=jax.ShapeDtypeStruct((N, O), jnp.float32),
        grid=(1,),
        in_specs=[
            pl.BlockSpec((N, K3), lambda i: (0, 0)),
            pl.BlockSpec((K3, C3), lambda i: (0, 0)),
            pl.BlockSpec((1, C3), lambda i: (0, 0)),
            pl.BlockSpec((C3, H1), lambda i: (0, 0)),
            pl.BlockSpec((1, H1), lambda i: (0, 0)),
            pl.BlockSpec((H1, O), lambda i: (0, 0)),
            pl.BlockSpec((1, O), lambda i: (0, 0)),
            pl.BlockSpec(memory_space=pltpu.MemorySpace.SMEM),  # (a3, ah)
        ],
        out_specs=pl.BlockSpec((N, O), lambda i: (0, 0)),
        compiler_params=pltpu.CompilerParams(
            dimension_semantics=("arbitrary",)),
    )(x3.astype(jnp.float32), w3.astype(jnp.float32),
      b3.reshape(1, C3).astype(jnp.float32),
      wh1.astype(jnp.float32), bh1.reshape(1, H1).astype(jnp.float32),
      wh2.astype(jnp.float32), bh2.reshape(1, O).astype(jnp.float32),
      alphas)


# ----------------------------------------------------------------------------
# im2col helpers (XLA glue; fuse under jit).  K ordering is (kd, kh, kw, C).
# ----------------------------------------------------------------------------
def _im2col_ndhwc(x, k, s):
    # x: (N, D, H, W, C) -> patches (N*oD*oH*oW, k^3*C)
    N, D, H, W, C = x.shape
    oD = (D - k) // s + 1
    oH = (H - k) // s + 1
    oW = (W - k) // s + 1
    cols = []
    for dz in range(k):
        for dy in range(k):
            for dx in range(k):
                cols.append(
                    x[:, dz:dz + s * oD:s, dy:dy + s * oH:s, dx:dx + s * oW:s, :])
    p = jnp.stack(cols, axis=4)                       # (N,oD,oH,oW,k^3,C)
    return p.reshape(N * oD * oH * oW, k * k * k * C), (oD, oH, oW)


def _im2col_ndhwc_t(x, k, s):
    # transposed orientation: (k^3*C, N*oD*oH*oW) so the conv GEMM is lane-dense
    N, D, H, W, C = x.shape
    oD = (D - k) // s + 1
    oH = (H - k) // s + 1
    oW = (W - k) // s + 1
    cols = []
    for dz in range(k):
        for dy in range(k):
            for dx in range(k):
                cols.append(
                    x[:, dz:dz + s * oD:s, dy:dy + s * oH:s, dx:dx + s * oW:s, :])
    p = jnp.stack(cols, axis=0)                       # (k^3, N,oD,oH,oW,C)
    p = jnp.transpose(p, (0, 5, 1, 2, 3, 4))          # (k^3, C, N,oD,oH,oW)
    return p.reshape(k * k * k * C, N * oD * oH * oW), (oD, oH, oW)


# ----------------------------------------------------------------------------
# Parameters (deterministic, PyTorch-equivalent shapes; PReLU slope = 0.25)
# ----------------------------------------------------------------------------
def init_params(key, input_size, output_size):
    ks = jax.random.split(key, 8)

    def conv_w(k_, kern, cin, cout):
        fan_in = cin * kern ** 3
        return jax.random.normal(k_, (kern, kern, kern, cin, cout),
                                 jnp.float32) * (1.0 / fan_in) ** 0.5

    def lin_w(k_, fin, fout):
        return jax.random.normal(k_, (fin, fout), jnp.float32) * (1.0 / fin) ** 0.5

    d = input_size
    d = d - 3 + 1                 # conv1 k=3 s=1
    d = (d - 5) // 2 + 1          # conv2 k=5 s=2
    d = (d - 5) // 2 + 1          # conv3 k=5 s=2
    first_fc_in_features = 32 * d * d * d

    params = dict(
        w1=conv_w(ks[0], 3, 1, 8),   b1=jnp.zeros((8,), jnp.float32),  a1=0.25,
        w2=conv_w(ks[1], 5, 8, 16),  b2=jnp.zeros((16,), jnp.float32), a2=0.25,
        w3=conv_w(ks[2], 5, 16, 32), b3=jnp.zeros((32,), jnp.float32), a3=0.25,
        wh1=lin_w(ks[3], first_fc_in_features, 128),
        bh1=jax.random.normal(ks[4], (128,), jnp.float32) * 0.01,
        ah=0.25,
        wh2=lin_w(ks[5], 128, output_size),
        bh2=jax.random.normal(ks[6], (output_size,), jnp.float32) * 0.01,
    )
    return params


# ----------------------------------------------------------------------------
# Forward pass (matches VoxelEncoder3.forward)
# ----------------------------------------------------------------------------
@jax.jit
def voxel_encoder3_forward(x_ncdhw, params):
    N = x_ncdhw.shape[0]
    x = jnp.transpose(x_ncdhw, (0, 2, 3, 4, 1))               # NCDHW -> NDHWC

    # conv1 (k=3, s=1, 1->8): lane-dense transposed GEMM, 2 parallel M tiles.
    x1t, (d1, _, _) = _im2col_ndhwc_t(x, 3, 1)                # (27, N*d1^3)
    y1t = conv_gemm_t(x1t, params['w1'].reshape(27, 8),
                      params['b1'], params['a1'])             # (8, N*d1^3)
    y1 = jnp.transpose(y1t.reshape(8, N, d1, d1, d1), (1, 2, 3, 4, 0))  # NDHWC

    # conv2 (k=5, s=2, 8->16): single full-block fused GEMM+PReLU.
    x2, (d2, _, _) = _im2col_ndhwc(y1, 5, 2)                  # (N*d2^3, 5^3*8)
    y2 = gemm_bias_prelu(x2, params['w2'].reshape(-1, 16),
                         params['b2'], params['a2'])          # (N*d2^3, 16)

    d3 = (d2 - 5) // 2 + 1
    if d3 == 1:
        # conv3 covers the whole d2^3 volume -> its im2col is a free row-major
        # reshape of y2; conv3 + fc1 + fc2 fuse into one kernel.  The NCDHW
        # flatten is trivially the channel vector because D=H=W=1.
        x3 = y2.reshape(N, d2 * d2 * d2 * 16)
        out = fused_head(x3, params['w3'].reshape(-1, 32), params['b3'],
                         params['a3'], params['wh1'], params['bh1'],
                         params['ah'], params['wh2'], params['bh2'])
    else:
        # TODO(synk): general (d3 > 1) tail is left unfused; it uses the generic
        # single-block GEMM kernel per layer with an explicit NCDHW flatten.
        y2v = y2.reshape(N, d2, d2, d2, 16)
        x3, (d3g, _, _) = _im2col_ndhwc(y2v, 5, 2)
        y3 = gemm_bias_prelu(x3, params['w3'].reshape(-1, 32),
                             params['b3'], params['a3'])
        y3 = y3.reshape(N, d3g, d3g, d3g, 32)
        flat = jnp.transpose(y3, (0, 4, 1, 2, 3)).reshape(N, -1)
        z = gemm_bias_prelu(flat, params['wh1'], params['bh1'], params['ah'])
        out = gemm_bias_prelu(z, params['wh2'], params['bh2'], 1.0)
    return out


if __name__ == "__main__":
    INPUT_SIZE = 16          # voxel grid edge length
    OUTPUT_SIZE = 32
    BATCH = 2

    key = jax.random.PRNGKey(0)
    k_params, k_input = jax.random.split(key)
    params = init_params(k_params, INPUT_SIZE, OUTPUT_SIZE)

    x = jax.random.normal(
        k_input, (BATCH, 1, INPUT_SIZE, INPUT_SIZE, INPUT_SIZE), jnp.float32)

    out = voxel_encoder3_forward(x, params)
    out = jax.block_until_ready(out)
    assert out.shape == (BATCH, OUTPUT_SIZE), out.shape
    assert jnp.all(jnp.isfinite(out))
    print("KERNEL_OK")
</pallas_src>

<mosaic_0001>
module attributes {stable_mosaic.version = 11 : i64} {
  func.func @_conv_gemm_t_kernel(%arg0: i32, %arg1: memref<27x2816xf32, #tpu.memory_space<vmem>>, %arg2: memref<8x27xf32, #tpu.memory_space<vmem>>, %arg3: memref<8x1xf32, #tpu.memory_space<vmem>>, %arg4: memref<1xf32, #tpu.memory_space<smem>>, %arg5: memref<8x2816xf32, #tpu.memory_space<vmem>>) attributes {dimension_semantics = [#tpu.dimension_semantics<parallel>], iteration_bounds = array<i64: 2>, scalar_prefetch = 0 : i64, scratch_operands = 0 : i64, tpu.core_type = #tpu.core_type<tc>, window_params = [{transform_indices = @transform_0, window_bounds = array<i64: 27, 2816>}, {pipeline_mode = #tpu.pipeline_mode<synchronous>, transform_indices = @transform_1, window_bounds = array<i64: 8, 27>}, {pipeline_mode = #tpu.pipeline_mode<synchronous>, transform_indices = @transform_2, window_bounds = array<i64: 8, 1>}, {transform_indices = @transform_3, window_bounds = array<i64: 1>}, {transform_indices = @transform_4, window_bounds = array<i64: 8, 2816>}]} {
    %c0 = arith.constant 0 : index
    %c0_0 = arith.constant 0 : index
    %0 = vector.load %arg2[%c0, %c0_0] : memref<8x27xf32, #tpu.memory_space<vmem>>, vector<8x27xf32>
    %c0_1 = arith.constant 0 : index
    %c0_2 = arith.constant 0 : index
    %1 = vector.load %arg1[%c0_1, %c0_2] : memref<27x2816xf32, #tpu.memory_space<vmem>>, vector<27x2816xf32>
    %cst = arith.constant dense<0.000000e+00> : vector<8x2816xf32>
    %2 = tpu.matmul %0, %1, %cst {dimension_numbers = #tpu.dot_dimension_numbers<[1], [0], [0], [1], [0, 0, 1, 1], [], []>} : vector<8x27xf32>, vector<27x2816xf32>, vector<8x2816xf32> -> vector<8x2816xf32>
    %c0_3 = arith.constant 0 : index
    %c0_4 = arith.constant 0 : index
    %3 = vector.load %arg3[%c0_3, %c0_4] : memref<8x1xf32, #tpu.memory_space<vmem>>, vector<8x1xf32>
    %4 = vector.broadcast %3 : vector<8x1xf32> to vector<8x2816xf32>
    %5 = arith.addf %2, %4 : vector<8x2816xf32>
    %c0_5 = arith.constant 0 : index
    %6 = memref.load %arg4[%c0_5] : memref<1xf32, #tpu.memory_space<smem>>
    %cst_6 = arith.constant 0.000000e+00 : f32
    %7 = vector.broadcast %cst_6 : f32 to vector<8x2816xf32>
    %8 = arith.cmpf oge, %5, %7 : vector<8x2816xf32>
    %9 = vector.broadcast %6 : f32 to vector<8x2816xf32>
    %10 = arith.mulf %9, %5 : vector<8x2816xf32>
    %11 = arith.select %8, %5, %10 : vector<8x2816xi1>, vector<8x2816xf32>
    %c0_7 = arith.constant 0 : index
    %c0_8 = arith.constant 0 : index
    %12 = vector.load %arg5[%c0_7, %c0_8] : memref<8x2816xf32, #tpu.memory_space<vmem>>, vector<8x2816xf32>
    tpu.vector_store %arg5[%c0_7, %c0_8], %11 {strides = array<i32>} : memref<8x2816xf32, #tpu.memory_space<vmem>>, vector<8x2816xf32>,
    return
  }
  func.func @transform_0(%arg0: i32) -> (i32, i32) {
    %c0_i32 = arith.constant 0 : i32
    %c0_i32_0 = arith.constant 0 : i32
    return %c0_i32, %arg0 : i32, i32
  }
  func.func @transform_1(%arg0: i32) -> (i32, i32) {
    %c0_i32 = arith.constant 0 : i32
    %c0_i32_0 = arith.constant 0 : i32
    %c0_i32_1 = arith.constant 0 : i32
    return %c0_i32, %c0_i32_0 : i32, i32
  }
  func.func @transform_2(%arg0: i32) -> (i32, i32) {
    %c0_i32 = arith.constant 0 : i32
    %c0_i32_0 = arith.constant 0 : i32
    %c0_i32_1 = arith.constant 0 : i32
    return %c0_i32, %c0_i32_0 : i32, i32
  }
  func.func @transform_3(%arg0: i32) -> i32 {
    %c0_i32 = arith.constant 0 : i32
    %c0_i32_0 = arith.constant 0 : i32
    return %c0_i32 : i32
  }
  func.func @transform_4(%arg0: i32) -> (i32, i32) {
    %c0_i32 = arith.constant 0 : i32
    %c0_i32_0 = arith.constant 0 : i32
    return %c0_i32, %arg0 : i32, i32
  }
}

module attributes {stable_mosaic.version = 11 : i64} {
  func.func @_gemm_bias_prelu_kernel(%arg0: i32, %arg1: memref<250x1000xf32, #tpu.memory_space<vmem>>, %arg2: memref<1000x16xf32, #tpu.memory_space<vmem>>, %arg3: memref<1x16xf32, #tpu.memory_space<vmem>>, %arg4: memref<1xf32, #tpu.memory_space<smem>>, %arg5: memref<250x16xf32, #tpu.memory_space<vmem>>) attributes {dimension_semantics = [#tpu.dimension_semantics<arbitrary>], iteration_bounds = array<i64: 1>, scalar_prefetch = 0 : i64, scratch_operands = 0 : i64, tpu.core_type = #tpu.core_type<tc>, window_params = [{pipeline_mode = #tpu.pipeline_mode<synchronous>, transform_indices = @transform_0, window_bounds = array<i64: 250, 1000>}, {pipeline_mode = #tpu.pipeline_mode<synchronous>, transform_indices = @transform_1, window_bounds = array<i64: 1000, 16>}, {pipeline_mode = #tpu.pipeline_mode<synchronous>, transform_indices = @transform_2, window_bounds = array<i64: 1, 16>}, {transform_indices = @transform_3, window_bounds = array<i64: 1>}, {pipeline_mode = #tpu.pipeline_mode<synchronous>, transform_indices = @transform_4, window_bounds = array<i64: 250, 16>}]} {
    %c0 = arith.constant 0 : index
    %c0_0 = arith.constant 0 : index
    %0 = vector.load %arg1[%c0, %c0_0] : memref<250x1000xf32, #tpu.memory_space<vmem>>, vector<250x1000xf32>
    %c0_1 = arith.constant 0 : index
    %c0_2 = arith.constant 0 : index
    %1 = vector.load %arg2[%c0_1, %c0_2] : memref<1000x16xf32, #tpu.memory_space<vmem>>, vector<1000x16xf32>
    %cst = arith.constant dense<0.000000e+00> : vector<250x16xf32>
    %2 = tpu.matmul %0, %1, %cst {dimension_numbers = #tpu.dot_dimension_numbers<[1], [0], [0], [1], [0, 0, 1, 1], [], []>} : vector<250x1000xf32>, vector<1000x16xf32>, vector<250x16xf32> -> vector<250x16xf32>
    %c0_3 = arith.constant 0 : index
    %c0_4 = arith.constant 0 : index
    %3 = vector.load %arg3[%c0_3, %c0_4] : memref<1x16xf32, #tpu.memory_space<vmem>>, vector<1x16xf32>
    %4 = vector.broadcast %3 : vector<1x16xf32> to vector<250x16xf32>
    %5 = arith.addf %2, %4 : vector<250x16xf32>
    %c0_5 = arith.constant 0 : index
    %6 = memref.load %arg4[%c0_5] : memref<1xf32, #tpu.memory_space<smem>>
    %cst_6 = arith.constant 0.000000e+00 : f32
    %7 = vector.broadcast %cst_6 : f32 to vector<250x16xf32>
    %8 = arith.cmpf oge, %5, %7 : vector<250x16xf32>
    %9 = vector.broadcast %6 : f32 to vector<250x16xf32>
    %10 = arith.mulf %9, %5 : vector<250x16xf32>
    %11 = arith.select %8, %5, %10 : vector<250x16xi1>, vector<250x16xf32>
    %c0_7 = arith.constant 0 : index
    %c0_8 = arith.constant 0 : index
    %12 = vector.load %arg5[%c0_7, %c0_8] : memref<250x16xf32, #tpu.memory_space<vmem>>, vector<250x16xf32>
    tpu.vector_store %arg5[%c0_7, %c0_8], %11 {strides = array<i32>} : memref<250x16xf32, #tpu.memory_space<vmem>>, vector<250x16xf32>,
    return
  }
  func.func @transform_0(%arg0: i32) -> (i32, i32) {
    %c0_i32 = arith.constant 0 : i32
    %c0_i32_0 = arith.constant 0 : i32
    %c0_i32_1 = arith.constant 0 : i32
    return %c0_i32, %c0_i32_0 : i32, i32
  }
  func.func @transform_1(%arg0: i32) -> (i32, i32) {
    %c0_i32 = arith.constant 0 : i32
    %c0_i32_0 = arith.constant 0 : i32
    %c0_i32_1 = arith.constant 0 : i32
    return %c0_i32, %c0_i32_0 : i32, i32
  }
  func.func @transform_2(%arg0: i32) -> (i32, i32) {
    %c0_i32 = arith.constant 0 : i32
    %c0_i32_0 = arith.constant 0 : i32
    %c0_i32_1 = arith.constant 0 : i32
    return %c0_i32, %c0_i32_0 : i32, i32
  }
  func.func @transform_3(%arg0: i32) -> i32 {
    %c0_i32 = arith.constant 0 : i32
    %c0_i32_0 = arith.constant 0 : i32
    return %c0_i32 : i32
  }
  func.func @transform_4(%arg0: i32) -> (i32, i32) {
    %c0_i32 = arith.constant 0 : i32
    %c0_i32_0 = arith.constant 0 : i32
    %c0_i32_1 = arith.constant 0 : i32
    return %c0_i32, %c0_i32_0 : i32, i32
  }
}

module attributes {stable_mosaic.version = 11 : i64} {
  func.func @_head_kernel(%arg0: i32, %arg1: memref<2x2000xf32, #tpu.memory_space<vmem>>, %arg2: memref<2000x32xf32, #tpu.memory_space<vmem>>, %arg3: memref<1x32xf32, #tpu.memory_space<vmem>>, %arg4: memref<32x128xf32, #tpu.memory_space<vmem>>, %arg5: memref<1x128xf32, #tpu.memory_space<vmem>>, %arg6: memref<128x32xf32, #tpu.memory_space<vmem>>, %arg7: memref<1x32xf32, #tpu.memory_space<vmem>>, %arg8: memref<2xf32, #tpu.memory_space<smem>>, %arg9: memref<2x32xf32, #tpu.memory_space<vmem>>) attributes {dimension_semantics = [#tpu.dimension_semantics<arbitrary>], iteration_bounds = array<i64: 1>, scalar_prefetch = 0 : i64, scratch_operands = 0 : i64, tpu.core_type = #tpu.core_type<tc>, window_params = [{pipeline_mode = #tpu.pipeline_mode<synchronous>, transform_indices = @transform_0, window_bounds = array<i64: 2, 2000>}, {pipeline_mode = #tpu.pipeline_mode<synchronous>, transform_indices = @transform_1, window_bounds = array<i64: 2000, 32>}, {pipeline_mode = #tpu.pipeline_mode<synchronous>, transform_indices = @transform_2, window_bounds = array<i64: 1, 32>}, {pipeline_mode = #tpu.pipeline_mode<synchronous>, transform_indices = @transform_3, window_bounds = array<i64: 32, 128>}, {pipeline_mode = #tpu.pipeline_mode<synchronous>, transform_indices = @transform_4, window_bounds = array<i64: 1, 128>}, {pipeline_mode = #tpu.pipeline_mode<synchronous>, transform_indices = @transform_5, window_bounds = array<i64: 128, 32>}, {pipeline_mode = #tpu.pipeline_mode<synchronous>, transform_indices = @transform_6, window_bounds = array<i64: 1, 32>}, {transform_indices = @transform_7, window_bounds = array<i64: 2>}, {pipeline_mode = #tpu.pipeline_mode<synchronous>, transform_indices = @transform_8, window_bounds = array<i64: 2, 32>}]} {
    %c0 = arith.constant 0 : index
    %0 = memref.load %arg8[%c0] : memref<2xf32, #tpu.memory_space<smem>>
    %c1 = arith.constant 1 : index
    %1 = memref.load %arg8[%c1] : memref<2xf32, #tpu.memory_space<smem>>
    %c0_0 = arith.constant 0 : index
    %c0_1 = arith.constant 0 : index
    %2 = vector.load %arg1[%c0_0, %c0_1] : memref<2x2000xf32, #tpu.memory_space<vmem>>, vector<2x2000xf32>
    %c0_2 = arith.constant 0 : index
    %c0_3 = arith.constant 0 : index
    %3 = vector.load %arg2[%c0_2, %c0_3] : memref<2000x32xf32, #tpu.memory_space<vmem>>, vector<2000x32xf32>
    %cst = arith.constant dense<0.000000e+00> : vector<2x32xf32>
    %4 = tpu.matmul %2, %3, %cst {dimension_numbers = #tpu.dot_dimension_numbers<[1], [0], [0], [1], [0, 0, 1, 1], [], []>} : vector<2x2000xf32>, vector<2000x32xf32>, vector<2x32xf32> -> vector<2x32xf32>
    %c0_4 = arith.constant 0 : index
    %c0_5 = arith.constant 0 : index
    %5 = vector.load %arg3[%c0_4, %c0_5] : memref<1x32xf32, #tpu.memory_space<vmem>>, vector<1x32xf32>
    %6 = vector.broadcast %5 : vector<1x32xf32> to vector<2x32xf32>
    %7 = arith.addf %4, %6 : vector<2x32xf32>
    %cst_6 = arith.constant 0.000000e+00 : f32
    %8 = vector.broadcast %cst_6 : f32 to vector<2x32xf32>
    %9 = arith.cmpf oge, %7, %8 : vector<2x32xf32>
    %10 = vector.broadcast %0 : f32 to vector<2x32xf32>
    %11 = arith.mulf %10, %7 : vector<2x32xf32>
    %12 = arith.select %9, %7, %11 : vector<2x32xi1>, vector<2x32xf32>
    %c0_7 = arith.constant 0 : index
    %c0_8 = arith.constant 0 : index
    %13 = vector.load %arg4[%c0_7, %c0_8] : memref<32x128xf32, #tpu.memory_space<vmem>>, vector<32x128xf32>
    %cst_9 = arith.constant dense<0.000000e+00> : vector<2x128xf32>
    %14 = tpu.matmul %12, %13, %cst_9 {dimension_numbers = #tpu.dot_dimension_numbers<[1], [0], [0], [1], [0, 0, 1, 1], [], []>} : vector<2x32xf32>, vector<32x128xf32>, vector<2x128xf32> -> vector<2x128xf32>
    %c0_10 = arith.constant 0 : index
    %c0_11 = arith.constant 0 : index
    %15 = vector.load %arg5[%c0_10, %c0_11] : memref<1x128xf32, #tpu.memory_space<vmem>>, vector<1x128xf32>
    %16 = vector.broadcast %15 : vector<1x128xf32> to vector<2x128xf32>
    %17 = arith.addf %14, %16 : vector<2x128xf32>
    %cst_12 = arith.constant 0.000000e+00 : f32
    %18 = vector.broadcast %cst_12 : f32 to vector<2x128xf32>
    %19 = arith.cmpf oge, %17, %18 : vector<2x128xf32>
    %20 = vector.broadcast %1 : f32 to vector<2x128xf32>
    %21 = arith.mulf %20, %17 : vector<2x128xf32>
    %22 = arith.select %19, %17, %21 : vector<2x128xi1>, vector<2x128xf32>
    %c0_13 = arith.constant 0 : index
    %c0_14 = arith.constant 0 : index
    %23 = vector.load %arg6[%c0_13, %c0_14] : memref<128x32xf32, #tpu.memory_space<vmem>>, vector<128x32xf32>
    %cst_15 = arith.constant dense<0.000000e+00> : vector<2x32xf32>
    %24 = tpu.matmul %22, %23, %cst_15 {dimension_numbers = #tpu.dot_dimension_numbers<[1], [0], [0], [1], [0, 0, 1, 1], [], []>} : vector<2x128xf32>, vector<128x32xf32>, vector<2x32xf32> -> vector<2x32xf32>
    %c0_16 = arith.constant 0 : index
    %c0_17 = arith.constant 0 : index
    %25 = vector.load %arg7[%c0_16, %c0_17] : memref<1x32xf32, #tpu.memory_space<vmem>>, vector<1x32xf32>
    %26 = vector.broadcast %25 : vector<1x32xf32> to vector<2x32xf32>
    %27 = arith.addf %24, %26 : vector<2x32xf32>
    %c0_18 = arith.constant 0 : index
    %c0_19 = arith.constant 0 : index
    %28 = vector.load %arg9[%c0_18, %c0_19] : memref<2x32xf32, #tpu.memory_space<vmem>>, vector<2x32xf32>
    tpu.vector_store %arg9[%c0_18, %c0_19], %27 {strides = array<i32>} : memref<2x32xf32, #tpu.memory_space<vmem>>, vector<2x32xf32>,
    return
  }
  func.func @transform_0(%arg0: i32) -> (i32, i32) {
    %c0_i32 = arith.constant 0 : i32
    %c0_i32_0 = arith.constant 0 : i32
    %c0_i32_1 = arith.constant 0 : i32
    return %c0_i32, %c0_i32_0 : i32, i32
  }
  func.func @transform_1(%arg0: i32) -> (i32, i32) {
    %c0_i32 = arith.constant 0 : i32
    %c0_i32_0 = arith.constant 0 : i32
    %c0_i32_1 = arith.constant 0 : i32
    return %c0_i32, %c0_i32_0 : i32, i32
  }
  func.func @transform_2(%arg0: i32) -> (i32, i32) {
    %c0_i32 = arith.constant 0 : i32
    %c0_i32_0 = arith.constant 0 : i32
    %c0_i32_1 = arith.constant 0 : i32
    return %c0_i32, %c0_i32_0 : i32, i32
  }
  func.func @transform_3(%arg0: i32) -> (i32, i32) {
    %c0_i32 = arith.constant 0 : i32
    %c0_i32_0 = arith.constant 0 : i32
    %c0_i32_1 = arith.constant 0 : i32
    return %c0_i32, %c0_i32_0 : i32, i32
  }
  func.func @transform_4(%arg0: i32) -> (i32, i32) {
    %c0_i32 = arith.constant 0 : i32
    %c0_i32_0 = arith.constant 0 : i32
    %c0_i32_1 = arith.constant 0 : i32
    return %c0_i32, %c0_i32_0 : i32, i32
  }
  func.func @transform_5(%arg0: i32) -> (i32, i32) {
    %c0_i32 = arith.constant 0 : i32
    %c0_i32_0 = arith.constant 0 : i32
    %c0_i32_1 = arith.constant 0 : i32
    return %c0_i32, %c0_i32_0 : i32, i32
  }
  func.func @transform_6(%arg0: i32) -> (i32, i32) {
    %c0_i32 = arith.constant 0 : i32
    %c0_i32_0 = arith.constant 0 : i32
    %c0_i32_1 = arith.constant 0 : i32
    return %c0_i32, %c0_i32_0 : i32, i32
  }
  func.func @transform_7(%arg0: i32) -> i32 {
    %c0_i32 = arith.constant 0 : i32
    %c0_i32_0 = arith.constant 0 : i32
    return %c0_i32 : i32
  }
  func.func @transform_8(%arg0: i32) -> (i32, i32) {
    %c0_i32 = arith.constant 0 : i32
    %c0_i32_0 = arith.constant 0 : i32
    %c0_i32_1 = arith.constant 0 : i32
    return %c0_i32, %c0_i32_0 : i32, i32
  }
}

</mosaic_0001>

<bundles_post_ra>
// kernel: voxel_encoder3_forward.3
= control target key start
LH: loop header
LB: loop body
LE: loop exit
PB: predicated region body
PF: predicated region fallthrough
CT: control target
= control target key end

     0   :  { %s2215_s0 = inlined_call_operand.vmem [shape: f32[27,5632], index: 0, kind: input, shape index: {}]   ;;  %s2216_s1 = inlined_call_operand.vmem [shape: f32[8,27], index: 1, kind: input, shape index: {}]   ;;  %s2217_s2 = inlined_call_operand.vmem [shape: f32[8,1], index: 2, kind: input, shape index: {}]   ;;  %s2218_s3 = inlined_call_operand.<no memory space> [shape: f32[1], index: 3, kind: input, shape index: {}]   ;;  %s2219_s4 = inlined_call_operand.vmem [shape: f32[8,5632], index: 4, kind: output, shape index: {}]  }
   0x1   :  { %9 = sst [smem:[#allocation2]] %s2218_s3 }
   0x2   :  { %s1732_s17 = smov 0   ;;  %s1734_s18 = smov 0  }
   0x3   :  { %s1736_s19 = smov 0  }
   0x4 LB: > { %s1494_s3 = sadd.s32 4294967295, %s1699_s19   ;;  %s1749_s20 = sadd.s32 1, %s1699_s19   ;;  %s1699_s19 = sphi %s1736_s19, %s2224_s19   ;;  %s1695_s18 = sphi %s1734_s18, %s2223_s18   ;;  %s1691_s17 = sphi %s1732_s17, %s2222_s17  }
   0x5   : > { %s19_s21 = ssub.s32 %s1699_s19, %s1749_s20  ;;  %s22_s22 = sadd.s32 1, %s1695_s18 }
   0x6   : > { %p20_p0 = scmp.eq.s32.totalorder %s19_s21, 0  ;;  %p29_p1 = scmp.ne.s32.totalorder %s1695_s18, %s1691_s17 }
   0x7   : > { %p30_p2 = scmp.eq.s32.totalorder %s1699_s19, 0  ;;  %p1497_p4 = scmp.ge.s32.totalorder %s1699_s19, 2 }
   0x8   : > { %s1758_s23 = scalar_select %p20_p0, %s1695_s18, %s22_s22  }
   0x9   : > { %p31_p3 = por %p30_p2, %p29_p1  ;;  %153 = sbr.rel (%p1497_p4) target bundleno = 65 (0x41), region = 28 }
  0x10   : > { %156 = sbr.rel (!%p31_p3) target bundleno = 65 (0x41), region = 32  ;;  %s158_s24 = sand.u32 (%p31_p3), 1, %s1695_s18  }
  0x11   : > { %s1536_s25 = smul.u32 (%p31_p3), 176, %s1699_s19 }
  0x12   : > { %s1647_s26 = smul.u32 (%p31_p3), 704, %s158_s24 }
  0x13   : > { %s1766_s29 = scalar_lea.vmem (%p31_p3), %s2215_s0, %s1536_s25 }
  0x14   : > { %v176_v0 = vld [vmem:[%s1766_s29] sm:$0xff] (%p31_p3)  ;;  %v178_v1 = vld [vmem:[%s1766_s29 + $0x8] sm:$0xff] (%p31_p3)  ;;  %v180_v2 = vld [vmem:[%s1766_s29 + $0x10] sm:$0xff] (%p31_p3)  ;;  %s1771_s30 = scalar_lea.vmem (%p31_p3), [#allocation3], %s1647_s26 }
  0x15   : > { %177 = vst [vmem:[%s1771_s30] sm:$0xff] (%p31_p3), %v176_v0  ;;  %179 = vst [vmem:[%s1771_s30 + $0x8] sm:$0xff] (%p31_p3), %v178_v1  ;;  %v182_v3 = vld [vmem:[%s1766_s29 + $0x18] sm:$0xff] (%p31_p3)  ;;  %v184_v4 = vld [vmem:[%s1766_s29 + $0x20] sm:$0xff] (%p31_p3) }
  0x16   : > { %181 = vst [vmem:[%s1771_s30 + $0x10] sm:$0xff] (%p31_p3), %v180_v2  ;;  %v186_v5 = vld [vmem:[%s1766_s29 + $0x28] sm:$0xff] (%p31_p3)  ;;  %183 = vst [vmem:[%s1771_s30 + $0x18] sm:$0xff] (%p31_p3), %v182_v3  ;;  %v188_v6 = vld [vmem:[%s1766_s29 + $0x30] sm:$0xff] (%p31_p3) }
  0x17   : > { %185 = vst [vmem:[%s1771_s30 + $0x20] sm:$0xff] %v184_v4  ;;  %187 = vst [vmem:[%s1771_s30 + $0x28] sm:$0xff] %v186_v5  ;;  %v190_v7 = vld [vmem:[%s1766_s29 + $0x38] sm:$0xff]  ;;  %v192_v8 = vld [vmem:[%s1766_s29 + $0x40] sm:$0xff] }
  0x18   : > { %189 = vst [vmem:[%s1771_s30 + $0x30] sm:$0xff] %v188_v6  ;;  %191 = vst [vmem:[%s1771_s30 + $0x38] sm:$0xff] %v190_v7  ;;  %v194_v9 = vld [vmem:[%s1766_s29 + $0x48] sm:$0xff]  ;;  %v196_v10 = vld [vmem:[%s1766_s29 + $0x50] sm:$0xff] }
  0x19   : > { %193 = vst [vmem:[%s1771_s30 + $0x40] sm:$0xff] %v192_v8  ;;  %v198_v11 = vld [vmem:[%s1766_s29 + $0x58] sm:$0xff]  ;;  %195 = vst [vmem:[%s1771_s30 + $0x48] sm:$0xff] %v194_v9  ;;  %v200_v12 = vld [vmem:[%s1766_s29 + $0x60] sm:$0xff] }
  0x1a   : > { %197 = vst [vmem:[%s1771_s30 + $0x50] sm:$0xff] %v196_v10  ;;  %199 = vst [vmem:[%s1771_s30 + $0x58] sm:$0xff] %v198_v11  ;;  %v202_v13 = vld [vmem:[%s1766_s29 + $0x68] sm:$0xff]  ;;  %v204_v14 = vld [vmem:[%s1766_s29 + $0x70] sm:$0xff] }
  0x1b   : > { %201 = vst [vmem:[%s1771_s30 + $0x60] sm:$0xff] %v200_v12  ;;  %203 = vst [vmem:[%s1771_s30 + $0x68] sm:$0xff] %v202_v13  ;;  %v206_v15 = vld [vmem:[%s1766_s29 + $0x78] sm:$0xff]  ;;  %v208_v16 = vld [vmem:[%s1766_s29 + $0x80] sm:$0xff] }
  0x1c   : > { %205 = vst [vmem:[%s1771_s30 + $0x70] sm:$0xff] %v204_v14  ;;  %v210_v17 = vld [vmem:[%s1766_s29 + $0x88] sm:$0xff]  ;;  %207 = vst [vmem:[%s1771_s30 + $0x78] sm:$0xff] %v206_v15  ;;  %v212_v18 = vld [vmem:[%s1766_s29 + $0x90] sm:$0xff] }
  0x1d   : > { %209 = vst [vmem:[%s1771_s30 + $0x80] sm:$0xff] %v208_v16  ;;  %211 = vst [vmem:[%s1771_s30 + $0x88] sm:$0xff] %v210_v17  ;;  %v214_v19 = vld [vmem:[%s1766_s29 + $0x98] sm:$0xff]  ;;  %v216_v20 = vld [vmem:[%s1766_s29 + $0xa0] sm:$0xff] }
  0x1e   : > { %213 = vst [vmem:[%s1771_s30 + $0x90] sm:$0xff] %v212_v18  ;;  %215 = vst [vmem:[%s1771_s30 + $0x98] sm:$0xff] %v214_v19  ;;  %v218_v21 = vld [vmem:[%s1766_s29 + $0xa8] sm:$0xff]  ;;  %v220_v22 = vld [vmem:[%s1766_s29 + $0x160] sm:$0xff] }
  0x1f   : > { %217 = vst [vmem:[%s1771_s30 + $0xa0] sm:$0xff] %v216_v20  ;;  %v222_v23 = vld [vmem:[%s1766_s29 + $0x168] sm:$0xff]  ;;  %219 = vst [vmem:[%s1771_s30 + $0xa8] sm:$0xff] %v218_v21  ;;  %v224_v24 = vld [vmem:[%s1766_s29 + $0x170] sm:$0xff] }
  0x20   : > { %221 = vst [vmem:[%s1771_s30 + $0xb0] sm:$0xff] %v220_v22  ;;  %223 = vst [vmem:[%s1771_s30 + $0xb8] sm:$0xff] %v222_v23  ;;  %v226_v25 = vld [vmem:[%s1766_s29 + $0x178] sm:$0xff]  ;;  %v228_v26 = vld [vmem:[%s1766_s29 + $0x180] sm:$0xff] }
  0x21   : > { %225 = vst [vmem:[%s1771_s30 + $0xc0] sm:$0xff] %v224_v24  ;;  %227 = vst [vmem:[%s1771_s30 + $0xc8] sm:$0xff] %v226_v25  ;;  %v230_v27 = vld [vmem:[%s1766_s29 + $0x188] sm:$0xff]  ;;  %v232_v28 = vld [vmem:[%s1766_s29 + $0x190] sm:$0xff] }
  0x22   : > { %229 = vst [vmem:[%s1771_s30 + $0xd0] sm:$0xff] %v228_v26  ;;  %v234_v29 = vld [vmem:[%s1766_s29 + $0x198] sm:$0xff]  ;;  %231 = vst [vmem:[%s1771_s30 + $0xd8] sm:$0xff] %v230_v27  ;;  %v236_v30 = vld [vmem:[%s1766_s29 + $0x1a0] sm:$0xff] }
  0x23   : > { %233 = vst [vmem:[%s1771_s30 + $0xe0] sm:$0xff] %v232_v28  ;;  %235 = vst [vmem:[%s1771_s30 + $0xe8] sm:$0xff] %v234_v29  ;;  %v238_v31 = vld [vmem:[%s1766_s29 + $0x1a8] sm:$0xff]  ;;  %v240_v32 = vld [vmem:[%s1766_s29 + $0x1b0] sm:$0xff] }
  0x24   : > { %237 = vst [vmem:[%s1771_s30 + $0xf0] sm:$0xff] %v236_v30  ;;  %239 = vst [vmem:[%s1771_s30 + $0xf8] sm:$0xff] %v238_v31  ;;  %v242_v33 = vld [vmem:[%s1766_s29 + $0x1b8] sm:$0xff]  ;;  %v244_v34 = vld [vmem:[%s1766_s29 + $0x1c0] sm:$0xff] }
  0x25   : > { %241 = vst [vmem:[%s1771_s30 + $0x100] sm:$0xff] %v240_v32  ;;  %v246_v35 = vld [vmem:[%s1766_s29 + $0x1c8] sm:$0xff]  ;;  %243 = vst [vmem:[%s1771_s30 + $0x108] sm:$0xff] %v242_v33  ;;  %v248_v36 = vld [vmem:[%s1766_s29 + $0x1d0] sm:$0xff] }
  0x26   : > { %245 = vst [vmem:[%s1771_s30 + $0x110] sm:$0xff] %v244_v34  ;;  %247 = vst [vmem:[%s1771_s30 + $0x118] sm:$0xff] %v246_v35  ;;  %v250_v37 = vld [vmem:[%s1766_s29 + $0x1d8] sm:$0xff]  ;;  %v252_v38 = vld [vmem:[%s1766_s29 + $0x1e0] sm:$0xff] }
  0x27   : > { %249 = vst [vmem:[%s1771_s30 + $0x120] sm:$0xff] %v248_v36  ;;  %251 = vst [vmem:[%s1771_s30 + $0x128] sm:$0xff] %v250_v37  ;;  %v254_v39 = vld [vmem:[%s1766_s29 + $0x1e8] sm:$0xff]  ;;  %v256_v40 = vld [vmem:[%s1766_s29 + $0x1f0] sm:$0xff] }
  0x28   : > { %253 = vst [vmem:[%s1771_s30 + $0x130] sm:$0xff] %v252_v38  ;;  %v258_v41 = vld [vmem:[%s1766_s29 + $0x1f8] sm:$0xff]  ;;  %255 = vst [vmem:[%s1771_s30 + $0x138] sm:$0xff] %v254_v39  ;;  %v260_v42 = vld [vmem:[%s1766_s29 + $0x200] sm:$0xff] }
  0x29   : > { %257 = vst [vmem:[%s1771_s30 + $0x140] sm:$0xff] %v256_v40  ;;  %259 = vst [vmem:[%s1771_s30 + $0x148] sm:$0xff] %v258_v41  ;;  %v262_v43 = vld [vmem:[%s1766_s29 + $0x208] sm:$0xff]  ;;  %v264_v44 = vld [vmem:[%s1766_s29 + $0x2c0] sm:$0xff] }
  0x2a   : > { %261 = vst [vmem:[%s1771_s30 + $0x150] sm:$0xff] %v260_v42  ;;  %263 = vst [vmem:[%s1771_s30 + $0x158] sm:$0xff] %v262_v43  ;;  %v266_v45 = vld [vmem:[%s1766_s29 + $0x2c8] sm:$0xff]  ;;  %v268_v46 = vld [vmem:[%s1766_s29 + $0x2d0] sm:$0xff] }
  0x2b   : > { %265 = vst [vmem:[%s1771_s30 + $0x160] sm:$0xff] %v264_v44  ;;  %v270_v47 = vld [vmem:[%s1766_s29 + $0x2d8] sm:$0xff]  ;;  %267 = vst [vmem:[%s1771_s30 + $0x168] sm:$0xff] %v266_v45  ;;  %v272_v48 = vld [vmem:[%s1766_s29 + $0x2e0] sm:$0xff] }
  0x2c   : > { %269 = vst [vmem:[%s1771_s30 + $0x170] sm:$0xff] %v268_v46  ;;  %271 = vst [vmem:[%s1771_s30 + $0x178] sm:$0xff] %v270_v47  ;;  %v274_v49 = vld [vmem:[%s1766_s29 + $0x2e8] sm:$0xff]  ;;  %v276_v50 = vld [vmem:[%s1766_s29 + $0x2f0] sm:$0xff] }
  0x2d   : > { %273 = vst [vmem:[%s1771_s30 + $0x180] sm:$0xff] %v272_v48  ;;  %275 = vst [vmem:[%s1771_s30 + $0x188] sm:$0xff] %v274_v49  ;;  %v278_v51 = vld [vmem:[%s1766_s29 + $0x2f8] sm:$0xff]  ;;  %v280_v52 = vld [vmem:[%s1766_s29 + $0x300] sm:$0xff] }
  0x2e   : > { %277 = vst [vmem:[%s1771_s30 + $0x190] sm:$0xff] %v276_v50  ;;  %v282_v53 = vld [vmem:[%s1766_s29 + $0x308] sm:$0xff]  ;;  %279 = vst [vmem:[%s1771_s30 + $0x198] sm:$0xff] %v278_v51  ;;  %v284_v54 = vld [vmem:[%s1766_s29 + $0x310] sm:$0xff] }
  0x2f   : > { %281 = vst [vmem:[%s1771_s30 + $0x1a0] sm:$0xff] %v280_v52  ;;  %283 = vst [vmem:[%s1771_s30 + $0x1a8] sm:$0xff] %v282_v53  ;;  %v286_v55 = vld [vmem:[%s1766_s29 + $0x318] sm:$0xff]  ;;  %v288_v56 = vld [vmem:[%s1766_s29 + $0x320] sm:$0xff] }
  0x30   : > { %285 = vst [vmem:[%s1771_s30 + $0x1b0] sm:$0xff] %v284_v54  ;;  %287 = vst [vmem:[%s1771_s30 + $0x1b8] sm:$0xff] %v286_v55  ;;  %v290_v57 = vld [vmem:[%s1766_s29 + $0x328] sm:$0xff]  ;;  %v292_v58 = vld [vmem:[%s1766_s29 + $0x330] sm:$0xff] }
  0x31   : > { %289 = vst [vmem:[%s1771_s30 + $0x1c0] sm:$0xff] %v288_v56  ;;  %v294_v59 = vld [vmem:[%s1766_s29 + $0x338] sm:$0xff]  ;;  %291 = vst [vmem:[%s1771_s30 + $0x1c8] sm:$0xff] %v290_v57  ;;  %v296_v60 = vld [vmem:[%s1766_s29 + $0x340] sm:$0xff] }
  0x32   : > { %293 = vst [vmem:[%s1771_s30 + $0x1d0] sm:$0xff] %v292_v58  ;;  %295 = vst [vmem:[%s1771_s30 + $0x1d8] sm:$0xff] %v294_v59  ;;  %v298_v61 = vld [vmem:[%s1766_s29 + $0x348] sm:$0xff]  ;;  %v300_v62 = vld [vmem:[%s1766_s29 + $0x350] sm:$0xff] }
  0x33   : > { %297 = vst [vmem:[%s1771_s30 + $0x1e0] sm:$0xff] %v296_v60  ;;  %299 = vst [vmem:[%s1771_s30 + $0x1e8] sm:$0xff] %v298_v61  ;;  %v302_v63 = vld [vmem:[%s1766_s29 + $0x358] sm:$0xff]  ;;  %v304_v0 = vld [vmem:[%s1766_s29 + $0x360] sm:$0xff] }
  0x34   : > { %301 = vst [vmem:[%s1771_s30 + $0x1f0] sm:$0xff] %v300_v62  ;;  %v306_v1 = vld [vmem:[%s1766_s29 + $0x368] sm:$0xff]  ;;  %303 = vst [vmem:[%s1771_s30 + $0x1f8] sm:$0xff] %v302_v63  ;;  %v308_v2 = vld [vmem:[%s1766_s29 + $0x420] sm:$0xff] }
  0x35   : > { %305 = vst [vmem:[%s1771_s30 + $0x200] sm:$0xff] %v304_v0  ;;  %307 = vst [vmem:[%s1771_s30 + $0x208] sm:$0xff] %v306_v1  ;;  %v310_v3 = vld [vmem:[%s1766_s29 + $0x428] sm:$0xff]  ;;  %v312_v4 = vld [vmem:[%s1766_s29 + $0x430] sm:$0xff] }
  0x36   : > { %309 = vst [vmem:[%s1771_s30 + $0x210] sm:$0xff] %v308_v2  ;;  %311 = vst [vmem:[%s1771_s30 + $0x218] sm:$0xff] %v310_v3  ;;  %v314_v5 = vld [vmem:[%s1766_s29 + $0x438] sm:$0xff]  ;;  %v316_v6 = vld [vmem:[%s1766_s29 + $0x440] sm:$0xff] }
  0x37   : > { %313 = vst [vmem:[%s1771_s30 + $0x220] sm:$0xff] %v312_v4  ;;  %v318_v7 = vld [vmem:[%s1766_s29 + $0x448] sm:$0xff]  ;;  %315 = vst [vmem:[%s1771_s30 + $0x228] sm:$0xff] %v314_v5  ;;  %v320_v8 = vld [vmem:[%s1766_s29 + $0x450] sm:$0xff] }
  0x38   : > { %317 = vst [vmem:[%s1771_s30 + $0x230] sm:$0xff] %v316_v6  ;;  %319 = vst [vmem:[%s1771_s30 + $0x238] sm:$0xff] %v318_v7  ;;  %v322_v9 = vld [vmem:[%s1766_s29 + $0x458] sm:$0xff]  ;;  %v324_v10 = vld [vmem:[%s1766_s29 + $0x460] sm:$0xff] }
  0x39   : > { %321 = vst [vmem:[%s1771_s30 + $0x240] sm:$0xff] %v320_v8  ;;  %323 = vst [vmem:[%s1771_s30 + $0x248] sm:$0xff] %v322_v9  ;;  %v326_v11 = vld [vmem:[%s1766_s29 + $0x468] sm:$0xff]  ;;  %v328_v12 = vld [vmem:[%s1766_s29 + $0x470] sm:$0xff] }
  0x3a   : > { %325 = vst [vmem:[%s1771_s30 + $0x250] sm:$0xff] %v324_v10  ;;  %v330_v13 = vld [vmem:[%s1766_s29 + $0x478] sm:$0xff]  ;;  %327 = vst [vmem:[%s1771_s30 + $0x258] sm:$0xff] %v326_v11  ;;  %v332_v14 = vld [vmem:[%s1766_s29 + $0x480] sm:$0xff] }
  0x3b   : > { %329 = vst [vmem:[%s1771_s30 + $0x260] sm:$0xff] %v328_v12  ;;  %331 = vst [vmem:[%s1771_s30 + $0x268] sm:$0xff] %v330_v13  ;;  %v334_v15 = vld [vmem:[%s1766_s29 + $0x488] sm:$0xff]  ;;  %v336_v16 = vld [vmem:[%s1766_s29 + $0x490] sm:$0xff] }
  0x3c   : > { %333 = vst [vmem:[%s1771_s30 + $0x270] sm:$0xff] %v332_v14  ;;  %335 = vst [vmem:[%s1771_s30 + $0x278] sm:$0xff] %v334_v15  ;;  %v338_v17 = vld [vmem:[%s1766_s29 + $0x498] sm:$0xff]  ;;  %v340_v18 = vld [vmem:[%s1766_s29 + $0x4a0] sm:$0xff] }
  0x3d   : > { %337 = vst [vmem:[%s1771_s30 + $0x280] sm:$0xff] %v336_v16  ;;  %v342_v19 = vld [vmem:[%s1766_s29 + $0x4a8] sm:$0xff]  ;;  %339 = vst [vmem:[%s1771_s30 + $0x288] sm:$0xff] %v338_v17  ;;  %v344_v20 = vld [vmem:[%s1766_s29 + $0x4b0] sm:$0xff] }
  0x3e   : > { %341 = vst [vmem:[%s1771_s30 + $0x290] sm:$0xff] %v340_v18  ;;  %343 = vst [vmem:[%s1771_s30 + $0x298] sm:$0xff] %v342_v19  ;;  %v346_v21 = vld [vmem:[%s1766_s29 + $0x4b8] sm:$0xff]  ;;  %v348_v22 = vld [vmem:[%s1766_s29 + $0x4c0] sm:$0xff] }
  0x3f   : > { %345 = vst [vmem:[%s1771_s30 + $0x2a0] sm:$0xff] %v344_v20  ;;  %347 = vst [vmem:[%s1771_s30 + $0x2a8] sm:$0xff] %v346_v21  ;;  %v350_v23 = vld [vmem:[%s1766_s29 + $0x4c8] sm:$0xff] }
  0x40   : > { %349 = vst [vmem:[%s1771_s30 + $0x2b0] sm:$0xff] %v348_v22  ;;  %351 = vst [vmem:[%s1771_s30 + $0x2b8] sm:$0xff] %v350_v23 }
  0x41 PF: > { %p1499_p5 = scmp.ge.s32.totalorder %s1699_s19, 1  ;;  %p356_p6 = scmp.lt.s32.totalorder %s1699_s19, 3 }
  0x43   : > { %p357_p7 = pnand %p1499_p5, %p356_p6 }
  0x44   : > { %s363_s5 = sand.u32 (!%p357_p7), 1, %s1691_s17   ;;  %vm494_vm0 = vcmask (!%p357_p7), 1042432   ;;  %v1701_v24 = vmov (!%p357_p7), 0.0   ;;  %v484_v25 = vld [vmem:[%s2217_s2] sm:$0xff] (!%p357_p7)  ;;  %v1702_v26 = vmov (!%p357_p7), 0   ;;  %vm1703_vm1 = vmmov (!%p357_p7), 1  }
  0x45   : > { %360 = sbr.rel (%p357_p7) target bundleno = 343 (0x157), region = 55  ;;  %625 = vmatprep.mubr.f32.mxu0 (!%p357_p7), %v1701_v24  ;;  %696 = vmatprep.mubr.f32.mxu1 (!%p357_p7), %v1701_v24  ;;  %vm1954_vm2 = vmpackc.low (!%p357_p7), %vm494_vm0, %vm1703_vm1  ;;  %v1986_v57 = vld [vmem:[%s2216_s1] sm:$0xff] (!%p357_p7)  ;;  %vm490_vm3 = vcmask (!%p357_p7), 220160   ;;  %s1342_s13 = sld [smem:[#allocation2]] (!%p357_p7) }
  0x46   : > { %s1648_s6 = smul.u32 (!%p357_p7), 704, %s363_s5  ;;  %1676 = vset.pattern.permute.xlu0 (!%p357_p7), %v1702_v26 }
  0x47   : > { %487 = vperm.xlu0 (!%p357_p7), %1676, %v484_v25   ;;  %s389_s12 = smul.u32 (!%p357_p7), 22, %s1494_s3 }
  0x48   : > { %s1958_s9 = scalar_lea.vmem (!%p357_p7), [#allocation3], %s1648_s6 }
  0x49   : > { %v397_v28 = vld [vmem:[%s1958_s9 + $0x8] sm:$0xff] (!%p357_p7)  ;;  %v419_v29 = vld [vmem:[%s1958_s9 + $0xb8] sm:$0xff] (!%p357_p7)  ;;  %v396_v30 = vld [vmem:[%s1958_s9] sm:$0xff] (!%p357_p7)  ;;  %p390_p8 = scmp.lt.s32.totalorder (!%p357_p7), %s389_s12, 43 }
  0x4a   : > { %v1537_v31 = vpack.c.bf16 (!%p357_p7), %v419_v29, %v397_v28  ;;  %v418_v32 = vld [vmem:[%s1958_s9 + $0xb0] sm:$0xff] (!%p357_p7)  ;;  %v441_v33 = vld [vmem:[%s1958_s9 + $0x168] sm:$0xff] (!%p357_p7)  ;;  %v463_v34 = vld [vmem:[%s1958_s9 + $0x218] sm:$0x7] (!%p357_p7) }
  0x4b   : > { %v1539_v35 = vpack.c.bf16 (!%p357_p7), %v418_v32, %v396_v30  ;;  %v1541_v36 = vpack.c.bf16 (!%p357_p7), %v463_v34, %v441_v33  ;;  %v440_v37 = vld [vmem:[%s1958_s9 + $0x160] sm:$0xff] (!%p357_p7)  ;;  %v462_v38 = vld [vmem:[%s1958_s9 + $0x210] sm:$0x7] (!%p357_p7)  ;;  %v399_v39 = vld [vmem:[%s1958_s9 + $0x18] sm:$0xff] (!%p357_p7) }
  0x4c   : > { %1538 = vmatprep.subr.bf16.mxu0 %v1537_v31  ;;  %v421_v40 = vld [vmem:[%s1958_s9 + $0xc8] sm:$0xff]  ;;  %v398_v41 = vld [vmem:[%s1958_s9 + $0x10] sm:$0xff]  ;;  %v420_v42 = vld [vmem:[%s1958_s9 + $0xc0] sm:$0xff]  ;;  %v1544_v43 = vpack.c.bf16 %v462_v38, %v440_v37  ;;  %s2226_s12 = smov (!%p390_p8, %s389_s12), 43 }
  0x4d   : > { %1540 = vmatpush1.bf16.msra.mxu0 %v1539_v35  ;;  %v1547_v44 = vpack.c.bf16 %v421_v40, %v399_v39  ;;  %v1549_v45 = vpack.c.bf16 %v420_v42, %v398_v41  ;;  %v401_v46 = vld [vmem:[%s1958_s9 + $0x28] sm:$0xff]  ;;  %v423_v47 = vld [vmem:[%s1958_s9 + $0xd8] sm:$0xff]  ;;  %v400_v51 = vld [vmem:[%s1958_s9 + $0x20] sm:$0xff]  ;;  %s1500_s14 = sshll.u32 %s2226_s12, 3 }
  0x4e   : > { %v443_v48 = vld [vmem:[%s1958_s9 + $0x178] sm:$0xff]  ;;  %1543 = vmatprep.subr.msk.bf16.mxu0 %vm1954_vm2, %v1541_v36  ;;  %v1557_v49 = vpack.c.bf16 %v423_v47, %v401_v46  ;;  %v465_v50 = vld [vmem:[%s1958_s9 + $0x228] sm:$0x7]  ;;  %v422_v52 = vld [vmem:[%s1958_s9 + $0xd0] sm:$0xff]  ;;  %s2139_s17 = scalar_lea.vmem %s2219_s4, %s1500_s14 }
  0x4f   : > { %1548 = vmatprep.subr.bf16.mxu1 %v1547_v44  ;;  %v1551_v53 = vpack.c.bf16 %v465_v50, %v443_v48  ;;  %v442_v54 = vld [vmem:[%s1958_s9 + $0x170] sm:$0xff]  ;;  %v464_v55 = vld [vmem:[%s1958_s9 + $0x220] sm:$0x7]  ;;  %v445_v56 = vld [vmem:[%s1958_s9 + $0x188] sm:$0xff]  ;;  %v1559_v61 = vpack.c.bf16 %v422_v52, %v400_v51 }
  0x50   : > { %1550 = vmatpush1.bf16.msra.mxu1 %v1549_v45  ;;  %v1554_v58 = vpack.c.bf16 %v464_v55, %v442_v54  ;;  %v467_v59 = vld [vmem:[%s1958_s9 + $0x238] sm:$0x7]  ;;  %v444_v60 = vld [vmem:[%s1958_s9 + $0x180] sm:$0xff]  ;;  %v425_v63 = vld [vmem:[%s1958_s9 + $0xe8] sm:$0xff] }
  0x51   : > { %1546 = vmatpush1.bf16.msk.msra.mxu0 %vm1954_vm2, %v1544_v43  ;;  %1553 = vmatprep.subr.msk.bf16.mxu1 %vm1954_vm2, %v1551_v53  ;;  %v403_v62 = vld [vmem:[%s1958_s9 + $0x38] sm:$0xff]  ;;  %v402_v0 = vld [vmem:[%s1958_s9 + $0x30] sm:$0xff]  ;;  %v1561_v1 = vpack.c.bf16 %v467_v59, %v445_v56  ;;  %v424_v4 = vld [vmem:[%s1958_s9 + $0xe0] sm:$0xff] }
  0x52   : > { %1558 = vmatprep.subr.bf16.mxu0 %v1557_v49  ;;  %v466_v2 = vld [vmem:[%s1958_s9 + $0x230] sm:$0x7]  ;;  %v1567_v3 = vpack.c.bf16 %v425_v63, %v403_v62  ;;  %v405_v5 = vld [vmem:[%s1958_s9 + $0x48] sm:$0xff]  ;;  %v427_v6 = vld [vmem:[%s1958_s9 + $0xf8] sm:$0xff]  ;;  %v1569_v9 = vpack.c.bf16 %v424_v4, %v402_v0 }
  0x53   : > { %v447_v7 = vld [vmem:[%s1958_s9 + $0x198] sm:$0xff]  ;;  %v469_v8 = vld [vmem:[%s1958_s9 + $0x248] sm:$0x7]  ;;  %v1564_v10 = vpack.c.bf16 %v466_v2, %v444_v60  ;;  %v404_v12 = vld [vmem:[%s1958_s9 + $0x40] sm:$0xff]  ;;  %v1577_v15 = vpack.c.bf16 %v427_v6, %v405_v5 }
  0x54   : > { %1503 = vmatmul.mubr.msk.f32.vlgmr.msra.gmra.mrb[0].mxu0 %vm490_vm3, %v1986_v57  ;;  %1556 = vmatpush1.bf16.msk.msra.mxu1 %vm1954_vm2, %v1554_v58  ;;  %v1571_v11 = vpack.c.bf16 %v469_v8, %v447_v7  ;;  %v446_v13 = vld [vmem:[%s1958_s9 + $0x190] sm:$0xff]  ;;  %v468_v14 = vld [vmem:[%s1958_s9 + $0x240] sm:$0x7]  ;;  %v407_v17 = vld [vmem:[%s1958_s9 + $0x58] sm:$0xff] }
  0x55   : > { %1560 = vmatpush1.bf16.msra.mxu0 %v1559_v61  ;;  %1568 = vmatprep.subr.bf16.mxu1 %v1567_v3  ;;  %v426_v16 = vld [vmem:[%s1958_s9 + $0xf0] sm:$0xff]  ;;  %v429_v18 = vld [vmem:[%s1958_s9 + $0x108] sm:$0xff]  ;;  %v471_v20 = vld [vmem:[%s1958_s9 + $0x258] sm:$0x7]  ;;  %v1574_v21 = vpack.c.bf16 %v468_v14, %v446_v13 }
  0x56   : > { %1563 = vmatprep.subr.msk.bf16.mxu0 %vm1954_vm2, %v1561_v1  ;;  %767 = vmatprep.mubr.f32.mxu0 %v1701_v24  ;;  %v449_v19 = vld [vmem:[%s1958_s9 + $0x1a8] sm:$0xff]  ;;  %v1579_v22 = vpack.c.bf16 %v426_v16, %v404_v12  ;;  %v448_v23 = vld [vmem:[%s1958_s9 + $0x1a0] sm:$0xff]  ;;  %v1587_v25 = vpack.c.bf16 %v429_v18, %v407_v17  ;;  %v406_v26 = vld [vmem:[%s1958_s9 + $0x50] sm:$0xff] }
  0x57   : > { %1506 = vmatmul.mubr.msk.f32.vlgmr.msra.gmra.mrb[0].mxu1 %vm490_vm3, %v1986_v57  ;;  %v428_v28 = vld [vmem:[%s1958_s9 + $0x100] sm:$0xff]  ;;  %v1581_v29 = vpack.c.bf16 %v471_v20, %v449_v19  ;;  %v470_v30 = vld [vmem:[%s1958_s9 + $0x250] sm:$0x7]  ;;  %v451_v31 = vld [vmem:[%s1958_s9 + $0x1b8] sm:$0xff] }
  0x58   : > { %1570 = vmatpush1.bf16.msra.mxu1 %v1569_v9  ;;  %838 = vmatprep.mubr.f32.mxu1 %v1701_v24  ;;  %v473_v32 = vld [vmem:[%s1958_s9 + $0x268] sm:$0x7]  ;;  %v431_v34 = vld [vmem:[%s1958_s9 + $0x118] sm:$0xff]  ;;  %v1589_v35 = vpack.c.bf16 %v428_v28, %v406_v26  ;;  %v1584_v36 = vpack.c.bf16 %v470_v30, %v448_v23  ;;  %v408_v38 = vld [vmem:[%s1958_s9 + $0x60] sm:$0xff] }
  0x59   : > { %1566 = vmatpush1.bf16.msk.msra.mxu0 %vm1954_vm2, %v1564_v10  ;;  %1573 = vmatprep.subr.msk.bf16.mxu1 %vm1954_vm2, %v1571_v11  ;;  %v409_v33 = vld [vmem:[%s1958_s9 + $0x68] sm:$0xff]  ;;  %v1591_v37 = vpack.c.bf16 %v473_v32, %v451_v31  ;;  %v450_v39 = vld [vmem:[%s1958_s9 + $0x1b0] sm:$0xff]  ;;  %v472_v40 = vld [vmem:[%s1958_s9 + $0x260] sm:$0x7] }
  0x5a   : > { %1578 = vmatprep.subr.bf16.mxu0 %v1577_v15  ;;  %v1597_v41 = vpack.c.bf16 %v431_v34, %v409_v33  ;;  %v430_v42 = vld [vmem:[%s1958_s9 + $0x110] sm:$0xff]  ;;  %v411_v43 = vld [vmem:[%s1958_s9 + $0x78] sm:$0xff]  ;;  %v433_v44 = vld [vmem:[%s1958_s9 + $0x128] sm:$0xff]  ;;  %v1594_v47 = vpack.c.bf16 %v472_v40, %v450_v39  ;;  %v2132_v39 = vstv %s1342_s13 }
  0x5b   : > { %v453_v45 = vld [vmem:[%s1958_s9 + $0x1c8] sm:$0xff]  ;;  %v475_v46 = vld [vmem:[%s1958_s9 + $0x278] sm:$0x7]  ;;  %v1599_v48 = vpack.c.bf16 %v430_v42, %v408_v38  ;;  %v452_v49 = vld [vmem:[%s1958_s9 + $0x1c0] sm:$0xff]  ;;  %v1607_v50 = vpack.c.bf16 %v433_v44, %v411_v43 }
  0x5c   : > { %1509 = vmatmul.mubr.msk.f32.vlgmr.msra.gmra.mrb[2].mxu0 %vm490_vm3, %v1986_v57  ;;  %1576 = vmatpush1.bf16.msk.msra.mxu1 %vm1954_vm2, %v1574_v21  ;;  %v410_v51 = vld [vmem:[%s1958_s9 + $0x70] sm:$0xff]  ;;  %v432_v52 = vld [vmem:[%s1958_s9 + $0x120] sm:$0xff]  ;;  %v1601_v53 = vpack.c.bf16 %v475_v46, %v453_v45  ;;  %v455_v55 = vld [vmem:[%s1958_s9 + $0x1d8] sm:$0xff] }
  0x5d   : > { %1580 = vmatpush1.bf16.msra.mxu0 %v1579_v22  ;;  %1588 = vmatprep.subr.bf16.mxu1 %v1587_v25  ;;  %v474_v54 = vld [vmem:[%s1958_s9 + $0x270] sm:$0x7]  ;;  %v477_v56 = vld [vmem:[%s1958_s9 + $0x288] sm:$0x7]  ;;  %v435_v59 = vld [vmem:[%s1958_s9 + $0x138] sm:$0xff]  ;;  %v1609_v60 = vpack.c.bf16 %v432_v52, %v410_v51 }
  0x5e   : > { %1583 = vmatprep.subr.msk.bf16.mxu0 %vm1954_vm2, %v1581_v29  ;;  %909 = vmatprep.mubr.f32.mxu0 %v1701_v24  ;;  %v413_v58 = vld [vmem:[%s1958_s9 + $0x88] sm:$0xff]  ;;  %v1604_v61 = vpack.c.bf16 %v474_v54, %v452_v49  ;;  %v1611_v62 = vpack.c.bf16 %v477_v56, %v455_v55  ;;  %v412_v63 = vld [vmem:[%s1958_s9 + $0x80] sm:$0xff]  ;;  %v454_v0 = vld [vmem:[%s1958_s9 + $0x1d0] sm:$0xff] }
  0x5f   : > { %1512 = vmatmul.mubr.msk.f32.vlgmr.msra.gmra.mrb[2].mxu1 %vm490_vm3, %v1986_v57  ;;  %v476_v1 = vld [vmem:[%s1958_s9 + $0x280] sm:$0x7]  ;;  %v1617_v2 = vpack.c.bf16 %v435_v59, %v413_v58  ;;  %v434_v3 = vld [vmem:[%s1958_s9 + $0x130] sm:$0xff]  ;;  %v415_v4 = vld [vmem:[%s1958_s9 + $0x98] sm:$0xff] }
  0x60   : > { %1590 = vmatpush1.bf16.msra.mxu1 %v1589_v35  ;;  %980 = vmatprep.mubr.f32.mxu1 %v1701_v24  ;;  %v437_v5 = vld [vmem:[%s1958_s9 + $0x148] sm:$0xff]  ;;  %v479_v7 = vld [vmem:[%s1958_s9 + $0x298] sm:$0x7]  ;;  %v1614_v8 = vpack.c.bf16 %v476_v1, %v454_v0  ;;  %v1619_v9 = vpack.c.bf16 %v434_v3, %v412_v63  ;;  %v456_v10 = vld [vmem:[%s1958_s9 + $0x1e0] sm:$0xff] }
  0x61   : > { %1586 = vmatpush1.bf16.msk.msra.mxu0 %vm1954_vm2, %v1584_v36  ;;  %1593 = vmatprep.subr.msk.bf16.mxu1 %vm1954_vm2, %v1591_v37  ;;  %v457_v6 = vld [vmem:[%s1958_s9 + $0x1e8] sm:$0xff]  ;;  %v1627_v11 = vpack.c.bf16 %v437_v5, %v415_v4  ;;  %v414_v12 = vld [vmem:[%s1958_s9 + $0x90] sm:$0xff]  ;;  %v436_v13 = vld [vmem:[%s1958_s9 + $0x140] sm:$0xff] }
  0x62   : > { %1598 = vmatprep.subr.bf16.mxu0 %v1597_v41  ;;  %v1621_v14 = vpack.c.bf16 %v479_v7, %v457_v6  ;;  %v478_v15 = vld [vmem:[%s1958_s9 + $0x290] sm:$0x7]  ;;  %v459_v16 = vld [vmem:[%s1958_s9 + $0x1f8] sm:$0xff]  ;;  %v481_v17 = vld [vmem:[%s1958_s9 + $0x2a8] sm:$0x7]  ;;  %v1629_v20 = vpack.c.bf16 %v436_v13, %v414_v12 }
  0x63   : > { %v417_v18 = vld [vmem:[%s1958_s9 + $0xa8] sm:$0xff]  ;;  %v439_v19 = vld [vmem:[%s1958_s9 + $0x158] sm:$0xff]  ;;  %v1624_v21 = vpack.c.bf16 %v478_v15, %v456_v10  ;;  %v1631_v22 = vpack.c.bf16 %v481_v17, %v459_v16  ;;  %v458_v23 = vld [vmem:[%s1958_s9 + $0x1f0] sm:$0xff] }
  0x64   : > { %1515 = vmatmul.mubr.msk.f32.vlgmr.msra.gmra.mrb[4].mxu0 %vm490_vm3, %v1986_v57  ;;  %1596 = vmatpush1.bf16.msk.msra.mxu1 %vm1954_vm2, %v1594_v47  ;;  %v480_v25 = vld [vmem:[%s1958_s9 + $0x2a0] sm:$0x7]  ;;  %v1637_v26 = vpack.c.bf16 %v439_v19, %v417_v18  ;;  %v438_v29 = vld [vmem:[%s1958_s9 + $0x150] sm:$0xff]  ;;  %v461_v30 = vld [vmem:[%s1958_s9 + $0x208] sm:$0xff] }
  0x65   : > { %1600 = vmatpush1.bf16.msra.mxu0 %v1599_v48  ;;  %1608 = vmatprep.subr.bf16.mxu1 %v1607_v50  ;;  %v416_v28 = vld [vmem:[%s1958_s9 + $0xa0] sm:$0xff]  ;;  %v483_v31 = vld [vmem:[%s1958_s9 + $0x2b8] sm:$0x7]  ;;  %v1634_v32 = vpack.c.bf16 %v480_v25, %v458_v23  ;;  %v482_v36 = vld [vmem:[%s1958_s9 + $0x2b0] sm:$0x7] }
  0x66   : > { %1603 = vmatprep.subr.msk.bf16.mxu0 %vm1954_vm2, %v1601_v53  ;;  %1051 = vmatprep.mubr.f32.mxu0 %v1701_v24  ;;  %v1639_v33 = vpack.c.bf16 %v438_v29, %v416_v28  ;;  %v1641_v34 = vpack.c.bf16 %v483_v31, %v461_v30  ;;  %v460_v35 = vld [vmem:[%s1958_s9 + $0x200] sm:$0xff] }
  0x67   : > { %1518 = vmatmul.mubr.msk.f32.vlgmr.msra.gmra.mrb[4].mxu1 %vm490_vm3, %v1986_v57  ;;  %v1644_v37 = vpack.c.bf16 %v482_v36, %v460_v35 }
  0x68   : > { %1610 = vmatpush1.bf16.msra.mxu1 %v1609_v60  ;;  %1122 = vmatprep.mubr.f32.mxu1 %v1701_v24 }
  0x69   : > { %1606 = vmatpush1.bf16.msk.msra.mxu0 %vm1954_vm2, %v1604_v61  ;;  %1613 = vmatprep.subr.msk.bf16.mxu1 %vm1954_vm2, %v1611_v62 }
  0x6a   : > { %1618 = vmatprep.subr.bf16.mxu0 %v1617_v2 }
  0x6c   : > { %1521 = vmatmul.mubr.msk.f32.vlgmr.msra.gmra.mrb[6].mxu0 %vm490_vm3, %v1986_v57  ;;  %1616 = vmatpush1.bf16.msk.msra.mxu1 %vm1954_vm2, %v1614_v8 }
  0x6d   : > { %1620 = vmatpush1.bf16.msra.mxu0 %v1619_v9  ;;  %1628 = vmatprep.subr.bf16.mxu1 %v1627_v11 }
  0x6e   : > { %1623 = vmatprep.subr.msk.bf16.mxu0 %vm1954_vm2, %v1621_v14  ;;  %1193 = vmatprep.mubr.f32.mxu0 %v1701_v24 }
  0x6f   : > { %1524 = vmatmul.mubr.msk.f32.vlgmr.msra.gmra.mrb[6].mxu1 %vm490_vm3, %v1986_v57 }
  0x70   : > { %1630 = vmatpush1.bf16.msra.mxu1 %v1629_v20  ;;  %1264 = vmatprep.mubr.f32.mxu1 %v1701_v24 }
  0x71   : > { %1626 = vmatpush1.bf16.msk.msra.mxu0 %vm1954_vm2, %v1624_v21  ;;  %1633 = vmatprep.subr.msk.bf16.mxu1 %vm1954_vm2, %v1631_v22 }
  0x72   : > { %1638 = vmatprep.subr.bf16.mxu0 %v1637_v26 }
  0x74   : > { %1527 = vmatmul.mubr.msk.f32.vlgmr.msra.gmra.mrb[8].mxu0 %vm490_vm3, %v1986_v57  ;;  %1636 = vmatpush1.bf16.msk.msra.mxu1 %vm1954_vm2, %v1634_v32 }
  0x75   : > { %1640 = vmatpush1.bf16.msra.mxu0 %v1639_v33  ;;  %1335 = vmatprep.mubr.f32.mxu0 %v1701_v24 }
  0x76   : > { %1643 = vmatprep.subr.msk.bf16.mxu0 %vm1954_vm2, %v1641_v34 }
  0x77   : > { %1530 = vmatmul.mubr.msk.f32.vlgmr.msra.gmra.mrb[8].mxu1 %vm490_vm3, %v1986_v57 }
  0x79   : > { %1646 = vmatpush1.bf16.msk.msra.mxu0 %vm1954_vm2, %v1644_v37 }
  0x7c   : > { %1533 = vmatmul.mubr.msk.f32.vlgmr.msra.gmra.mrb[10].mxu0 %vm490_vm3, %v1986_v57 }
  0xc6   : > { %v2130_v38 = vpop.permute.xlu0 %487 }
 0x127   : > { %v627_v24 = vpop.f32.mrb[0].mxu0 }
 0x128   : > { %v628_v40 = vadd.f32 %v627_v24, %v2130_v38  ;;  %v629_v41 = vpop.f32.mrb[1].mxu0 }
 0x129   : > { %v630_v27 = vadd.f32 %v629_v41, %v2130_v38 }
 0x12a   : > { %vm1343_vm4 = vcmp.ge.f32.partialorder %v628_v40, 0.0  ;;  %v1366_v57 = vmul.f32 %v2132_v39, %v628_v40  ;;  %v698_v42 = vpop.f32.mrb[0].mxu1 }
 0x12b   : > { %vm1344_vm5 = vcmp.ge.f32.partialorder %v630_v27, 0.0  ;;  %v1367_v43 = vmul.f32 %v2132_v39, %v630_v27  ;;  %v699_v44 = vadd.f32 %v698_v42, %v2130_v38  ;;  %v700_v45 = vpop.f32.mrb[1].mxu1 }
 0x12c   : > { %v1388_v46 = vsel %vm1343_vm4, %v628_v40, %v1366_v57  ;;  %v701_v47 = vadd.f32 %v700_v45, %v2130_v38 }
 0x12d   : > { %1410 = vst [vmem:[%s2139_s17] sm:$0xff] %v1388_v46  ;;  %v1389_v48 = vsel %vm1344_vm5, %v630_v27, %v1367_v43  ;;  %vm1345_vm6 = vcmp.ge.f32.partialorder %v699_v44, 0.0  ;;  %v1368_v49 = vmul.f32 %v2132_v39, %v699_v44 }
 0x12e   : > { %1411 = vst [vmem:[%s2139_s17 + $0x8] sm:$0xff] %v1389_v48  ;;  %vm1346_vm7 = vcmp.ge.f32.partialorder %v701_v47, 0.0  ;;  %v1369_v50 = vmul.f32 %v2132_v39, %v701_v47 }
 0x12f   : > { %v1390_v51 = vsel %vm1345_vm6, %v699_v44, %v1368_v49  ;;  %v769_v52 = vpop.f32.mrb[2].mxu0 }
 0x130   : > { %1412 = vst [vmem:[%s2139_s17 + $0x10] sm:$0xff] %v1390_v51  ;;  %v1391_v53 = vsel %vm1346_vm7, %v701_v47, %v1369_v50  ;;  %v770_v54 = vadd.f32 %v769_v52, %v2130_v38  ;;  %v771_v55 = vpop.f32.mrb[3].mxu0 }
 0x131   : > { %1413 = vst [vmem:[%s2139_s17 + $0x18] sm:$0xff] %v1391_v53  ;;  %v772_v56 = vadd.f32 %v771_v55, %v2130_v38 }
 0x132   : > { %vm1347_vm8 = vcmp.ge.f32.partialorder %v770_v54, 0.0  ;;  %v1370_v58 = vmul.f32 %v2132_v39, %v770_v54  ;;  %v840_v59 = vpop.f32.mrb[2].mxu1 }
 0x133   : > { %vm1348_vm9 = vcmp.ge.f32.partialorder %v772_v56, 0.0  ;;  %v1371_v60 = vmul.f32 %v2132_v39, %v772_v56  ;;  %v841_v61 = vadd.f32 %v840_v59, %v2130_v38  ;;  %v842_v62 = vpop.f32.mrb[3].mxu1 }
 0x134   : > { %v1392_v63 = vsel %vm1347_vm8, %v770_v54, %v1370_v58  ;;  %v843_v0 = vadd.f32 %v842_v62, %v2130_v38 }
 0x135   : > { %1414 = vst [vmem:[%s2139_s17 + $0x20] sm:$0xff] %v1392_v63  ;;  %v1393_v1 = vsel %vm1348_vm9, %v772_v56, %v1371_v60  ;;  %vm1349_vm10 = vcmp.ge.f32.partialorder %v841_v61, 0.0  ;;  %v1372_v2 = vmul.f32 %v2132_v39, %v841_v61 }
 0x136   : > { %1415 = vst [vmem:[%s2139_s17 + $0x28] sm:$0xff] %v1393_v1  ;;  %vm1350_vm11 = vcmp.ge.f32.partialorder %v843_v0, 0.0  ;;  %v1373_v3 = vmul.f32 %v2132_v39, %v843_v0 }
 0x137   : > { %v1394_v4 = vsel %vm1349_vm10, %v841_v61, %v1372_v2  ;;  %v911_v5 = vpop.f32.mrb[4].mxu0 }
 0x138   : > { %1416 = vst [vmem:[%s2139_s17 + $0x30] sm:$0xff] %v1394_v4  ;;  %v1395_v6 = vsel %vm1350_vm11, %v843_v0, %v1373_v3  ;;  %v912_v7 = vadd.f32 %v911_v5, %v2130_v38  ;;  %v913_v8 = vpop.f32.mrb[5].mxu0 }
 0x139   : > { %1417 = vst [vmem:[%s2139_s17 + $0x38] sm:$0xff] %v1395_v6  ;;  %v914_v9 = vadd.f32 %v913_v8, %v2130_v38 }
 0x13a   : > { %vm1351_vm12 = vcmp.ge.f32.partialorder %v912_v7, 0.0  ;;  %v1374_v10 = vmul.f32 %v2132_v39, %v912_v7  ;;  %v982_v11 = vpop.f32.mrb[4].mxu1 }
 0x13b   : > { %vm1352_vm13 = vcmp.ge.f32.partialorder %v914_v9, 0.0  ;;  %v1375_v12 = vmul.f32 %v2132_v39, %v914_v9  ;;  %v983_v13 = vadd.f32 %v982_v11, %v2130_v38  ;;  %v984_v14 = vpop.f32.mrb[5].mxu1 }
 0x13c   : > { %v1396_v15 = vsel %vm1351_vm12, %v912_v7, %v1374_v10  ;;  %v985_v16 = vadd.f32 %v984_v14, %v2130_v38 }
 0x13d   : > { %1418 = vst [vmem:[%s2139_s17 + $0x40] sm:$0xff] %v1396_v15  ;;  %v1397_v17 = vsel %vm1352_vm13, %v914_v9, %v1375_v12  ;;  %vm1353_vm14 = vcmp.ge.f32.partialorder %v983_v13, 0.0  ;;  %v1376_v18 = vmul.f32 %v2132_v39, %v983_v13 }
 0x13e   : > { %1419 = vst [vmem:[%s2139_s17 + $0x48] sm:$0xff] %v1397_v17  ;;  %vm1354_vm15 = vcmp.ge.f32.partialorder %v985_v16, 0.0  ;;  %v1377_v19 = vmul.f32 %v2132_v39, %v985_v16 }
 0x13f   : > { %v1398_v20 = vsel %vm1353_vm14, %v983_v13, %v1376_v18  ;;  %v1053_v21 = vpop.f32.mrb[6].mxu0 }
 0x140   : > { %1420 = vst [vmem:[%s2139_s17 + $0x50] sm:$0xff] %v1398_v20  ;;  %v1399_v22 = vsel %vm1354_vm15, %v985_v16, %v1377_v19  ;;  %v1054_v23 = vadd.f32 %v1053_v21, %v2130_v38  ;;  %v1055_v25 = vpop.f32.mrb[7].mxu0 }
 0x141   : > { %1421 = vst [vmem:[%s2139_s17 + $0x58] sm:$0xff] %v1399_v22  ;;  %v1056_v26 = vadd.f32 %v1055_v25, %v2130_v38 }
 0x142   : > { %vm1355_vm0 = vcmp.ge.f32.partialorder %v1054_v23, 0.0  ;;  %v1378_v28 = vmul.f32 %v2132_v39, %v1054_v23  ;;  %v1124_v29 = vpop.f32.mrb[6].mxu1 }
 0x143   : > { %vm1356_vm1 = vcmp.ge.f32.partialorder %v1056_v26, 0.0  ;;  %v1379_v30 = vmul.f32 %v2132_v39, %v1056_v26  ;;  %v1125_v31 = vadd.f32 %v1124_v29, %v2130_v38  ;;  %v1126_v32 = vpop.f32.mrb[7].mxu1 }
 0x144   : > { %v1400_v33 = vsel %vm1355_vm0, %v1054_v23, %v1378_v28  ;;  %v1127_v34 = vadd.f32 %v1126_v32, %v2130_v38 }
 0x145   : > { %1422 = vst [vmem:[%s2139_s17 + $0x60] sm:$0xff] %v1400_v33  ;;  %v1401_v35 = vsel %vm1356_vm1, %v1056_v26, %v1379_v30  ;;  %vm1357_vm2 = vcmp.ge.f32.partialorder %v1125_v31, 0.0  ;;  %v1380_v36 = vmul.f32 %v2132_v39, %v1125_v31 }
 0x146   : > { %1423 = vst [vmem:[%s2139_s17 + $0x68] sm:$0xff] %v1401_v35  ;;  %vm1358_vm3 = vcmp.ge.f32.partialorder %v1127_v34, 0.0  ;;  %v1381_v37 = vmul.f32 %v2132_v39, %v1127_v34 }
 0x147   : > { %v1402_v24 = vsel %vm1357_vm2, %v1125_v31, %v1380_v36  ;;  %v1195_v40 = vpop.f32.mrb[8].mxu0 }
 0x148   : > { %1424 = vst [vmem:[%s2139_s17 + $0x70] sm:$0xff] %v1402_v24  ;;  %v1403_v41 = vsel %vm1358_vm3, %v1127_v34, %v1381_v37  ;;  %v1196_v27 = vadd.f32 %v1195_v40, %v2130_v38  ;;  %v1197_v57 = vpop.f32.mrb[9].mxu0 }
 0x149   : > { %1425 = vst [vmem:[%s2139_s17 + $0x78] sm:$0xff] %v1403_v41  ;;  %v1198_v42 = vadd.f32 %v1197_v57, %v2130_v38 }
 0x14a   : > { %vm1359_vm4 = vcmp.ge.f32.partialorder %v1196_v27, 0.0  ;;  %v1382_v43 = vmul.f32 %v2132_v39, %v1196_v27  ;;  %v1266_v44 = vpop.f32.mrb[8].mxu1 }
 0x14b   : > { %vm1360_vm5 = vcmp.ge.f32.partialorder %v1198_v42, 0.0  ;;  %v1383_v45 = vmul.f32 %v2132_v39, %v1198_v42  ;;  %v1267_v46 = vadd.f32 %v1266_v44, %v2130_v38  ;;  %v1268_v47 = vpop.f32.mrb[9].mxu1 }
 0x14c   : > { %v1404_v48 = vsel %vm1359_vm4, %v1196_v27, %v1382_v43  ;;  %v1269_v49 = vadd.f32 %v1268_v47, %v2130_v38 }
 0x14d   : > { %1426 = vst [vmem:[%s2139_s17 + $0x80] sm:$0xff] %v1404_v48  ;;  %v1405_v50 = vsel %vm1360_vm5, %v1198_v42, %v1383_v45  ;;  %vm1361_vm6 = vcmp.ge.f32.partialorder %v1267_v46, 0.0  ;;  %v1384_v51 = vmul.f32 %v2132_v39, %v1267_v46 }
 0x14e   : > { %1427 = vst [vmem:[%s2139_s17 + $0x88] sm:$0xff] %v1405_v50  ;;  %vm1362_vm7 = vcmp.ge.f32.partialorder %v1269_v49, 0.0  ;;  %v1385_v52 = vmul.f32 %v2132_v39, %v1269_v49 }
 0x14f   : > { %v1406_v53 = vsel %vm1361_vm6, %v1267_v46, %v1384_v51  ;;  %v1337_v54 = vpop.f32.mrb[10].mxu0 }
 0x150   : > { %1428 = vst [vmem:[%s2139_s17 + $0x90] sm:$0xff] %v1406_v53  ;;  %v1407_v55 = vsel %vm1362_vm7, %v1269_v49, %v1385_v52  ;;  %v1338_v56 = vadd.f32 %v1337_v54, %v2130_v38  ;;  %v1339_v58 = vpop.f32.mrb[11].mxu0 }
 0x151   : > { %1429 = vst [vmem:[%s2139_s17 + $0x98] sm:$0xff] %v1407_v55  ;;  %v1340_v59 = vadd.f32 %v1339_v58, %v2130_v38 }
 0x152   : > { %vm1363_vm8 = vcmp.ge.f32.partialorder %v1338_v56, 0.0  ;;  %v1386_v60 = vmul.f32 %v2132_v39, %v1338_v56 }
 0x153   : > { %vm1364_vm9 = vcmp.ge.f32.partialorder %v1340_v59, 0.0  ;;  %v1387_v61 = vmul.f32 %v2132_v39, %v1340_v59 }
 0x154   : > { %v1408_v62 = vsel %vm1363_vm8, %v1338_v56, %v1386_v60 }
 0x155   : > { %1430 = vst [vmem:[%s2139_s17 + $0xa0] sm:$0xff] %v1408_v62  ;;  %v1409_v63 = vsel %vm1364_vm9, %v1340_v59, %v1387_v61 }
 0x156   : > { %1431 = vst [vmem:[%s2139_s17 + $0xa8] sm:$0xff] %v1409_v63 }
 0x157 PF: > { %p12_p9 = scmp.ge.s32.totalorder %s1749_s20, 4   ;;  %s2222_s17 = smov %s1695_s18 }
 0x158   : > { %s2223_s18 = smov %s1758_s23  ;;  %s2224_s19 = smov %s1749_s20 }
 0x159   :  { %14 = sbr.rel (!%p12_p9) target bundleno = 4 (0x4), region = 94 }

// kernel: voxel_encoder3_forward.4
= control target key start
LH: loop header
LB: loop body
LE: loop exit
PB: predicated region body
PF: predicated region fallthrough
CT: control target
= control target key end

     0   :  { %v1952_v0 = vmov 0.0|0.0   ;;  %vm406_vm0 = vcmask 850944   ;;  %vm1501_vm2 = vcmask 130048   ;;  %s3417_s1 = inlined_call_operand.vmem [shape: f32[1000,16], index: 1, kind: input, shape index: {}]   ;;  %s3418_s0 = inlined_call_operand.vmem [shape: f32[250,1000], index: 0, kind: input, shape index: {}]   ;;  %s3419_s2 = inlined_call_operand.vmem [shape: f32[1,16], index: 2, kind: input, shape index: {}]   ;;  %s3420_s3 = inlined_call_operand.<no memory space> [shape: f32[1], index: 3, kind: input, shape index: {}]   ;;  %s3421_s4 = inlined_call_operand.vmem [shape: f32[250,16], index: 4, kind: output, shape index: {}]  }
   0x1   :  { %1572 = vmatprep.subr.bf16.mxu1 %v1952_v0  ;;  %1668 = vmatprep.subr.bf16.mxu0 %v1952_v0  ;;  %v274_v1 = vld [vmem:[%s3417_s1] sm:$0xff]  ;;  %v275_v2 = vld [vmem:[%s3417_s1 + $0x8] sm:$0xff]  ;;  %v276_v6 = vld [vmem:[%s3417_s1 + $0x10] sm:$0xff] }
   0x2   :  { %v338_v3 = vld [vmem:[%s3417_s1 + $0x200] sm:$0xff]  ;;  %v1573_v4 = vpack.c.bf16 %v275_v2, %v274_v1  ;;  %v339_v5 = vld [vmem:[%s3417_s1 + $0x208] sm:$0xff]  ;;  %v277_v7 = vld [vmem:[%s3417_s1 + $0x18] sm:$0xff] }
   0x3   :  { %v1669_v8 = vpack.c.bf16 %v339_v5, %v338_v3  ;;  %v340_v9 = vld [vmem:[%s3417_s1 + $0x210] sm:$0xff]  ;;  %v341_v10 = vld [vmem:[%s3417_s1 + $0x218] sm:$0xff]  ;;  %v1576_v11 = vpack.c.bf16 %v277_v7, %v276_v6  ;;  %v278_v13 = vld [vmem:[%s3417_s1 + $0x20] sm:$0xff] }
   0x4   :  { %1574 = vmatpush1.bf16.msra.mxu1 %v1573_v4  ;;  %v1672_v12 = vpack.c.bf16 %v341_v10, %v340_v9  ;;  %v279_v14 = vld [vmem:[%s3417_s1 + $0x28] sm:$0xff]  ;;  %v342_v15 = vld [vmem:[%s3417_s1 + $0x220] sm:$0xff]  ;;  %v280_v19 = vld [vmem:[%s3417_s1 + $0x30] sm:$0xff] }
   0x5   :  { %1670 = vmatpush1.bf16.msra.mxu0 %v1669_v8  ;;  %1575 = vmatprep.subr.bf16.mxu1 %v1952_v0  ;;  %v343_v16 = vld [vmem:[%s3417_s1 + $0x228] sm:$0xff]  ;;  %v1579_v17 = vpack.c.bf16 %v279_v14, %v278_v13  ;;  %v281_v20 = vld [vmem:[%s3417_s1 + $0x38] sm:$0xff]  ;;  %v344_v21 = vld [vmem:[%s3417_s1 + $0x230] sm:$0xff] }
   0x6   :  { %1671 = vmatprep.subr.bf16.mxu0 %v1952_v0  ;;  %v1675_v18 = vpack.c.bf16 %v343_v16, %v342_v15  ;;  %v345_v22 = vld [vmem:[%s3417_s1 + $0x238] sm:$0xff]  ;;  %v1582_v23 = vpack.c.bf16 %v281_v20, %v280_v19  ;;  %v282_v25 = vld [vmem:[%s3417_s1 + $0x40] sm:$0xff]  ;;  %v283_v26 = vld [vmem:[%s3417_s1 + $0x48] sm:$0xff] }
   0x7   :  { %v1678_v24 = vpack.c.bf16 %v345_v22, %v344_v21  ;;  %v346_v27 = vld [vmem:[%s3417_s1 + $0x240] sm:$0xff]  ;;  %v347_v28 = vld [vmem:[%s3417_s1 + $0x248] sm:$0xff]  ;;  %v1585_v29 = vpack.c.bf16 %v283_v26, %v282_v25  ;;  %v284_v31 = vld [vmem:[%s3417_s1 + $0x50] sm:$0xff] }
   0x8   :  { %1577 = vmatpush1.bf16.msra.mxu1 %v1576_v11  ;;  %v1681_v30 = vpack.c.bf16 %v347_v28, %v346_v27  ;;  %v285_v32 = vld [vmem:[%s3417_s1 + $0x58] sm:$0xff]  ;;  %v348_v33 = vld [vmem:[%s3417_s1 + $0x250] sm:$0xff]  ;;  %v286_v37 = vld [vmem:[%s3417_s1 + $0x60] sm:$0xff] }
   0x9   :  { %1673 = vmatpush1.bf16.msra.mxu0 %v1672_v12  ;;  %1578 = vmatprep.subr.bf16.mxu1 %v1952_v0  ;;  %v349_v34 = vld [vmem:[%s3417_s1 + $0x258] sm:$0xff]  ;;  %v1588_v35 = vpack.c.bf16 %v285_v32, %v284_v31  ;;  %v287_v38 = vld [vmem:[%s3417_s1 + $0x68] sm:$0xff]  ;;  %v350_v39 = vld [vmem:[%s3417_s1 + $0x260] sm:$0xff] }
   0xa   :  { %1674 = vmatprep.subr.bf16.mxu0 %v1952_v0  ;;  %v1684_v36 = vpack.c.bf16 %v349_v34, %v348_v33  ;;  %v351_v40 = vld [vmem:[%s3417_s1 + $0x268] sm:$0xff]  ;;  %v1591_v43 = vpack.c.bf16 %v287_v38, %v286_v37  ;;  %v288_v45 = vld [vmem:[%s3417_s1 + $0x70] sm:$0xff]  ;;  %v289_v46 = vld [vmem:[%s3417_s1 + $0x78] sm:$0xff] }
   0xb   :  { %v19_v41 = vld [vmem:[%s3418_s0 + $0x8] sm:$0xff]  ;;  %v1687_v44 = vpack.c.bf16 %v351_v40, %v350_v39  ;;  %v352_v47 = vld [vmem:[%s3417_s1 + $0x270] sm:$0xff]  ;;  %v353_v48 = vld [vmem:[%s3417_s1 + $0x278] sm:$0xff]  ;;  %v1594_v49 = vpack.c.bf16 %v289_v46, %v288_v45 }
   0xc   :  { %1580 = vmatpush1.bf16.msra.mxu1 %v1579_v17  ;;  %v23_v42 = vld [vmem:[%s3418_s0 + $0x28] sm:$0xff]  ;;  %567 = vmatprep.mubr.f32.mxu1 %v19_v41  ;;  %v1690_v50 = vpack.c.bf16 %v353_v48, %v352_v47  ;;  %v290_v51 = vld [vmem:[%s3417_s1 + $0x80] sm:$0xff]  ;;  %v292_v57 = vld [vmem:[%s3417_s1 + $0x90] sm:$0xff] }
   0xd   :  { %1676 = vmatpush1.bf16.msra.mxu0 %v1675_v18  ;;  %1581 = vmatprep.subr.bf16.mxu1 %v1952_v0  ;;  %v291_v52 = vld [vmem:[%s3417_s1 + $0x88] sm:$0xff]  ;;  %v354_v53 = vld [vmem:[%s3417_s1 + $0x280] sm:$0xff]  ;;  %v293_v58 = vld [vmem:[%s3417_s1 + $0x98] sm:$0xff] }
   0xe   :  { %1677 = vmatprep.subr.bf16.mxu0 %v1952_v0  ;;  %1017 = vmatprep.mubr.f32.mxu0 %v23_v42  ;;  %v355_v54 = vld [vmem:[%s3417_s1 + $0x288] sm:$0xff]  ;;  %v1597_v55 = vpack.c.bf16 %v291_v52, %v290_v51  ;;  %v356_v59 = vld [vmem:[%s3417_s1 + $0x290] sm:$0xff]  ;;  %v357_v60 = vld [vmem:[%s3417_s1 + $0x298] sm:$0xff]  ;;  %v1600_v61 = vpack.c.bf16 %v293_v58, %v292_v57 }
   0xf   :  { %v1693_v56 = vpack.c.bf16 %v355_v54, %v354_v53  ;;  %v1696_v62 = vpack.c.bf16 %v357_v60, %v356_v59  ;;  %v294_v63 = vld [vmem:[%s3417_s1 + $0xa0] sm:$0xff]  ;;  %v295_v1 = vld [vmem:[%s3417_s1 + $0xa8] sm:$0xff]  ;;  %v296_v6 = vld [vmem:[%s3417_s1 + $0xb0] sm:$0xff] }
  0x10   :  { %1583 = vmatpush1.bf16.msra.mxu1 %v1582_v23  ;;  %v358_v2 = vld [vmem:[%s3417_s1 + $0x2a0] sm:$0xff]  ;;  %v359_v3 = vld [vmem:[%s3417_s1 + $0x2a8] sm:$0xff]  ;;  %v1603_v4 = vpack.c.bf16 %v295_v1, %v294_v63  ;;  %v297_v7 = vld [vmem:[%s3417_s1 + $0xb8] sm:$0xff] }
  0x11   :  { %1679 = vmatpush1.bf16.msra.mxu0 %v1678_v24  ;;  %1584 = vmatprep.subr.bf16.mxu1 %v1952_v0  ;;  %v1699_v5 = vpack.c.bf16 %v359_v3, %v358_v2  ;;  %v360_v8 = vld [vmem:[%s3417_s1 + $0x2b0] sm:$0xff]  ;;  %v361_v9 = vld [vmem:[%s3417_s1 + $0x2b8] sm:$0xff]  ;;  %v1606_v10 = vpack.c.bf16 %v297_v7, %v296_v6  ;;  %v298_v12 = vld [vmem:[%s3417_s1 + $0xc0] sm:$0xff] }
  0x12   :  { %1680 = vmatprep.subr.bf16.mxu0 %v1952_v0  ;;  %v1702_v11 = vpack.c.bf16 %v361_v9, %v360_v8  ;;  %v299_v13 = vld [vmem:[%s3417_s1 + $0xc8] sm:$0xff]  ;;  %v362_v14 = vld [vmem:[%s3417_s1 + $0x2c0] sm:$0xff]  ;;  %v300_v18 = vld [vmem:[%s3417_s1 + $0xd0] sm:$0xff] }
  0x13   :  { %v363_v15 = vld [vmem:[%s3417_s1 + $0x2c8] sm:$0xff]  ;;  %v1609_v16 = vpack.c.bf16 %v299_v13, %v298_v12  ;;  %v301_v19 = vld [vmem:[%s3417_s1 + $0xd8] sm:$0xff]  ;;  %v364_v20 = vld [vmem:[%s3417_s1 + $0x2d0] sm:$0xff] }
  0x14   :  { %1586 = vmatpush1.bf16.msra.mxu1 %v1585_v29  ;;  %v1705_v17 = vpack.c.bf16 %v363_v15, %v362_v14  ;;  %v365_v21 = vld [vmem:[%s3417_s1 + $0x2d8] sm:$0xff]  ;;  %v1612_v22 = vpack.c.bf16 %v301_v19, %v300_v18  ;;  %v302_v24 = vld [vmem:[%s3417_s1 + $0xe0] sm:$0xff]  ;;  %v303_v25 = vld [vmem:[%s3417_s1 + $0xe8] sm:$0xff] }
  0x15   :  { %1682 = vmatpush1.bf16.msra.mxu0 %v1681_v30  ;;  %1587 = vmatprep.subr.bf16.mxu1 %v1952_v0  ;;  %v1708_v23 = vpack.c.bf16 %v365_v21, %v364_v20  ;;  %v366_v26 = vld [vmem:[%s3417_s1 + $0x2e0] sm:$0xff]  ;;  %v367_v27 = vld [vmem:[%s3417_s1 + $0x2e8] sm:$0xff]  ;;  %v1615_v28 = vpack.c.bf16 %v303_v25, %v302_v24  ;;  %v304_v30 = vld [vmem:[%s3417_s1 + $0xf0] sm:$0xff] }
  0x16   :  { %1683 = vmatprep.subr.bf16.mxu0 %v1952_v0  ;;  %v1711_v29 = vpack.c.bf16 %v367_v27, %v366_v26  ;;  %v305_v31 = vld [vmem:[%s3417_s1 + $0xf8] sm:$0xff]  ;;  %v368_v32 = vld [vmem:[%s3417_s1 + $0x2f0] sm:$0xff]  ;;  %v307_v37 = vld [vmem:[%s3417_s1 + $0x108] sm:$0xff] }
  0x17   :  { %v369_v33 = vld [vmem:[%s3417_s1 + $0x2f8] sm:$0xff]  ;;  %v1618_v34 = vpack.c.bf16 %v305_v31, %v304_v30  ;;  %v370_v38 = vld [vmem:[%s3417_s1 + $0x300] sm:$0xff]  ;;  %v371_v39 = vld [vmem:[%s3417_s1 + $0x308] sm:$0xff] }
  0x18   :  { %1589 = vmatpush1.bf16.msra.mxu1 %v1588_v35  ;;  %v1714_v35 = vpack.c.bf16 %v369_v33, %v368_v32  ;;  %v18_v40 = vld [vmem:[%s3418_s0] sm:$0xff]  ;;  %v1717_v45 = vpack.c.bf16 %v371_v39, %v370_v38  ;;  %v308_v46 = vld [vmem:[%s3417_s1 + $0x110] sm:$0xff]  ;;  %v309_v47 = vld [vmem:[%s3417_s1 + $0x118] sm:$0xff] }
  0x19   :  { %1685 = vmatpush1.bf16.msra.mxu0 %v1684_v36  ;;  %1590 = vmatprep.subr.bf16.mxu1 %v1952_v0  ;;  %v306_v36 = vld [vmem:[%s3417_s1 + $0x100] sm:$0xff]  ;;  %v372_v48 = vld [vmem:[%s3417_s1 + $0x310] sm:$0xff]  ;;  %v35_v52 = vld [vmem:[%s3418_s0 + $0x88] sm:$0xff]  ;;  %v1624_v53 = vpack.c.bf16 %v309_v47, %v308_v46 }
  0x1a   :  { %1686 = vmatprep.subr.bf16.mxu0 %v1952_v0  ;;  %v1621_v41 = vpack.c.bf16 %v307_v37, %v306_v36  ;;  %v22_v42 = vld [vmem:[%s3418_s0 + $0x20] sm:$0xff]  ;;  %v39_v54 = vld [vmem:[%s3418_s0 + $0xa8] sm:$0xff]  ;;  %v312_v3 = vld [vmem:[%s3417_s1 + $0x130] sm:$0xff] }
  0x1b   :  { %v30_v51 = vld [vmem:[%s3418_s0 + $0x60] sm:$0xff]  ;;  %v311_v57 = vld [vmem:[%s3417_s1 + $0x128] sm:$0xff]  ;;  %v377_v6 = vld [vmem:[%s3417_s1 + $0x338] sm:$0xff] }
  0x1c   :  { %1592 = vmatpush1.bf16.msra.mxu1 %v1591_v43  ;;  %v27_v43 = vld [vmem:[%s3418_s0 + $0x48] sm:$0xff]  ;;  %v374_v58 = vld [vmem:[%s3417_s1 + $0x320] sm:$0xff]  ;;  %v317_v24 = vld [vmem:[%s3417_s1 + $0x158] sm:$0xff] }
  0x1d   :  { %1688 = vmatpush1.bf16.msra.mxu0 %v1687_v44  ;;  %1593 = vmatprep.subr.bf16.mxu1 %v1952_v0  ;;  %v31_v44 = vld [vmem:[%s3418_s0 + $0x68] sm:$0xff]  ;;  %v34_v60 = vld [vmem:[%s3418_s0 + $0x80] sm:$0xff]  ;;  %v380_v25 = vld [vmem:[%s3417_s1 + $0x350] sm:$0xff] }
  0x1e   :  { %1689 = vmatprep.subr.bf16.mxu0 %v1952_v0  ;;  %v375_v59 = vld [vmem:[%s3417_s1 + $0x328] sm:$0xff]  ;;  %v42_v7 = vld [vmem:[%s3418_s0 + $0xc0] sm:$0xff]  ;;  %v381_v26 = vld [vmem:[%s3417_s1 + $0x358] sm:$0xff] }
  0x1f   :  { %v47_v1 = vld [vmem:[%s3418_s0 + $0xe8] sm:$0xff]  ;;  %v1723_v2 = vpack.c.bf16 %v375_v59, %v374_v58  ;;  %v46_v8 = vld [vmem:[%s3418_s0 + $0xe0] sm:$0xff]  ;;  %v1732_v32 = vpack.c.bf16 %v381_v26, %v380_v25  ;;  %v385_v46 = vld [vmem:[%s3417_s1 + $0x378] sm:$0xff] }
  0x20   :  { %1595 = vmatpush1.bf16.msra.mxu1 %v1594_v49  ;;  %v373_v49 = vld [vmem:[%s3417_s1 + $0x318] sm:$0xff]  ;;  %v51_v9 = vld [vmem:[%s3418_s0 + $0x108] sm:$0xff]  ;;  %v314_v13 = vld [vmem:[%s3417_s1 + $0x140] sm:$0xff] }
  0x21   :  { %1691 = vmatpush1.bf16.msra.mxu0 %v1690_v50  ;;  %1596 = vmatprep.subr.bf16.mxu1 %v1952_v0  ;;  %v26_v50 = vld [vmem:[%s3418_s0 + $0x40] sm:$0xff]  ;;  %v315_v14 = vld [vmem:[%s3417_s1 + $0x148] sm:$0xff] }
  0x22   :  { %1692 = vmatprep.subr.bf16.mxu0 %v1952_v0  ;;  %v378_v15 = vld [vmem:[%s3417_s1 + $0x340] sm:$0xff]  ;;  %v59_v19 = vld [vmem:[%s3418_s0 + $0x148] sm:$0xff]  ;;  %v1633_v20 = vpack.c.bf16 %v315_v14, %v314_v13 }
  0x23   :  { %v54_v18 = vld [vmem:[%s3418_s0 + $0x120] sm:$0xff]  ;;  %v63_v21 = vld [vmem:[%s3418_s0 + $0x168] sm:$0xff] }
  0x24   :  { %1598 = vmatpush1.bf16.msra.mxu1 %v1597_v55  ;;  %v1720_v55 = vpack.c.bf16 %v373_v49, %v372_v48  ;;  %v58_v27 = vld [vmem:[%s3418_s0 + $0x140] sm:$0xff]  ;;  %v71_v31 = vld [vmem:[%s3418_s0 + $0x1a8] sm:$0xff] }
  0x25   :  { %1694 = vmatpush1.bf16.msra.mxu0 %v1693_v56  ;;  %1599 = vmatprep.subr.bf16.mxu1 %v1952_v0  ;;  %v310_v56 = vld [vmem:[%s3417_s1 + $0x120] sm:$0xff]  ;;  %v383_v36 = vld [vmem:[%s3417_s1 + $0x368] sm:$0xff] }
  0x26   :  { %1695 = vmatprep.subr.bf16.mxu0 %v1952_v0  ;;  %v1627_v63 = vpack.c.bf16 %v311_v57, %v310_v56  ;;  %v318_v33 = vld [vmem:[%s3417_s1 + $0x160] sm:$0xff]  ;;  %v75_v39 = vld [vmem:[%s3418_s0 + $0x1c8] sm:$0xff] }
  0x27   :  { %v66_v37 = vld [vmem:[%s3418_s0 + $0x180] sm:$0xff]  ;;  %v83_v49 = vld [vmem:[%s3418_s0 + $0x208] sm:$0xff] }
  0x28   :  { %1601 = vmatpush1.bf16.msra.mxu1 %v1600_v61  ;;  %v38_v61 = vld [vmem:[%s3418_s0 + $0xa0] sm:$0xff]  ;;  %v387_v56 = vld [vmem:[%s3417_s1 + $0x388] sm:$0xff] }
  0x29   :  { %1697 = vmatpush1.bf16.msra.mxu0 %v1696_v62  ;;  %1602 = vmatprep.subr.bf16.mxu1 %v1952_v0  ;;  %v43_v62 = vld [vmem:[%s3418_s0 + $0xc8] sm:$0xff]  ;;  %v70_v38 = vld [vmem:[%s3418_s0 + $0x1a0] sm:$0xff] }
  0x2a   :  { %1698 = vmatprep.subr.bf16.mxu0 %v1952_v0  ;;  %v74_v47 = vld [vmem:[%s3418_s0 + $0x1c0] sm:$0xff]  ;;  %v91_v59 = vld [vmem:[%s3418_s0 + $0x248] sm:$0xff] }
  0x2b   :  { %v78_v48 = vld [vmem:[%s3418_s0 + $0x1e0] sm:$0xff]  ;;  %v391_v13 = vld [vmem:[%s3417_s1 + $0x3a8] sm:$0xff] }
  0x2c   :  { %1604 = vmatpush1.bf16.msra.mxu1 %v1603_v4  ;;  %v313_v4 = vld [vmem:[%s3417_s1 + $0x138] sm:$0xff]  ;;  %v82_v57 = vld [vmem:[%s3418_s0 + $0x200] sm:$0xff]  ;;  %v115_v26 = vld [vmem:[%s3418_s0 + $0x308] sm:$0xff] }
  0x2d   :  { %1700 = vmatpush1.bf16.msra.mxu0 %v1699_v5  ;;  %1605 = vmatprep.subr.bf16.mxu1 %v1952_v0  ;;  %v376_v5 = vld [vmem:[%s3417_s1 + $0x330] sm:$0xff]  ;;  %v86_v58 = vld [vmem:[%s3418_s0 + $0x220] sm:$0xff] }
  0x2e   :  { %1701 = vmatprep.subr.bf16.mxu0 %v1952_v0  ;;  %v1726_v12 = vpack.c.bf16 %v377_v6, %v376_v5  ;;  %v94_v5 = vld [vmem:[%s3418_s0 + $0x260] sm:$0xff]  ;;  %v99_v6 = vld [vmem:[%s3418_s0 + $0x288] sm:$0xff] }
  0x2f   :  { %v98_v14 = vld [vmem:[%s3418_s0 + $0x280] sm:$0xff] }
  0x30   :  { %1607 = vmatpush1.bf16.msra.mxu1 %v1606_v10  ;;  %v1630_v10 = vpack.c.bf16 %v313_v4, %v312_v3  ;;  %v389_v3 = vld [vmem:[%s3417_s1 + $0x398] sm:$0xff]  ;;  %v90_v4 = vld [vmem:[%s3418_s0 + $0x240] sm:$0xff] }
  0x31   :  { %1703 = vmatpush1.bf16.msra.mxu0 %v1702_v11  ;;  %1608 = vmatprep.subr.bf16.mxu1 %v1952_v0  ;;  %v55_v11 = vld [vmem:[%s3418_s0 + $0x128] sm:$0xff]  ;;  %v110_v25 = vld [vmem:[%s3418_s0 + $0x2e0] sm:$0xff] }
  0x32   :  { %1704 = vmatprep.subr.bf16.mxu0 %v1952_v0 }
  0x34   :  { %1610 = vmatpush1.bf16.msra.mxu1 %v1609_v16  ;;  %v379_v16 = vld [vmem:[%s3417_s1 + $0x348] sm:$0xff] }
  0x35   :  { %1706 = vmatpush1.bf16.msra.mxu0 %v1705_v17  ;;  %1611 = vmatprep.subr.bf16.mxu1 %v1952_v0  ;;  %v50_v17 = vld [vmem:[%s3418_s0 + $0x100] sm:$0xff] }
  0x36   :  { %1707 = vmatprep.subr.bf16.mxu0 %v1952_v0 }
  0x38   :  { %1613 = vmatpush1.bf16.msra.mxu1 %v1612_v22  ;;  %v1729_v22 = vpack.c.bf16 %v379_v16, %v378_v15  ;;  %v102_v15 = vld [vmem:[%s3418_s0 + $0x2a0] sm:$0xff]  ;;  %v107_v16 = vld [vmem:[%s3418_s0 + $0x2c8] sm:$0xff] }
  0x39   :  { %1709 = vmatpush1.bf16.msra.mxu0 %v1708_v23  ;;  %1614 = vmatprep.subr.bf16.mxu1 %v1952_v0  ;;  %v316_v23 = vld [vmem:[%s3417_s1 + $0x150] sm:$0xff] }
  0x3a   :  { %1710 = vmatprep.subr.bf16.mxu0 %v1952_v0  ;;  %v1636_v30 = vpack.c.bf16 %v317_v24, %v316_v23  ;;  %v393_v23 = vld [vmem:[%s3417_s1 + $0x3b8] sm:$0xff]  ;;  %v106_v24 = vld [vmem:[%s3418_s0 + $0x2c0] sm:$0xff] }
  0x3c   :  { %1616 = vmatpush1.bf16.msra.mxu1 %v1615_v28  ;;  %v62_v28 = vld [vmem:[%s3418_s0 + $0x160] sm:$0xff] }
  0x3d   :  { %1712 = vmatpush1.bf16.msra.mxu0 %v1711_v29  ;;  %1617 = vmatprep.subr.bf16.mxu1 %v1952_v0  ;;  %v67_v29 = vld [vmem:[%s3418_s0 + $0x188] sm:$0xff] }
  0x3e   :  { %1713 = vmatprep.subr.bf16.mxu0 %v1952_v0 }
  0x40   :  { %1619 = vmatpush1.bf16.msra.mxu1 %v1618_v34  ;;  %v319_v34 = vld [vmem:[%s3417_s1 + $0x168] sm:$0xff] }
  0x41   :  { %1715 = vmatpush1.bf16.msra.mxu0 %v1714_v35  ;;  %1620 = vmatprep.subr.bf16.mxu1 %v1952_v0  ;;  %v382_v35 = vld [vmem:[%s3417_s1 + $0x360] sm:$0xff] }
  0x42   :  { %1716 = vmatprep.subr.bf16.mxu0 %v1952_v0 }
  0x43   :  { %568 = vmatmul.mubr.f32.vlgmr.msra.gmra.mrb[0].mxu1 %v18_v40  ;;  %v1639_v40 = vpack.c.bf16 %v319_v34, %v318_v33  ;;  %v395_v33 = vld [vmem:[%s3417_s1 + $0x3c8] sm:$0xff]  ;;  %v114_v34 = vld [vmem:[%s3418_s0 + $0x300] sm:$0xff] }
  0x44   :  { %1018 = vmatmul.mubr.f32.vlgmr.msra.gmra.mrb[0].mxu0 %v22_v42  ;;  %1622 = vmatpush1.bf16.msra.mxu1 %v1621_v41  ;;  %v79_v41 = vld [vmem:[%s3418_s0 + $0x1e8] sm:$0xff]  ;;  %v1735_v42 = vpack.c.bf16 %v383_v36, %v382_v35  ;;  %v118_v35 = vld [vmem:[%s3418_s0 + $0x320] sm:$0xff] }
  0x45   :  { %572 = vmatprep.mubr.f32.mxu1 %v27_v43  ;;  %1022 = vmatprep.mubr.f32.mxu0 %v31_v44  ;;  %v320_v43 = vld [vmem:[%s3417_s1 + $0x170] sm:$0xff]  ;;  %v321_v44 = vld [vmem:[%s3417_s1 + $0x178] sm:$0xff]  ;;  %v123_v36 = vld [vmem:[%s3418_s0 + $0x348] sm:$0xff] }
  0x46   :  { %1718 = vmatpush1.bf16.msra.mxu0 %v1717_v45  ;;  %1623 = vmatprep.subr.bf16.mxu1 %v1952_v0  ;;  %v384_v45 = vld [vmem:[%s3417_s1 + $0x370] sm:$0xff] }
  0x47   :  { %573 = vmatmul.mubr.f32.gmra.mrb[2].mxu1 %v26_v50  ;;  %1719 = vmatprep.subr.bf16.mxu0 %v1952_v0  ;;  %v1642_v50 = vpack.c.bf16 %v321_v44, %v320_v43  ;;  %v397_v43 = vld [vmem:[%s3417_s1 + $0x3d8] sm:$0xff]  ;;  %v122_v44 = vld [vmem:[%s3418_s0 + $0x340] sm:$0xff] }
  0x48   :  { %1023 = vmatmul.mubr.f32.gmra.mrb[2].mxu0 %v30_v51  ;;  %577 = vmatprep.mubr.f32.mxu1 %v35_v52  ;;  %v87_v51 = vld [vmem:[%s3418_s0 + $0x228] sm:$0xff]  ;;  %v1738_v52 = vpack.c.bf16 %v385_v46, %v384_v45  ;;  %v126_v45 = vld [vmem:[%s3418_s0 + $0x360] sm:$0xff] }
  0x49   :  { %1027 = vmatprep.mubr.f32.mxu0 %v39_v54  ;;  %1625 = vmatpush1.bf16.msra.mxu1 %v1624_v53  ;;  %v322_v53 = vld [vmem:[%s3417_s1 + $0x180] sm:$0xff]  ;;  %v323_v54 = vld [vmem:[%s3417_s1 + $0x188] sm:$0xff] }
  0x4a   :  { %1721 = vmatpush1.bf16.msra.mxu0 %v1720_v55  ;;  %1626 = vmatprep.subr.bf16.mxu1 %v1952_v0  ;;  %v386_v55 = vld [vmem:[%s3417_s1 + $0x380] sm:$0xff]  ;;  %v131_v46 = vld [vmem:[%s3418_s0 + $0x388] sm:$0xff] }
  0x4b   :  { %578 = vmatmul.mubr.f32.gmra.mrb[4].mxu1 %v34_v60  ;;  %1722 = vmatprep.subr.bf16.mxu0 %v1952_v0  ;;  %v1645_v60 = vpack.c.bf16 %v323_v54, %v322_v53  ;;  %v134_v53 = vld [vmem:[%s3418_s0 + $0x3a0] sm:$0xff]  ;;  %v139_v54 = vld [vmem:[%s3418_s0 + $0x3c8] sm:$0xff] }
  0x4c   :  { %1028 = vmatmul.mubr.f32.gmra.mrb[4].mxu0 %v38_v61  ;;  %582 = vmatprep.mubr.f32.mxu1 %v43_v62  ;;  %v95_v61 = vld [vmem:[%s3418_s0 + $0x268] sm:$0xff]  ;;  %v1741_v62 = vpack.c.bf16 %v387_v56, %v386_v55 }
  0x4d   :  { %1032 = vmatprep.mubr.f32.mxu0 %v47_v1  ;;  %1628 = vmatpush1.bf16.msra.mxu1 %v1627_v63  ;;  %v324_v63 = vld [vmem:[%s3417_s1 + $0x190] sm:$0xff]  ;;  %v325_v1 = vld [vmem:[%s3417_s1 + $0x198] sm:$0xff]  ;;  %v143_v56 = vld [vmem:[%s3418_s0 + $0x3e8] sm:$0xff] }
  0x4e   :  { %1724 = vmatpush1.bf16.msra.mxu0 %v1723_v2  ;;  %1629 = vmatprep.subr.bf16.mxu1 %v1952_v0  ;;  %v388_v2 = vld [vmem:[%s3417_s1 + $0x390] sm:$0xff] }
  0x4f   :  { %583 = vmatmul.mubr.f32.gmra.mrb[6].mxu1 %v42_v7  ;;  %1725 = vmatprep.subr.bf16.mxu0 %v1952_v0  ;;  %v1648_v7 = vpack.c.bf16 %v325_v1, %v324_v63  ;;  %v147_v63 = vld [vmem:[%s3418_s0 + $0x408] sm:$0xff] }
  0x50   :  { %1033 = vmatmul.mubr.f32.gmra.mrb[6].mxu0 %v46_v8  ;;  %587 = vmatprep.mubr.f32.mxu1 %v51_v9  ;;  %v103_v8 = vld [vmem:[%s3418_s0 + $0x2a8] sm:$0xff]  ;;  %v1744_v9 = vpack.c.bf16 %v389_v3, %v388_v2  ;;  %v146_v3 = vld [vmem:[%s3418_s0 + $0x400] sm:$0xff] }
  0x51   :  { %1037 = vmatprep.mubr.f32.mxu0 %v55_v11  ;;  %1631 = vmatpush1.bf16.msra.mxu1 %v1630_v10  ;;  %v326_v10 = vld [vmem:[%s3417_s1 + $0x1a0] sm:$0xff]  ;;  %v327_v11 = vld [vmem:[%s3417_s1 + $0x1a8] sm:$0xff] }
  0x52   :  { %1727 = vmatpush1.bf16.msra.mxu0 %v1726_v12  ;;  %1632 = vmatprep.subr.bf16.mxu1 %v1952_v0  ;;  %v390_v12 = vld [vmem:[%s3417_s1 + $0x3a0] sm:$0xff]  ;;  %v151_v2 = vld [vmem:[%s3418_s0 + $0x428] sm:$0xff] }
  0x53   :  { %588 = vmatmul.mubr.f32.gmra.mrb[8].mxu1 %v50_v17  ;;  %1728 = vmatprep.subr.bf16.mxu0 %v1952_v0  ;;  %v1651_v17 = vpack.c.bf16 %v327_v11, %v326_v10  ;;  %v162_v10 = vld [vmem:[%s3418_s0 + $0x480] sm:$0xff] }
  0x54   :  { %1038 = vmatmul.mubr.f32.gmra.mrb[8].mxu0 %v54_v18  ;;  %592 = vmatprep.mubr.f32.mxu1 %v59_v19  ;;  %v111_v18 = vld [vmem:[%s3418_s0 + $0x2e8] sm:$0xff]  ;;  %v328_v19 = vld [vmem:[%s3417_s1 + $0x1b0] sm:$0xff]  ;;  %v166_v11 = vld [vmem:[%s3418_s0 + $0x4a0] sm:$0xff] }
  0x55   :  { %1042 = vmatprep.mubr.f32.mxu0 %v63_v21  ;;  %1634 = vmatpush1.bf16.msra.mxu1 %v1633_v20  ;;  %v329_v20 = vld [vmem:[%s3417_s1 + $0x1b8] sm:$0xff]  ;;  %v1747_v21 = vpack.c.bf16 %v391_v13, %v390_v12  ;;  %v171_v12 = vld [vmem:[%s3418_s0 + $0x4c8] sm:$0xff] }
  0x56   :  { %1730 = vmatpush1.bf16.msra.mxu0 %v1729_v22  ;;  %1635 = vmatprep.subr.bf16.mxu1 %v1952_v0  ;;  %v392_v22 = vld [vmem:[%s3417_s1 + $0x3b0] sm:$0xff]  ;;  %v175_v13 = vld [vmem:[%s3418_s0 + $0x4e8] sm:$0xff] }
  0x57   :  { %593 = vmatmul.mubr.f32.gmra.mrb[10].mxu1 %v58_v27  ;;  %1731 = vmatprep.subr.bf16.mxu0 %v1952_v0  ;;  %v1654_v27 = vpack.c.bf16 %v329_v20, %v328_v19  ;;  %v182_v19 = vld [vmem:[%s3418_s0 + $0x520] sm:$0xff]  ;;  %v187_v20 = vld [vmem:[%s3418_s0 + $0x548] sm:$0xff] }
  0x58   :  { %1043 = vmatmul.mubr.f32.gmra.mrb[10].mxu0 %v62_v28  ;;  %597 = vmatprep.mubr.f32.mxu1 %v67_v29  ;;  %v119_v28 = vld [vmem:[%s3418_s0 + $0x328] sm:$0xff]  ;;  %v330_v29 = vld [vmem:[%s3417_s1 + $0x1c0] sm:$0xff] }
  0x59   :  { %1047 = vmatprep.mubr.f32.mxu0 %v71_v31  ;;  %1637 = vmatpush1.bf16.msra.mxu1 %v1636_v30  ;;  %v331_v30 = vld [vmem:[%s3417_s1 + $0x1c8] sm:$0xff]  ;;  %v1750_v31 = vpack.c.bf16 %v393_v23, %v392_v22  ;;  %v186_v22 = vld [vmem:[%s3418_s0 + $0x540] sm:$0xff] }
  0x5a   :  { %1733 = vmatpush1.bf16.msra.mxu0 %v1732_v32  ;;  %1638 = vmatprep.subr.bf16.mxu1 %v1952_v0  ;;  %v394_v32 = vld [vmem:[%s3417_s1 + $0x3c0] sm:$0xff] }
  0x5b   :  { %598 = vmatmul.mubr.f32.gmra.mrb[12].mxu1 %v66_v37  ;;  %1734 = vmatprep.subr.bf16.mxu0 %v1952_v0  ;;  %v1657_v37 = vpack.c.bf16 %v331_v30, %v330_v29  ;;  %v190_v23 = vld [vmem:[%s3418_s0 + $0x560] sm:$0xff]  ;;  %v207_v29 = vld [vmem:[%s3418_s0 + $0x5e8] sm:$0xff] }
  0x5c   :  { %1048 = vmatmul.mubr.f32.gmra.mrb[12].mxu0 %v70_v38  ;;  %602 = vmatprep.mubr.f32.mxu1 %v75_v39  ;;  %v127_v38 = vld [vmem:[%s3418_s0 + $0x368] sm:$0xff]  ;;  %v332_v39 = vld [vmem:[%s3417_s1 + $0x1d0] sm:$0xff]  ;;  %v202_v30 = vld [vmem:[%s3418_s0 + $0x5c0] sm:$0xff] }
  0x5d   :  { %1052 = vmatprep.mubr.f32.mxu0 %v79_v41  ;;  %1640 = vmatpush1.bf16.msra.mxu1 %v1639_v40  ;;  %v333_v40 = vld [vmem:[%s3417_s1 + $0x1d8] sm:$0xff]  ;;  %v1753_v41 = vpack.c.bf16 %v395_v33, %v394_v32  ;;  %v211_v32 = vld [vmem:[%s3418_s0 + $0x608] sm:$0xff] }
  0x5e   :  { %1736 = vmatpush1.bf16.msra.mxu0 %v1735_v42  ;;  %1641 = vmatprep.subr.bf16.mxu1 %v1952_v0  ;;  %v396_v42 = vld [vmem:[%s3417_s1 + $0x3d0] sm:$0xff]  ;;  %v215_v33 = vld [vmem:[%s3418_s0 + $0x628] sm:$0xff] }
  0x5f   :  { %603 = vmatmul.mubr.f32.gmra.mrb[14].mxu1 %v74_v47  ;;  %1737 = vmatprep.subr.bf16.mxu0 %v1952_v0  ;;  %v1660_v47 = vpack.c.bf16 %v333_v40, %v332_v39  ;;  %v222_v39 = vld [vmem:[%s3418_s0 + $0x660] sm:$0xff]  ;;  %v227_v40 = vld [vmem:[%s3418_s0 + $0x688] sm:$0xff] }
  0x60   :  { %1053 = vmatmul.mubr.f32.gmra.mrb[14].mxu0 %v78_v48  ;;  %607 = vmatprep.mubr.f32.mxu1 %v83_v49  ;;  %v135_v48 = vld [vmem:[%s3418_s0 + $0x3a8] sm:$0xff]  ;;  %v334_v49 = vld [vmem:[%s3417_s1 + $0x1e0] sm:$0xff] }
  0x61   :  { %1057 = vmatprep.mubr.f32.mxu0 %v87_v51  ;;  %1643 = vmatpush1.bf16.msra.mxu1 %v1642_v50  ;;  %v335_v50 = vld [vmem:[%s3417_s1 + $0x1e8] sm:$0xff]  ;;  %v1756_v51 = vpack.c.bf16 %v397_v43, %v396_v42  ;;  %v226_v42 = vld [vmem:[%s3418_s0 + $0x680] sm:$0xff] }
  0x62   :  { %1739 = vmatpush1.bf16.msra.mxu0 %v1738_v52  ;;  %1644 = vmatprep.subr.bf16.mxu1 %v1952_v0  ;;  %v130_v52 = vld [vmem:[%s3418_s0 + $0x380] sm:$0xff]  ;;  %v1663_v55 = vpack.c.bf16 %v335_v50, %v334_v49  ;;  %v247_v49 = vld [vmem:[%s3418_s0 + $0x728] sm:$0xff] }
  0x63   :  { %608 = vmatmul.mubr.f32.gmra.mrb[16].mxu1 %v82_v57  ;;  %1740 = vmatprep.subr.bf16.mxu0 %v1952_v0  ;;  %v336_v57 = vld [vmem:[%s3417_s1 + $0x1f0] sm:$0xff]  ;;  %v230_v43 = vld [vmem:[%s3418_s0 + $0x6a0] sm:$0xff] }
  0x64   :  { %1058 = vmatmul.mubr.f32.gmra.mrb[16].mxu0 %v86_v58  ;;  %612 = vmatprep.mubr.f32.mxu1 %v91_v59  ;;  %v337_v58 = vld [vmem:[%s3417_s1 + $0x1f8] sm:$0xff]  ;;  %v1953_v59 = vmov 0.0   ;;  %v242_v50 = vld [vmem:[%s3418_s0 + $0x700] sm:$0xff] }
  0x65   :  { %1062 = vmatprep.mubr.f32.mxu0 %v95_v61  ;;  %1646 = vmatpush1.bf16.msra.mxu1 %v1645_v60  ;;  %v398_v60 = vld [vmem:[%s3417_s1 + $0x3e0] sm:$0xff]  ;;  %v1666_v1 = vpack.c.bf16 %v337_v58, %v336_v57  ;;  %v263_v57 = vld [vmem:[%s3418_s0 + $0x7a8] sm:$0xff] }
  0x66   :  { %1647 = vmatprep.subr.bf16.mxu1 %v1952_v0  ;;  %1742 = vmatpush1.bf16.msra.mxu0 %v1741_v62  ;;  %v138_v61 = vld [vmem:[%s3418_s0 + $0x3c0] sm:$0xff] }
  0x67   :  { %613 = vmatmul.mubr.f32.gmra.mrb[18].mxu1 %v90_v4  ;;  %1743 = vmatprep.subr.bf16.mxu0 %v1952_v0  ;;  %v142_v62 = vld [vmem:[%s3418_s0 + $0x3e0] sm:$0xff] }
  0x68   :  { %1063 = vmatmul.mubr.f32.gmra.mrb[18].mxu0 %v94_v5  ;;  %617 = vmatprep.mubr.f32.mxu1 %v99_v6  ;;  %v150_v4 = vld [vmem:[%s3418_s0 + $0x420] sm:$0xff]  ;;  %v155_v5 = vld [vmem:[%s3418_s0 + $0x448] sm:$0xff] }
  0x69   :  { %1067 = vmatprep.mubr.f32.mxu0 %v103_v8  ;;  %1649 = vmatpush1.bf16.msra.mxu1 %v1648_v7  ;;  %v154_v6 = vld [vmem:[%s3418_s0 + $0x440] sm:$0xff]  ;;  %v163_v8 = vld [vmem:[%s3418_s0 + $0x488] sm:$0xff] }
  0x6a   :  { %1650 = vmatprep.subr.bf16.mxu1 %v1952_v0  ;;  %1745 = vmatpush1.bf16.msra.mxu0 %v1744_v9  ;;  %v158_v7 = vld [vmem:[%s3418_s0 + $0x460] sm:$0xff]  ;;  %v167_v9 = vld [vmem:[%s3418_s0 + $0x4a8] sm:$0xff] }
  0x6b   :  { %618 = vmatmul.mubr.f32.gmra.mrb[20].mxu1 %v98_v14  ;;  %1746 = vmatprep.subr.bf16.mxu0 %v1952_v0  ;;  %v170_v14 = vld [vmem:[%s3418_s0 + $0x4c0] sm:$0xff] }
  0x6c   :  { %1068 = vmatmul.mubr.f32.gmra.mrb[20].mxu0 %v102_v15  ;;  %622 = vmatprep.mubr.f32.mxu1 %v107_v16  ;;  %v174_v15 = vld [vmem:[%s3418_s0 + $0x4e0] sm:$0xff]  ;;  %v179_v16 = vld [vmem:[%s3418_s0 + $0x508] sm:$0xff] }
  0x6d   :  { %1072 = vmatprep.mubr.f32.mxu0 %v111_v18  ;;  %1652 = vmatpush1.bf16.msra.mxu1 %v1651_v17  ;;  %v183_v17 = vld [vmem:[%s3418_s0 + $0x528] sm:$0xff]  ;;  %v178_v18 = vld [vmem:[%s3418_s0 + $0x500] sm:$0xff] }
  0x6e   :  { %1653 = vmatprep.subr.bf16.mxu1 %v1952_v0  ;;  %1748 = vmatpush1.bf16.msra.mxu0 %v1747_v21  ;;  %v191_v21 = vld [vmem:[%s3418_s0 + $0x568] sm:$0xff]  ;;  %v258_v58 = vld [vmem:[%s3418_s0 + $0x780] sm:$0xff] }
  0x6f   :  { %623 = vmatmul.mubr.f32.gmra.mrb[22].mxu1 %v106_v24  ;;  %1749 = vmatprep.subr.bf16.mxu0 %v1952_v0  ;;  %v195_v24 = vld [vmem:[%s3418_s0 + $0x588] sm:$0xff] }
  0x70   :  { %1073 = vmatmul.mubr.f32.gmra.mrb[22].mxu0 %v110_v25  ;;  %627 = vmatprep.mubr.f32.mxu1 %v115_v26  ;;  %v199_v25 = vld [vmem:[%s3418_s0 + $0x5a8] sm:$0xff]  ;;  %v194_v26 = vld [vmem:[%s3418_s0 + $0x580] sm:$0xff] }
  0x71   :  { %1077 = vmatprep.mubr.f32.mxu0 %v119_v28  ;;  %1655 = vmatpush1.bf16.msra.mxu1 %v1654_v27  ;;  %v198_v27 = vld [vmem:[%s3418_s0 + $0x5a0] sm:$0xff]  ;;  %v203_v28 = vld [vmem:[%s3418_s0 + $0x5c8] sm:$0xff] }
  0x72   :  { %1656 = vmatprep.subr.bf16.mxu1 %v1952_v0  ;;  %1751 = vmatpush1.bf16.msra.mxu0 %v1750_v31  ;;  %v206_v31 = vld [vmem:[%s3418_s0 + $0x5e0] sm:$0xff] }
  0x73   :  { %628 = vmatmul.mubr.f32.gmra.mrb[24].mxu1 %v114_v34  ;;  %1752 = vmatprep.subr.bf16.mxu0 %v1952_v0  ;;  %v210_v34 = vld [vmem:[%s3418_s0 + $0x600] sm:$0xff] }
  0x74   :  { %1078 = vmatmul.mubr.f32.gmra.mrb[24].mxu0 %v118_v35  ;;  %632 = vmatprep.mubr.f32.mxu1 %v123_v36  ;;  %v214_v35 = vld [vmem:[%s3418_s0 + $0x620] sm:$0xff]  ;;  %v219_v36 = vld [vmem:[%s3418_s0 + $0x648] sm:$0xff] }
  0x75   :  { %1082 = vmatprep.mubr.f32.mxu0 %v127_v38  ;;  %1658 = vmatpush1.bf16.msra.mxu1 %v1657_v37  ;;  %v223_v37 = vld [vmem:[%s3418_s0 + $0x668] sm:$0xff]  ;;  %v218_v38 = vld [vmem:[%s3418_s0 + $0x640] sm:$0xff] }
  0x76   :  { %1659 = vmatprep.subr.bf16.mxu1 %v1952_v0  ;;  %1754 = vmatpush1.bf16.msra.mxu0 %v1753_v41  ;;  %v231_v41 = vld [vmem:[%s3418_s0 + $0x6a8] sm:$0xff] }
  0x77   :  { %633 = vmatmul.mubr.f32.gmra.mrb[26].mxu1 %v122_v44  ;;  %1755 = vmatprep.subr.bf16.mxu0 %v1952_v0  ;;  %v235_v44 = vld [vmem:[%s3418_s0 + $0x6c8] sm:$0xff] }
  0x78   :  { %1083 = vmatmul.mubr.f32.gmra.mrb[26].mxu0 %v126_v45  ;;  %637 = vmatprep.mubr.f32.mxu1 %v131_v46  ;;  %v239_v45 = vld [vmem:[%s3418_s0 + $0x6e8] sm:$0xff]  ;;  %v234_v46 = vld [vmem:[%s3418_s0 + $0x6c0] sm:$0xff] }
  0x79   :  { %1087 = vmatprep.mubr.f32.mxu0 %v135_v48  ;;  %1661 = vmatpush1.bf16.msra.mxu1 %v1660_v47  ;;  %v238_v47 = vld [vmem:[%s3418_s0 + $0x6e0] sm:$0xff]  ;;  %v243_v48 = vld [vmem:[%s3418_s0 + $0x708] sm:$0xff] }
  0x7a   :  { %1662 = vmatprep.subr.bf16.mxu1 %v1952_v0  ;;  %1757 = vmatpush1.bf16.msra.mxu0 %v1756_v51  ;;  %v246_v51 = vld [vmem:[%s3418_s0 + $0x720] sm:$0xff] }
  0x7b   :  { %638 = vmatmul.mubr.f32.gmra.mrb[28].mxu1 %v130_v52  ;;  %1234 = vmatprep.subr.mxu0 %v1953_v59  ;;  %v251_v52 = vld [vmem:[%s3418_s0 + $0x748] sm:$0xff]  ;;  %v262_v59 = vld [vmem:[%s3418_s0 + $0x7a0] sm:$0xff] }
  0x7c   :  { %1088 = vmatmul.mubr.f32.gmra.mrb[28].mxu0 %v134_v53  ;;  %642 = vmatprep.mubr.f32.mxu1 %v139_v54  ;;  %v255_v53 = vld [vmem:[%s3418_s0 + $0x768] sm:$0xff]  ;;  %v250_v54 = vld [vmem:[%s3418_s0 + $0x740] sm:$0xff] }
  0x7d   :  { %1092 = vmatprep.mubr.f32.mxu0 %v143_v56  ;;  %1664 = vmatpush1.bf16.msra.mxu1 %v1663_v55  ;;  %v254_v55 = vld [vmem:[%s3418_s0 + $0x760] sm:$0xff]  ;;  %v259_v56 = vld [vmem:[%s3418_s0 + $0x788] sm:$0xff] }
  0x7e   :  { %1665 = vmatprep.subr.bf16.mxu1 %v1952_v0  ;;  %1235 = vmatpush1.msra.mxu0 %v398_v60  ;;  %v159_v0 = vld [vmem:[%s3418_s0 + $0x468] sm:$0xff] }
  0x7f   :  { %643 = vmatmul.mubr.f32.gmra.mrb[30].mxu1 %v138_v61  ;;  %v267_v60 = vld [vmem:[%s3418_s0 + $0x7c8] sm:$0x3] }
  0x80   :  { %1093 = vmatmul.mubr.f32.gmra.mrb[30].mxu0 %v142_v62  ;;  %647 = vmatprep.mubr.f32.mxu1 %v147_v63  ;;  %v271_v61 = vld [vmem:[%s3418_s0 + $0x7e8] sm:$0x3]  ;;  %v266_v62 = vld [vmem:[%s3418_s0 + $0x7c0] sm:$0x3] }
  0x81   :  { %1097 = vmatprep.mubr.f32.mxu0 %v151_v2  ;;  %1667 = vmatpush1.bf16.msra.mxu1 %v1666_v1  ;;  %v270_v63 = vld [vmem:[%s3418_s0 + $0x7e0] sm:$0x3]  ;;  %v21_v1 = vld [vmem:[%s3418_s0 + $0x18] sm:$0xff] }
  0x82   :  { %v25_v2 = vld [vmem:[%s3418_s0 + $0x38] sm:$0xff] }
  0x83   :  { %648 = vmatmul.mubr.f32.gmra.mrb[32].mxu1 %v146_v3  ;;  %v20_v3 = vld [vmem:[%s3418_s0 + $0x10] sm:$0xff] }
  0x84   :  { %1098 = vmatmul.mubr.f32.gmra.mrb[32].mxu0 %v150_v4  ;;  %652 = vmatprep.mubr.f32.mxu1 %v155_v5  ;;  %v24_v4 = vld [vmem:[%s3418_s0 + $0x30] sm:$0xff]  ;;  %v29_v5 = vld [vmem:[%s3418_s0 + $0x58] sm:$0xff] }
  0x85   :  { %1102 = vmatprep.mubr.f32.mxu0 %v159_v0  ;;  %v33_v0 = vld [vmem:[%s3418_s0 + $0x78] sm:$0xff] }
  0x87   :  { %653 = vmatmul.mubr.f32.gmra.mrb[34].mxu1 %v154_v6  ;;  %v28_v6 = vld [vmem:[%s3418_s0 + $0x50] sm:$0xff] }
  0x88   :  { %1103 = vmatmul.mubr.f32.gmra.mrb[34].mxu0 %v158_v7  ;;  %657 = vmatprep.mubr.f32.mxu1 %v163_v8  ;;  %v32_v7 = vld [vmem:[%s3418_s0 + $0x70] sm:$0xff]  ;;  %v37_v8 = vld [vmem:[%s3418_s0 + $0x98] sm:$0xff] }
  0x89   :  { %1107 = vmatprep.mubr.f32.mxu0 %v167_v9  ;;  %v41_v9 = vld [vmem:[%s3418_s0 + $0xb8] sm:$0xff] }
  0x8b   :  { %658 = vmatmul.mubr.f32.gmra.mrb[36].mxu1 %v162_v10  ;;  %v36_v10 = vld [vmem:[%s3418_s0 + $0x90] sm:$0xff] }
  0x8c   :  { %1108 = vmatmul.mubr.f32.gmra.mrb[36].mxu0 %v166_v11  ;;  %662 = vmatprep.mubr.f32.mxu1 %v171_v12  ;;  %v40_v11 = vld [vmem:[%s3418_s0 + $0xb0] sm:$0xff]  ;;  %v45_v12 = vld [vmem:[%s3418_s0 + $0xd8] sm:$0xff] }
  0x8d   :  { %1112 = vmatprep.mubr.f32.mxu0 %v175_v13  ;;  %v49_v13 = vld [vmem:[%s3418_s0 + $0xf8] sm:$0xff] }
  0x8f   :  { %663 = vmatmul.mubr.f32.gmra.mrb[38].mxu1 %v170_v14  ;;  %v44_v14 = vld [vmem:[%s3418_s0 + $0xd0] sm:$0xff] }
  0x90   :  { %1113 = vmatmul.mubr.f32.gmra.mrb[38].mxu0 %v174_v15  ;;  %667 = vmatprep.mubr.f32.mxu1 %v179_v16  ;;  %v48_v15 = vld [vmem:[%s3418_s0 + $0xf0] sm:$0xff]  ;;  %v53_v16 = vld [vmem:[%s3418_s0 + $0x118] sm:$0xff] }
  0x91   :  { %1117 = vmatprep.mubr.f32.mxu0 %v183_v17  ;;  %v57_v17 = vld [vmem:[%s3418_s0 + $0x138] sm:$0xff] }
  0x93   :  { %668 = vmatmul.mubr.f32.gmra.mrb[40].mxu1 %v178_v18  ;;  %v52_v18 = vld [vmem:[%s3418_s0 + $0x110] sm:$0xff] }
  0x94   :  { %1118 = vmatmul.mubr.f32.gmra.mrb[40].mxu0 %v182_v19  ;;  %672 = vmatprep.mubr.f32.mxu1 %v187_v20  ;;  %v56_v19 = vld [vmem:[%s3418_s0 + $0x130] sm:$0xff]  ;;  %v61_v20 = vld [vmem:[%s3418_s0 + $0x158] sm:$0xff] }
  0x95   :  { %1122 = vmatprep.mubr.f32.mxu0 %v191_v21  ;;  %v65_v21 = vld [vmem:[%s3418_s0 + $0x178] sm:$0xff] }
  0x97   :  { %673 = vmatmul.mubr.f32.gmra.mrb[42].mxu1 %v186_v22  ;;  %v60_v22 = vld [vmem:[%s3418_s0 + $0x150] sm:$0xff] }
  0x98   :  { %1123 = vmatmul.mubr.f32.gmra.mrb[42].mxu0 %v190_v23  ;;  %677 = vmatprep.mubr.f32.mxu1 %v195_v24  ;;  %v64_v23 = vld [vmem:[%s3418_s0 + $0x170] sm:$0xff]  ;;  %v69_v24 = vld [vmem:[%s3418_s0 + $0x198] sm:$0xff] }
  0x99   :  { %1127 = vmatprep.mubr.f32.mxu0 %v199_v25  ;;  %v73_v25 = vld [vmem:[%s3418_s0 + $0x1b8] sm:$0xff] }
  0x9b   :  { %678 = vmatmul.mubr.f32.gmra.mrb[44].mxu1 %v194_v26  ;;  %v68_v26 = vld [vmem:[%s3418_s0 + $0x190] sm:$0xff] }
  0x9c   :  { %1128 = vmatmul.mubr.f32.gmra.mrb[44].mxu0 %v198_v27  ;;  %682 = vmatprep.mubr.f32.mxu1 %v203_v28  ;;  %v72_v27 = vld [vmem:[%s3418_s0 + $0x1b0] sm:$0xff]  ;;  %v77_v28 = vld [vmem:[%s3418_s0 + $0x1d8] sm:$0xff] }
  0x9d   :  { %1132 = vmatprep.mubr.f32.mxu0 %v207_v29  ;;  %v81_v29 = vld [vmem:[%s3418_s0 + $0x1f8] sm:$0xff] }
  0x9f   :  { %683 = vmatmul.mubr.f32.gmra.mrb[46].mxu1 %v202_v30  ;;  %v76_v30 = vld [vmem:[%s3418_s0 + $0x1d0] sm:$0xff] }
  0xa0   :  { %1133 = vmatmul.mubr.f32.gmra.mrb[46].mxu0 %v206_v31  ;;  %687 = vmatprep.mubr.f32.mxu1 %v211_v32  ;;  %v80_v31 = vld [vmem:[%s3418_s0 + $0x1f0] sm:$0xff]  ;;  %v85_v32 = vld [vmem:[%s3418_s0 + $0x218] sm:$0xff] }
  0xa1   :  { %1137 = vmatprep.mubr.f32.mxu0 %v215_v33  ;;  %v89_v33 = vld [vmem:[%s3418_s0 + $0x238] sm:$0xff] }
  0xa3   :  { %688 = vmatmul.mubr.f32.gmra.mrb[48].mxu1 %v210_v34  ;;  %v84_v34 = vld [vmem:[%s3418_s0 + $0x210] sm:$0xff] }
  0xa4   :  { %1138 = vmatmul.mubr.f32.gmra.mrb[48].mxu0 %v214_v35  ;;  %692 = vmatprep.mubr.f32.mxu1 %v219_v36  ;;  %v88_v35 = vld [vmem:[%s3418_s0 + $0x230] sm:$0xff]  ;;  %v93_v36 = vld [vmem:[%s3418_s0 + $0x258] sm:$0xff] }
  0xa5   :  { %1142 = vmatprep.mubr.f32.mxu0 %v223_v37  ;;  %v97_v37 = vld [vmem:[%s3418_s0 + $0x278] sm:$0xff] }
  0xa7   :  { %693 = vmatmul.mubr.f32.gmra.mrb[50].mxu1 %v218_v38  ;;  %v92_v38 = vld [vmem:[%s3418_s0 + $0x250] sm:$0xff] }
  0xa8   :  { %1143 = vmatmul.mubr.f32.gmra.mrb[50].mxu0 %v222_v39  ;;  %697 = vmatprep.mubr.f32.mxu1 %v227_v40  ;;  %v96_v39 = vld [vmem:[%s3418_s0 + $0x270] sm:$0xff]  ;;  %v101_v40 = vld [vmem:[%s3418_s0 + $0x298] sm:$0xff] }
  0xa9   :  { %1147 = vmatprep.mubr.f32.mxu0 %v231_v41  ;;  %v105_v41 = vld [vmem:[%s3418_s0 + $0x2b8] sm:$0xff] }
  0xab   :  { %698 = vmatmul.mubr.f32.gmra.mrb[52].mxu1 %v226_v42  ;;  %v100_v42 = vld [vmem:[%s3418_s0 + $0x290] sm:$0xff] }
  0xac   :  { %1148 = vmatmul.mubr.f32.gmra.mrb[52].mxu0 %v230_v43  ;;  %702 = vmatprep.mubr.f32.mxu1 %v235_v44  ;;  %v104_v43 = vld [vmem:[%s3418_s0 + $0x2b0] sm:$0xff]  ;;  %v109_v44 = vld [vmem:[%s3418_s0 + $0x2d8] sm:$0xff] }
  0xad   :  { %1152 = vmatprep.mubr.f32.mxu0 %v239_v45  ;;  %v113_v45 = vld [vmem:[%s3418_s0 + $0x2f8] sm:$0xff] }
  0xaf   :  { %703 = vmatmul.mubr.f32.gmra.mrb[54].mxu1 %v234_v46  ;;  %v108_v46 = vld [vmem:[%s3418_s0 + $0x2d0] sm:$0xff] }
  0xb0   :  { %1153 = vmatmul.mubr.f32.gmra.mrb[54].mxu0 %v238_v47  ;;  %707 = vmatprep.mubr.f32.mxu1 %v243_v48  ;;  %v112_v47 = vld [vmem:[%s3418_s0 + $0x2f0] sm:$0xff]  ;;  %v117_v48 = vld [vmem:[%s3418_s0 + $0x318] sm:$0xff] }
  0xb1   :  { %1157 = vmatprep.mubr.f32.mxu0 %v247_v49  ;;  %v121_v49 = vld [vmem:[%s3418_s0 + $0x338] sm:$0xff] }
  0xb3   :  { %708 = vmatmul.mubr.f32.gmra.mrb[56].mxu1 %v242_v50  ;;  %v116_v50 = vld [vmem:[%s3418_s0 + $0x310] sm:$0xff] }
  0xb4   :  { %1158 = vmatmul.mubr.f32.gmra.mrb[56].mxu0 %v246_v51  ;;  %712 = vmatprep.mubr.f32.mxu1 %v251_v52  ;;  %v120_v51 = vld [vmem:[%s3418_s0 + $0x330] sm:$0xff]  ;;  %v125_v52 = vld [vmem:[%s3418_s0 + $0x358] sm:$0xff] }
  0xb5   :  { %1162 = vmatprep.mubr.f32.mxu0 %v255_v53  ;;  %v129_v53 = vld [vmem:[%s3418_s0 + $0x378] sm:$0xff] }
  0xb7   :  { %713 = vmatmul.mubr.f32.gmra.mrb[58].mxu1 %v250_v54  ;;  %v124_v54 = vld [vmem:[%s3418_s0 + $0x350] sm:$0xff] }
  0xb8   :  { %1163 = vmatmul.mubr.f32.gmra.mrb[58].mxu0 %v254_v55  ;;  %717 = vmatprep.mubr.f32.mxu1 %v259_v56  ;;  %v128_v55 = vld [vmem:[%s3418_s0 + $0x370] sm:$0xff]  ;;  %v133_v56 = vld [vmem:[%s3418_s0 + $0x398] sm:$0xff] }
  0xb9   :  { %1167 = vmatprep.mubr.f32.mxu0 %v263_v57  ;;  %v137_v57 = vld [vmem:[%s3418_s0 + $0x3b8] sm:$0xff] }
  0xbb   :  { %718 = vmatmul.mubr.f32.gmra.mrb[60].mxu1 %v258_v58  ;;  %v132_v58 = vld [vmem:[%s3418_s0 + $0x390] sm:$0xff] }
  0xbc   :  { %1168 = vmatmul.mubr.f32.gmra.mrb[60].mxu0 %v262_v59  ;;  %722 = vmatprep.mubr.f32.mxu1 %v267_v60  ;;  %v136_v59 = vld [vmem:[%s3418_s0 + $0x3b0] sm:$0xff]  ;;  %v141_v60 = vld [vmem:[%s3418_s0 + $0x3d8] sm:$0xff] }
  0xbd   :  { %1172 = vmatprep.mubr.f32.mxu0 %v271_v61  ;;  %v145_v61 = vld [vmem:[%s3418_s0 + $0x3f8] sm:$0xff] }
  0xbf   :  { %723 = vmatmul.mubr.f32.gmra.mrb[62].mxu1 %v266_v62  ;;  %v140_v62 = vld [vmem:[%s3418_s0 + $0x3d0] sm:$0xff] }
  0xc0   :  { %1173 = vmatmul.mubr.f32.gmra.mrb[62].mxu0 %v270_v63  ;;  %792 = vmatprep.mubr.f32.mxu1 %v21_v1  ;;  %v144_v63 = vld [vmem:[%s3418_s0 + $0x3f0] sm:$0xff]  ;;  %v149_v1 = vld [vmem:[%s3418_s0 + $0x418] sm:$0xff] }
  0xc1   :  { %1540 = vmatprep.mubr.msk.f32.mxu0 %vm406_vm0, %v25_v2  ;;  %v153_v2 = vld [vmem:[%s3418_s0 + $0x438] sm:$0xff] }
  0xc3   :  { %793 = vmatmul.mubr.f32.vlgmr.msra.gmra.mrb[0].mxu1 %v20_v3  ;;  %v148_v3 = vld [vmem:[%s3418_s0 + $0x410] sm:$0xff] }
  0xc4   :  { %1243 = vmatmul.mubr.f32.vlgmr.msra.gmra.mrb[0].mxu0 %v24_v4  ;;  %797 = vmatprep.mubr.f32.mxu1 %v29_v5  ;;  %v152_v4 = vld [vmem:[%s3418_s0 + $0x430] sm:$0xff]  ;;  %v157_v5 = vld [vmem:[%s3418_s0 + $0x458] sm:$0xff] }
  0xc5   :  { %1541 = vmatprep.mubr.msk.f32.mxu0 %vm406_vm0, %v33_v0  ;;  %v161_v0 = vld [vmem:[%s3418_s0 + $0x478] sm:$0xff] }
  0xc7   :  { %798 = vmatmul.mubr.f32.gmra.mrb[2].mxu1 %v28_v6  ;;  %v156_v6 = vld [vmem:[%s3418_s0 + $0x450] sm:$0xff] }
  0xc8   :  { %1248 = vmatmul.mubr.f32.gmra.mrb[2].mxu0 %v32_v7  ;;  %802 = vmatprep.mubr.f32.mxu1 %v37_v8  ;;  %v160_v7 = vld [vmem:[%s3418_s0 + $0x470] sm:$0xff]  ;;  %v165_v8 = vld [vmem:[%s3418_s0 + $0x498] sm:$0xff] }
  0xc9   :  { %1542 = vmatprep.mubr.msk.f32.mxu0 %vm406_vm0, %v41_v9  ;;  %v169_v9 = vld [vmem:[%s3418_s0 + $0x4b8] sm:$0xff] }
  0xcb   :  { %803 = vmatmul.mubr.f32.gmra.mrb[4].mxu1 %v36_v10  ;;  %v164_v10 = vld [vmem:[%s3418_s0 + $0x490] sm:$0xff] }
  0xcc   :  { %1253 = vmatmul.mubr.f32.gmra.mrb[4].mxu0 %v40_v11  ;;  %807 = vmatprep.mubr.f32.mxu1 %v45_v12  ;;  %v168_v11 = vld [vmem:[%s3418_s0 + $0x4b0] sm:$0xff]  ;;  %v173_v12 = vld [vmem:[%s3418_s0 + $0x4d8] sm:$0xff] }
  0xcd   :  { %1543 = vmatprep.mubr.msk.f32.mxu0 %vm406_vm0, %v49_v13  ;;  %v177_v13 = vld [vmem:[%s3418_s0 + $0x4f8] sm:$0xff] }
  0xcf   :  { %808 = vmatmul.mubr.f32.gmra.mrb[6].mxu1 %v44_v14  ;;  %v172_v14 = vld [vmem:[%s3418_s0 + $0x4d0] sm:$0xff] }
  0xd0   :  { %1258 = vmatmul.mubr.f32.gmra.mrb[6].mxu0 %v48_v15  ;;  %812 = vmatprep.mubr.f32.mxu1 %v53_v16  ;;  %v176_v15 = vld [vmem:[%s3418_s0 + $0x4f0] sm:$0xff]  ;;  %v181_v16 = vld [vmem:[%s3418_s0 + $0x518] sm:$0xff] }
  0xd1   :  { %1544 = vmatprep.mubr.msk.f32.mxu0 %vm406_vm0, %v57_v17  ;;  %v185_v17 = vld [vmem:[%s3418_s0 + $0x538] sm:$0xff] }
  0xd3   :  { %813 = vmatmul.mubr.f32.gmra.mrb[8].mxu1 %v52_v18  ;;  %v180_v18 = vld [vmem:[%s3418_s0 + $0x510] sm:$0xff] }
  0xd4   :  { %1263 = vmatmul.mubr.f32.gmra.mrb[8].mxu0 %v56_v19  ;;  %817 = vmatprep.mubr.f32.mxu1 %v61_v20  ;;  %v184_v19 = vld [vmem:[%s3418_s0 + $0x530] sm:$0xff]  ;;  %v189_v20 = vld [vmem:[%s3418_s0 + $0x558] sm:$0xff] }
  0xd5   :  { %1545 = vmatprep.mubr.msk.f32.mxu0 %vm406_vm0, %v65_v21  ;;  %v193_v21 = vld [vmem:[%s3418_s0 + $0x578] sm:$0xff] }
  0xd7   :  { %818 = vmatmul.mubr.f32.gmra.mrb[10].mxu1 %v60_v22  ;;  %v188_v22 = vld [vmem:[%s3418_s0 + $0x550] sm:$0xff] }
  0xd8   :  { %1268 = vmatmul.mubr.f32.gmra.mrb[10].mxu0 %v64_v23  ;;  %822 = vmatprep.mubr.f32.mxu1 %v69_v24  ;;  %v192_v23 = vld [vmem:[%s3418_s0 + $0x570] sm:$0xff]  ;;  %v197_v24 = vld [vmem:[%s3418_s0 + $0x598] sm:$0xff] }
  0xd9   :  { %1546 = vmatprep.mubr.msk.f32.mxu0 %vm406_vm0, %v73_v25  ;;  %v201_v25 = vld [vmem:[%s3418_s0 + $0x5b8] sm:$0xff] }
  0xdb   :  { %823 = vmatmul.mubr.f32.gmra.mrb[12].mxu1 %v68_v26  ;;  %v196_v26 = vld [vmem:[%s3418_s0 + $0x590] sm:$0xff] }
  0xdc   :  { %1273 = vmatmul.mubr.f32.gmra.mrb[12].mxu0 %v72_v27  ;;  %827 = vmatprep.mubr.f32.mxu1 %v77_v28  ;;  %v200_v27 = vld [vmem:[%s3418_s0 + $0x5b0] sm:$0xff]  ;;  %v205_v28 = vld [vmem:[%s3418_s0 + $0x5d8] sm:$0xff] }
  0xdd   :  { %1547 = vmatprep.mubr.msk.f32.mxu0 %vm406_vm0, %v81_v29  ;;  %v209_v29 = vld [vmem:[%s3418_s0 + $0x5f8] sm:$0xff] }
  0xdf   :  { %828 = vmatmul.mubr.f32.gmra.mrb[14].mxu1 %v76_v30  ;;  %v204_v30 = vld [vmem:[%s3418_s0 + $0x5d0] sm:$0xff] }
  0xe0   :  { %1278 = vmatmul.mubr.f32.gmra.mrb[14].mxu0 %v80_v31  ;;  %832 = vmatprep.mubr.f32.mxu1 %v85_v32  ;;  %v208_v31 = vld [vmem:[%s3418_s0 + $0x5f0] sm:$0xff]  ;;  %v213_v32 = vld [vmem:[%s3418_s0 + $0x618] sm:$0xff] }
  0xe1   :  { %1548 = vmatprep.mubr.msk.f32.mxu0 %vm406_vm0, %v89_v33  ;;  %v217_v33 = vld [vmem:[%s3418_s0 + $0x638] sm:$0xff] }
  0xe3   :  { %833 = vmatmul.mubr.f32.gmra.mrb[16].mxu1 %v84_v34  ;;  %v212_v34 = vld [vmem:[%s3418_s0 + $0x610] sm:$0xff] }
  0xe4   :  { %1283 = vmatmul.mubr.f32.gmra.mrb[16].mxu0 %v88_v35  ;;  %837 = vmatprep.mubr.f32.mxu1 %v93_v36  ;;  %v216_v35 = vld [vmem:[%s3418_s0 + $0x630] sm:$0xff]  ;;  %v221_v36 = vld [vmem:[%s3418_s0 + $0x658] sm:$0xff] }
  0xe5   :  { %1549 = vmatprep.mubr.msk.f32.mxu0 %vm406_vm0, %v97_v37  ;;  %v225_v37 = vld [vmem:[%s3418_s0 + $0x678] sm:$0xff] }
  0xe7   :  { %838 = vmatmul.mubr.f32.gmra.mrb[18].mxu1 %v92_v38  ;;  %v220_v38 = vld [vmem:[%s3418_s0 + $0x650] sm:$0xff] }
  0xe8   :  { %1288 = vmatmul.mubr.f32.gmra.mrb[18].mxu0 %v96_v39  ;;  %842 = vmatprep.mubr.f32.mxu1 %v101_v40  ;;  %v224_v39 = vld [vmem:[%s3418_s0 + $0x670] sm:$0xff]  ;;  %v229_v40 = vld [vmem:[%s3418_s0 + $0x698] sm:$0xff] }
  0xe9   :  { %1550 = vmatprep.mubr.msk.f32.mxu0 %vm406_vm0, %v105_v41  ;;  %v233_v41 = vld [vmem:[%s3418_s0 + $0x6b8] sm:$0xff] }
  0xeb   :  { %843 = vmatmul.mubr.f32.gmra.mrb[20].mxu1 %v100_v42  ;;  %v228_v42 = vld [vmem:[%s3418_s0 + $0x690] sm:$0xff] }
  0xec   :  { %1293 = vmatmul.mubr.f32.gmra.mrb[20].mxu0 %v104_v43  ;;  %847 = vmatprep.mubr.f32.mxu1 %v109_v44  ;;  %v232_v43 = vld [vmem:[%s3418_s0 + $0x6b0] sm:$0xff]  ;;  %v237_v44 = vld [vmem:[%s3418_s0 + $0x6d8] sm:$0xff] }
  0xed   :  { %1551 = vmatprep.mubr.msk.f32.mxu0 %vm406_vm0, %v113_v45  ;;  %v241_v45 = vld [vmem:[%s3418_s0 + $0x6f8] sm:$0xff] }
  0xef   :  { %848 = vmatmul.mubr.f32.gmra.mrb[22].mxu1 %v108_v46  ;;  %v236_v46 = vld [vmem:[%s3418_s0 + $0x6d0] sm:$0xff] }
  0xf0   :  { %1298 = vmatmul.mubr.f32.gmra.mrb[22].mxu0 %v112_v47  ;;  %852 = vmatprep.mubr.f32.mxu1 %v117_v48  ;;  %v240_v47 = vld [vmem:[%s3418_s0 + $0x6f0] sm:$0xff]  ;;  %v245_v48 = vld [vmem:[%s3418_s0 + $0x718] sm:$0xff] }
  0xf1   :  { %1552 = vmatprep.mubr.msk.f32.mxu0 %vm406_vm0, %v121_v49  ;;  %v249_v49 = vld [vmem:[%s3418_s0 + $0x738] sm:$0xff] }
  0xf3   :  { %853 = vmatmul.mubr.f32.gmra.mrb[24].mxu1 %v116_v50  ;;  %v244_v50 = vld [vmem:[%s3418_s0 + $0x710] sm:$0xff] }
  0xf4   :  { %1303 = vmatmul.mubr.f32.gmra.mrb[24].mxu0 %v120_v51  ;;  %857 = vmatprep.mubr.f32.mxu1 %v125_v52  ;;  %v248_v51 = vld [vmem:[%s3418_s0 + $0x730] sm:$0xff]  ;;  %v253_v52 = vld [vmem:[%s3418_s0 + $0x758] sm:$0xff] }
  0xf5   :  { %1553 = vmatprep.mubr.msk.f32.mxu0 %vm406_vm0, %v129_v53  ;;  %v257_v53 = vld [vmem:[%s3418_s0 + $0x778] sm:$0xff] }
  0xf7   :  { %858 = vmatmul.mubr.f32.gmra.mrb[26].mxu1 %v124_v54  ;;  %v252_v54 = vld [vmem:[%s3418_s0 + $0x750] sm:$0xff] }
  0xf8   :  { %1308 = vmatmul.mubr.f32.gmra.mrb[26].mxu0 %v128_v55  ;;  %862 = vmatprep.mubr.f32.mxu1 %v133_v56  ;;  %v256_v55 = vld [vmem:[%s3418_s0 + $0x770] sm:$0xff]  ;;  %v261_v56 = vld [vmem:[%s3418_s0 + $0x798] sm:$0xff] }
  0xf9   :  { %1554 = vmatprep.mubr.msk.f32.mxu0 %vm406_vm0, %v137_v57  ;;  %v265_v57 = vld [vmem:[%s3418_s0 + $0x7b8] sm:$0xff] }
  0xfb   :  { %863 = vmatmul.mubr.f32.gmra.mrb[28].mxu1 %v132_v58  ;;  %v260_v58 = vld [vmem:[%s3418_s0 + $0x790] sm:$0xff] }
  0xfc   :  { %1313 = vmatmul.mubr.f32.gmra.mrb[28].mxu0 %v136_v59  ;;  %867 = vmatprep.mubr.f32.mxu1 %v141_v60  ;;  %v264_v59 = vld [vmem:[%s3418_s0 + $0x7b0] sm:$0xff]  ;;  %v269_v60 = vld [vmem:[%s3418_s0 + $0x7d8] sm:$0x3] }
  0xfd   :  { %1555 = vmatprep.mubr.msk.f32.mxu0 %vm406_vm0, %v145_v61  ;;  %v273_v61 = vld [vmem:[%s3418_s0 + $0x7f8] sm:$0x3] }
  0xff   :  { %868 = vmatmul.mubr.f32.gmra.mrb[30].mxu1 %v140_v62  ;;  %v268_v62 = vld [vmem:[%s3418_s0 + $0x7d0] sm:$0x3] }
 0x100   :  { %1318 = vmatmul.mubr.f32.gmra.mrb[30].mxu0 %v144_v63  ;;  %872 = vmatprep.mubr.f32.mxu1 %v149_v1  ;;  %v272_v63 = vld [vmem:[%s3418_s0 + $0x7f0] sm:$0x3]  ;;  %v3219_v1 = vld [vmem:[%s3419_s2] ss:$0 sm:$0xff] }
 0x101   :  { %1556 = vmatprep.mubr.msk.f32.mxu0 %vm406_vm0, %v153_v2 }
 0x103   :  { %873 = vmatmul.mubr.f32.gmra.mrb[32].mxu1 %v148_v3 }
 0x104   :  { %1323 = vmatmul.mubr.f32.gmra.mrb[32].mxu0 %v152_v4  ;;  %877 = vmatprep.mubr.f32.mxu1 %v157_v5 }
 0x105   :  { %1557 = vmatprep.mubr.msk.f32.mxu0 %vm406_vm0, %v161_v0  ;;  %v3225_v0 = vstv %s3420_s3 }
 0x107   :  { %878 = vmatmul.mubr.f32.gmra.mrb[34].mxu1 %v156_v6 }
 0x108   :  { %1328 = vmatmul.mubr.f32.gmra.mrb[34].mxu0 %v160_v7  ;;  %882 = vmatprep.mubr.f32.mxu1 %v165_v8 }
 0x109   :  { %1558 = vmatprep.mubr.msk.f32.mxu0 %vm406_vm0, %v169_v9 }
 0x10b   :  { %883 = vmatmul.mubr.f32.gmra.mrb[36].mxu1 %v164_v10 }
 0x10c   :  { %1333 = vmatmul.mubr.f32.gmra.mrb[36].mxu0 %v168_v11  ;;  %887 = vmatprep.mubr.f32.mxu1 %v173_v12 }
 0x10d   :  { %1559 = vmatprep.mubr.msk.f32.mxu0 %vm406_vm0, %v177_v13 }
 0x10f   :  { %888 = vmatmul.mubr.f32.gmra.mrb[38].mxu1 %v172_v14 }
 0x110   :  { %1338 = vmatmul.mubr.f32.gmra.mrb[38].mxu0 %v176_v15  ;;  %892 = vmatprep.mubr.f32.mxu1 %v181_v16 }
 0x111   :  { %1560 = vmatprep.mubr.msk.f32.mxu0 %vm406_vm0, %v185_v17 }
 0x113   :  { %893 = vmatmul.mubr.f32.gmra.mrb[40].mxu1 %v180_v18 }
 0x114   :  { %1343 = vmatmul.mubr.f32.gmra.mrb[40].mxu0 %v184_v19  ;;  %897 = vmatprep.mubr.f32.mxu1 %v189_v20 }
 0x115   :  { %1561 = vmatprep.mubr.msk.f32.mxu0 %vm406_vm0, %v193_v21 }
 0x117   :  { %898 = vmatmul.mubr.f32.gmra.mrb[42].mxu1 %v188_v22 }
 0x118   :  { %1348 = vmatmul.mubr.f32.gmra.mrb[42].mxu0 %v192_v23  ;;  %902 = vmatprep.mubr.f32.mxu1 %v197_v24 }
 0x119   :  { %1562 = vmatprep.mubr.msk.f32.mxu0 %vm406_vm0, %v201_v25 }
 0x11b   :  { %903 = vmatmul.mubr.f32.gmra.mrb[44].mxu1 %v196_v26 }
 0x11c   :  { %1353 = vmatmul.mubr.f32.gmra.mrb[44].mxu0 %v200_v27  ;;  %907 = vmatprep.mubr.f32.mxu1 %v205_v28 }
 0x11d   :  { %1563 = vmatprep.mubr.msk.f32.mxu0 %vm406_vm0, %v209_v29 }
 0x11f   :  { %908 = vmatmul.mubr.f32.gmra.mrb[46].mxu1 %v204_v30 }
 0x120   :  { %1358 = vmatmul.mubr.f32.gmra.mrb[46].mxu0 %v208_v31  ;;  %912 = vmatprep.mubr.f32.mxu1 %v213_v32 }
 0x121   :  { %1564 = vmatprep.mubr.msk.f32.mxu0 %vm406_vm0, %v217_v33 }
 0x123   :  { %913 = vmatmul.mubr.f32.gmra.mrb[48].mxu1 %v212_v34 }
 0x124   :  { %1363 = vmatmul.mubr.f32.gmra.mrb[48].mxu0 %v216_v35  ;;  %917 = vmatprep.mubr.f32.mxu1 %v221_v36 }
 0x125   :  { %1565 = vmatprep.mubr.msk.f32.mxu0 %vm406_vm0, %v225_v37 }
 0x127   :  { %918 = vmatmul.mubr.f32.gmra.mrb[50].mxu1 %v220_v38 }
 0x128   :  { %1368 = vmatmul.mubr.f32.gmra.mrb[50].mxu0 %v224_v39  ;;  %922 = vmatprep.mubr.f32.mxu1 %v229_v40 }
 0x129   :  { %1566 = vmatprep.mubr.msk.f32.mxu0 %vm406_vm0, %v233_v41 }
 0x12b   :  { %923 = vmatmul.mubr.f32.gmra.mrb[52].mxu1 %v228_v42 }
 0x12c   :  { %1373 = vmatmul.mubr.f32.gmra.mrb[52].mxu0 %v232_v43  ;;  %927 = vmatprep.mubr.f32.mxu1 %v237_v44 }
 0x12d   :  { %1567 = vmatprep.mubr.msk.f32.mxu0 %vm406_vm0, %v241_v45 }
 0x12f   :  { %928 = vmatmul.mubr.f32.gmra.mrb[54].mxu1 %v236_v46 }
 0x130   :  { %1378 = vmatmul.mubr.f32.gmra.mrb[54].mxu0 %v240_v47  ;;  %932 = vmatprep.mubr.f32.mxu1 %v245_v48 }
 0x131   :  { %1568 = vmatprep.mubr.msk.f32.mxu0 %vm406_vm0, %v249_v49 }
 0x133   :  { %933 = vmatmul.mubr.f32.gmra.mrb[56].mxu1 %v244_v50 }
 0x134   :  { %1383 = vmatmul.mubr.f32.gmra.mrb[56].mxu0 %v248_v51  ;;  %937 = vmatprep.mubr.f32.mxu1 %v253_v52 }
 0x135   :  { %1569 = vmatprep.mubr.msk.f32.mxu0 %vm406_vm0, %v257_v53 }
 0x137   :  { %938 = vmatmul.mubr.f32.gmra.mrb[58].mxu1 %v252_v54 }
 0x138   :  { %1388 = vmatmul.mubr.f32.gmra.mrb[58].mxu0 %v256_v55  ;;  %942 = vmatprep.mubr.f32.mxu1 %v261_v56 }
 0x139   :  { %1570 = vmatprep.mubr.msk.f32.mxu0 %vm406_vm0, %v265_v57 }
 0x13b   :  { %943 = vmatmul.mubr.f32.gmra.mrb[60].mxu1 %v260_v58 }
 0x13c   :  { %1393 = vmatmul.mubr.f32.gmra.mrb[60].mxu0 %v264_v59  ;;  %947 = vmatprep.mubr.f32.mxu1 %v269_v60 }
 0x13d   :  { %1571 = vmatprep.mubr.msk.f32.mxu0 %vm406_vm0, %v273_v61 }
 0x13f   :  { %948 = vmatmul.mubr.f32.gmra.mrb[62].mxu1 %v268_v62 }
 0x140   :  { %1398 = vmatmul.mubr.f32.gmra.mrb[62].mxu0 %v272_v63 }
 0x196   :  { %v794_v2 = vpop.f32.mrb[0].mxu1 }
 0x197   :  { %v1758_v3 = vadd.f32 %v3219_v1, %v794_v2  ;;  %v1244_v4 = vpop.f32.mrb[0].mxu0  ;;  %v796_v5 = vpop.f32.mrb[1].mxu1 }
 0x198   :  { %v1246_v6 = vpop.f32.mrb[1].mxu0 }
 0x199   :  { %v1759_v7 = vadd.f32 %v1758_v3, %v1244_v4 }
 0x19a   :  { %v799_v8 = vpop.f32.mrb[2].mxu1 }
 0x19b   :  { %vm1404_vm1 = vcmp.ge.f32.partialorder %v1759_v7, 0.0  ;;  %v1437_v9 = vmul.f32 %v1759_v7, %v3225_v0  ;;  %v1760_v10 = vadd.f32 %v3219_v1, %v799_v8  ;;  %v1249_v11 = vpop.f32.mrb[2].mxu0  ;;  %v801_v12 = vpop.f32.mrb[3].mxu1 }
 0x19c   :  { %v1251_v13 = vpop.f32.mrb[3].mxu0 }
 0x19d   :  { %v1469_v14 = vsel %vm1404_vm1, %v1759_v7, %v1437_v9  ;;  %v1761_v15 = vadd.f32 %v1760_v10, %v1249_v11 }
 0x19e   :  { %1502 = vst.msk [vmem:[%s3421_s4] sm:$0xff] %vm1501_vm2, %v1469_v14  ;;  %v804_v16 = vpop.f32.mrb[4].mxu1 }
 0x19f   :  { %vm1405_vm3 = vcmp.ge.f32.partialorder %v1761_v15, 0.0  ;;  %v1438_v17 = vmul.f32 %v1761_v15, %v3225_v0  ;;  %v1762_v18 = vadd.f32 %v3219_v1, %v804_v16  ;;  %v1254_v19 = vpop.f32.mrb[4].mxu0  ;;  %v806_v20 = vpop.f32.mrb[5].mxu1 }
 0x1a0   :  { %v1256_v21 = vpop.f32.mrb[5].mxu0 }
 0x1a1   :  { %v1470_v22 = vsel %vm1405_vm3, %v1761_v15, %v1438_v17  ;;  %v1763_v23 = vadd.f32 %v1762_v18, %v1254_v19 }
 0x1a2   :  { %1503 = vst.msk [vmem:[%s3421_s4 + $0x8] sm:$0xff] %vm1501_vm2, %v1470_v22  ;;  %v809_v24 = vpop.f32.mrb[6].mxu1 }
 0x1a3   :  { %vm1406_vm4 = vcmp.ge.f32.partialorder %v1763_v23, 0.0  ;;  %v1439_v25 = vmul.f32 %v1763_v23, %v3225_v0  ;;  %v1764_v26 = vadd.f32 %v3219_v1, %v809_v24  ;;  %v1259_v27 = vpop.f32.mrb[6].mxu0  ;;  %v811_v28 = vpop.f32.mrb[7].mxu1 }
 0x1a4   :  { %v1261_v29 = vpop.f32.mrb[7].mxu0 }
 0x1a5   :  { %v1471_v30 = vsel %vm1406_vm4, %v1763_v23, %v1439_v25  ;;  %v1765_v31 = vadd.f32 %v1764_v26, %v1259_v27 }
 0x1a6   :  { %1504 = vst.msk [vmem:[%s3421_s4 + $0x10] sm:$0xff] %vm1501_vm2, %v1471_v30  ;;  %v814_v32 = vpop.f32.mrb[8].mxu1 }
 0x1a7   :  { %vm1407_vm5 = vcmp.ge.f32.partialorder %v1765_v31, 0.0  ;;  %v1440_v33 = vmul.f32 %v1765_v31, %v3225_v0  ;;  %v1766_v34 = vadd.f32 %v3219_v1, %v814_v32  ;;  %v1264_v35 = vpop.f32.mrb[8].mxu0  ;;  %v816_v36 = vpop.f32.mrb[9].mxu1 }
 0x1a8   :  { %v1266_v37 = vpop.f32.mrb[9].mxu0 }
 0x1a9   :  { %v1472_v38 = vsel %vm1407_vm5, %v1765_v31, %v1440_v33  ;;  %v1767_v39 = vadd.f32 %v1766_v34, %v1264_v35 }
 0x1aa   :  { %1505 = vst.msk [vmem:[%s3421_s4 + $0x18] sm:$0xff] %vm1501_vm2, %v1472_v38  ;;  %v819_v40 = vpop.f32.mrb[10].mxu1 }
 0x1ab   :  { %vm1408_vm6 = vcmp.ge.f32.partialorder %v1767_v39, 0.0  ;;  %v1441_v41 = vmul.f32 %v1767_v39, %v3225_v0  ;;  %v1768_v42 = vadd.f32 %v3219_v1, %v819_v40  ;;  %v1269_v43 = vpop.f32.mrb[10].mxu0  ;;  %v821_v44 = vpop.f32.mrb[11].mxu1 }
 0x1ac   :  { %v1271_v45 = vpop.f32.mrb[11].mxu0 }
 0x1ad   :  { %v1473_v46 = vsel %vm1408_vm6, %v1767_v39, %v1441_v41  ;;  %v1769_v47 = vadd.f32 %v1768_v42, %v1269_v43 }
 0x1ae   :  { %1506 = vst.msk [vmem:[%s3421_s4 + $0x20] sm:$0xff] %vm1501_vm2, %v1473_v46  ;;  %v824_v48 = vpop.f32.mrb[12].mxu1 }
 0x1af   :  { %vm1409_vm7 = vcmp.ge.f32.partialorder %v1769_v47, 0.0  ;;  %v1442_v49 = vmul.f32 %v1769_v47, %v3225_v0  ;;  %v1770_v50 = vadd.f32 %v3219_v1, %v824_v48  ;;  %v1274_v51 = vpop.f32.mrb[12].mxu0  ;;  %v826_v52 = vpop.f32.mrb[13].mxu1 }
 0x1b0   :  { %v1276_v53 = vpop.f32.mrb[13].mxu0 }
 0x1b1   :  { %v1474_v54 = vsel %vm1409_vm7, %v1769_v47, %v1442_v49  ;;  %v1771_v55 = vadd.f32 %v1770_v50, %v1274_v51 }
 0x1b2   :  { %1507 = vst.msk [vmem:[%s3421_s4 + $0x28] sm:$0xff] %vm1501_vm2, %v1474_v54  ;;  %v829_v56 = vpop.f32.mrb[14].mxu1 }
 0x1b3   :  { %vm1410_vm8 = vcmp.ge.f32.partialorder %v1771_v55, 0.0  ;;  %v1443_v57 = vmul.f32 %v1771_v55, %v3225_v0  ;;  %v1772_v58 = vadd.f32 %v3219_v1, %v829_v56  ;;  %v1279_v59 = vpop.f32.mrb[14].mxu0  ;;  %v831_v60 = vpop.f32.mrb[15].mxu1 }
 0x1b4   :  { %v1281_v61 = vpop.f32.mrb[15].mxu0 }
 0x1b5   :  { %v1475_v62 = vsel %vm1410_vm8, %v1771_v55, %v1443_v57  ;;  %v1773_v63 = vadd.f32 %v1772_v58, %v1279_v59 }
 0x1b6   :  { %1508 = vst.msk [vmem:[%s3421_s4 + $0x30] sm:$0xff] %vm1501_vm2, %v1475_v62  ;;  %v834_v2 = vpop.f32.mrb[16].mxu1 }
 0x1b7   :  { %vm1411_vm9 = vcmp.ge.f32.partialorder %v1773_v63, 0.0  ;;  %v1444_v3 = vmul.f32 %v1773_v63, %v3225_v0  ;;  %v1774_v4 = vadd.f32 %v3219_v1, %v834_v2  ;;  %v1284_v5 = vpop.f32.mrb[16].mxu0  ;;  %v836_v6 = vpop.f32.mrb[17].mxu1 }
 0x1b8   :  { %v1286_v7 = vpop.f32.mrb[17].mxu0 }
 0x1b9   :  { %v1476_v8 = vsel %vm1411_vm9, %v1773_v63, %v1444_v3  ;;  %v1775_v9 = vadd.f32 %v1774_v4, %v1284_v5 }
 0x1ba   :  { %1509 = vst.msk [vmem:[%s3421_s4 + $0x38] sm:$0xff] %vm1501_vm2, %v1476_v8  ;;  %v839_v10 = vpop.f32.mrb[18].mxu1 }
 0x1bb   :  { %vm1412_vm10 = vcmp.ge.f32.partialorder %v1775_v9, 0.0  ;;  %v1445_v11 = vmul.f32 %v1775_v9, %v3225_v0  ;;  %v1776_v12 = vadd.f32 %v3219_v1, %v839_v10  ;;  %v1289_v13 = vpop.f32.mrb[18].mxu0  ;;  %v841_v14 = vpop.f32.mrb[19].mxu1 }
 0x1bc   :  { %v1291_v15 = vpop.f32.mrb[19].mxu0 }
 0x1bd   :  { %v1477_v16 = vsel %vm1412_vm10, %v1775_v9, %v1445_v11  ;;  %v1777_v17 = vadd.f32 %v1776_v12, %v1289_v13 }
 0x1be   :  { %1510 = vst.msk [vmem:[%s3421_s4 + $0x40] sm:$0xff] %vm1501_vm2, %v1477_v16  ;;  %v844_v18 = vpop.f32.mrb[20].mxu1 }
 0x1bf   :  { %vm1413_vm11 = vcmp.ge.f32.partialorder %v1777_v17, 0.0  ;;  %v1446_v19 = vmul.f32 %v1777_v17, %v3225_v0  ;;  %v1778_v20 = vadd.f32 %v3219_v1, %v844_v18  ;;  %v1294_v21 = vpop.f32.mrb[20].mxu0  ;;  %v846_v22 = vpop.f32.mrb[21].mxu1 }
 0x1c0   :  { %v1296_v23 = vpop.f32.mrb[21].mxu0 }
 0x1c1   :  { %v1478_v24 = vsel %vm1413_vm11, %v1777_v17, %v1446_v19  ;;  %v1779_v25 = vadd.f32 %v1778_v20, %v1294_v21 }
 0x1c2   :  { %1511 = vst.msk [vmem:[%s3421_s4 + $0x48] sm:$0xff] %vm1501_vm2, %v1478_v24  ;;  %v849_v26 = vpop.f32.mrb[22].mxu1 }
 0x1c3   :  { %vm1414_vm12 = vcmp.ge.f32.partialorder %v1779_v25, 0.0  ;;  %v1447_v27 = vmul.f32 %v1779_v25, %v3225_v0  ;;  %v1780_v28 = vadd.f32 %v3219_v1, %v849_v26  ;;  %v1299_v29 = vpop.f32.mrb[22].mxu0  ;;  %v851_v30 = vpop.f32.mrb[23].mxu1 }
 0x1c4   :  { %v1301_v31 = vpop.f32.mrb[23].mxu0 }
 0x1c5   :  { %v1479_v32 = vsel %vm1414_vm12, %v1779_v25, %v1447_v27  ;;  %v1781_v33 = vadd.f32 %v1780_v28, %v1299_v29 }
 0x1c6   :  { %1512 = vst.msk [vmem:[%s3421_s4 + $0x50] sm:$0xff] %vm1501_vm2, %v1479_v32  ;;  %v854_v34 = vpop.f32.mrb[24].mxu1 }
 0x1c7   :  { %vm1415_vm13 = vcmp.ge.f32.partialorder %v1781_v33, 0.0  ;;  %v1448_v35 = vmul.f32 %v1781_v33, %v3225_v0  ;;  %v1782_v36 = vadd.f32 %v3219_v1, %v854_v34  ;;  %v1304_v37 = vpop.f32.mrb[24].mxu0  ;;  %v856_v38 = vpop.f32.mrb[25].mxu1 }
 0x1c8   :  { %v1306_v39 = vpop.f32.mrb[25].mxu0 }
 0x1c9   :  { %v1480_v40 = vsel %vm1415_vm13, %v1781_v33, %v1448_v35  ;;  %v1783_v41 = vadd.f32 %v1782_v36, %v1304_v37 }
 0x1ca   :  { %1513 = vst.msk [vmem:[%s3421_s4 + $0x58] sm:$0xff] %vm1501_vm2, %v1480_v40  ;;  %v859_v42 = vpop.f32.mrb[26].mxu1 }
 0x1cb   :  { %vm1416_vm14 = vcmp.ge.f32.partialorder %v1783_v41, 0.0  ;;  %v1449_v43 = vmul.f32 %v1783_v41, %v3225_v0  ;;  %v1784_v44 = vadd.f32 %v3219_v1, %v859_v42  ;;  %v1309_v45 = vpop.f32.mrb[26].mxu0  ;;  %v861_v46 = vpop.f32.mrb[27].mxu1 }
 0x1cc   :  { %v1311_v47 = vpop.f32.mrb[27].mxu0 }
 0x1cd   :  { %v1481_v48 = vsel %vm1416_vm14, %v1783_v41, %v1449_v43  ;;  %v1785_v49 = vadd.f32 %v1784_v44, %v1309_v45 }
 0x1ce   :  { %1514 = vst.msk [vmem:[%s3421_s4 + $0x60] sm:$0xff] %vm1501_vm2, %v1481_v48  ;;  %v864_v50 = vpop.f32.mrb[28].mxu1 }
 0x1cf   :  { %vm1417_vm15 = vcmp.ge.f32.partialorder %v1785_v49, 0.0  ;;  %v1450_v51 = vmul.f32 %v1785_v49, %v3225_v0  ;;  %v1786_v52 = vadd.f32 %v3219_v1, %v864_v50  ;;  %v1314_v53 = vpop.f32.mrb[28].mxu0  ;;  %v866_v54 = vpop.f32.mrb[29].mxu1 }
 0x1d0   :  { %v1316_v55 = vpop.f32.mrb[29].mxu0 }
 0x1d1   :  { %v1482_v56 = vsel %vm1417_vm15, %v1785_v49, %v1450_v51  ;;  %v1787_v57 = vadd.f32 %v1786_v52, %v1314_v53 }
 0x1d2   :  { %1515 = vst.msk [vmem:[%s3421_s4 + $0x68] sm:$0xff] %vm1501_vm2, %v1482_v56  ;;  %v869_v58 = vpop.f32.mrb[30].mxu1 }
 0x1d3   :  { %vm1418_vm0 = vcmp.ge.f32.partialorder %v1787_v57, 0.0  ;;  %v1451_v59 = vmul.f32 %v1787_v57, %v3225_v0  ;;  %v1788_v60 = vadd.f32 %v3219_v1, %v869_v58  ;;  %v1319_v61 = vpop.f32.mrb[30].mxu0  ;;  %v871_v62 = vpop.f32.mrb[31].mxu1 }
 0x1d4   :  { %v1321_v63 = vpop.f32.mrb[31].mxu0 }
 0x1d5   :  { %v1483_v2 = vsel %vm1418_vm0, %v1787_v57, %v1451_v59  ;;  %v1789_v3 = vadd.f32 %v1788_v60, %v1319_v61 }
 0x1d6   :  { %1516 = vst.msk [vmem:[%s3421_s4 + $0x70] sm:$0xff] %vm1501_vm2, %v1483_v2  ;;  %v874_v4 = vpop.f32.mrb[32].mxu1 }
 0x1d7   :  { %vm1419_vm1 = vcmp.ge.f32.partialorder %v1789_v3, 0.0  ;;  %v1452_v5 = vmul.f32 %v1789_v3, %v3225_v0  ;;  %v1790_v6 = vadd.f32 %v3219_v1, %v874_v4  ;;  %v1324_v7 = vpop.f32.mrb[32].mxu0  ;;  %v876_v8 = vpop.f32.mrb[33].mxu1 }
 0x1d8   :  { %v1326_v9 = vpop.f32.mrb[33].mxu0 }
 0x1d9   :  { %v1484_v10 = vsel %vm1419_vm1, %v1789_v3, %v1452_v5  ;;  %v1791_v11 = vadd.f32 %v1790_v6, %v1324_v7 }
 0x1da   :  { %1517 = vst.msk [vmem:[%s3421_s4 + $0x78] sm:$0xff] %vm1501_vm2, %v1484_v10  ;;  %v879_v12 = vpop.f32.mrb[34].mxu1 }
 0x1db   :  { %vm1420_vm3 = vcmp.ge.f32.partialorder %v1791_v11, 0.0  ;;  %v1453_v13 = vmul.f32 %v1791_v11, %v3225_v0  ;;  %v1792_v14 = vadd.f32 %v3219_v1, %v879_v12  ;;  %v1329_v15 = vpop.f32.mrb[34].mxu0  ;;  %v881_v16 = vpop.f32.mrb[35].mxu1 }
 0x1dc   :  { %v1331_v17 = vpop.f32.mrb[35].mxu0 }
 0x1dd   :  { %v1485_v18 = vsel %vm1420_vm3, %v1791_v11, %v1453_v13  ;;  %v1793_v19 = vadd.f32 %v1792_v14, %v1329_v15 }
 0x1de   :  { %1518 = vst.msk [vmem:[%s3421_s4 + $0x80] sm:$0xff] %vm1501_vm2, %v1485_v18  ;;  %v884_v20 = vpop.f32.mrb[36].mxu1 }
 0x1df   :  { %vm1421_vm4 = vcmp.ge.f32.partialorder %v1793_v19, 0.0  ;;  %v1454_v21 = vmul.f32 %v1793_v19, %v3225_v0  ;;  %v1794_v22 = vadd.f32 %v3219_v1, %v884_v20  ;;  %v1334_v23 = vpop.f32.mrb[36].mxu0  ;;  %v886_v24 = vpop.f32.mrb[37].mxu1 }
 0x1e0   :  { %v1336_v25 = vpop.f32.mrb[37].mxu0 }
 0x1e1   :  { %v1486_v26 = vsel %vm1421_vm4, %v1793_v19, %v1454_v21  ;;  %v1795_v27 = vadd.f32 %v1794_v22, %v1334_v23  ;;  %vm1533_vm4 = vcmask 123904  }
 0x1e2   :  { %1519 = vst.msk [vmem:[%s3421_s4 + $0x88] sm:$0xff] %vm1501_vm2, %v1486_v26  ;;  %v889_v28 = vpop.f32.mrb[38].mxu1 }
 0x1e3   :  { %vm1422_vm5 = vcmp.ge.f32.partialorder %v1795_v27, 0.0  ;;  %v1455_v29 = vmul.f32 %v1795_v27, %v3225_v0  ;;  %v1796_v30 = vadd.f32 %v3219_v1, %v889_v28  ;;  %v1339_v31 = vpop.f32.mrb[38].mxu0  ;;  %v891_v32 = vpop.f32.mrb[39].mxu1 }
 0x1e4   :  { %v1341_v33 = vpop.f32.mrb[39].mxu0 }
 0x1e5   :  { %v1487_v34 = vsel %vm1422_vm5, %v1795_v27, %v1455_v29  ;;  %v1797_v35 = vadd.f32 %v1796_v30, %v1339_v31 }
 0x1e6   :  { %1520 = vst.msk [vmem:[%s3421_s4 + $0x90] sm:$0xff] %vm1501_vm2, %v1487_v34  ;;  %v894_v36 = vpop.f32.mrb[40].mxu1 }
 0x1e7   :  { %vm1423_vm6 = vcmp.ge.f32.partialorder %v1797_v35, 0.0  ;;  %v1456_v37 = vmul.f32 %v1797_v35, %v3225_v0  ;;  %v1798_v38 = vadd.f32 %v3219_v1, %v894_v36  ;;  %v1344_v39 = vpop.f32.mrb[40].mxu0  ;;  %v896_v40 = vpop.f32.mrb[41].mxu1 }
 0x1e8   :  { %v1346_v41 = vpop.f32.mrb[41].mxu0 }
 0x1e9   :  { %v1488_v42 = vsel %vm1423_vm6, %v1797_v35, %v1456_v37  ;;  %v1799_v43 = vadd.f32 %v1798_v38, %v1344_v39 }
 0x1ea   :  { %1521 = vst.msk [vmem:[%s3421_s4 + $0x98] sm:$0xff] %vm1501_vm2, %v1488_v42  ;;  %v899_v44 = vpop.f32.mrb[42].mxu1 }
 0x1eb   :  { %vm1424_vm7 = vcmp.ge.f32.partialorder %v1799_v43, 0.0  ;;  %v1457_v45 = vmul.f32 %v1799_v43, %v3225_v0  ;;  %v1800_v46 = vadd.f32 %v3219_v1, %v899_v44  ;;  %v1349_v47 = vpop.f32.mrb[42].mxu0  ;;  %v901_v48 = vpop.f32.mrb[43].mxu1 }
 0x1ec   :  { %v1351_v49 = vpop.f32.mrb[43].mxu0 }
 0x1ed   :  { %v1489_v50 = vsel %vm1424_vm7, %v1799_v43, %v1457_v45  ;;  %v1801_v51 = vadd.f32 %v1800_v46, %v1349_v47 }
 0x1ee   :  { %1522 = vst.msk [vmem:[%s3421_s4 + $0xa0] sm:$0xff] %vm1501_vm2, %v1489_v50  ;;  %v904_v52 = vpop.f32.mrb[44].mxu1 }
 0x1ef   :  { %vm1425_vm8 = vcmp.ge.f32.partialorder %v1801_v51, 0.0  ;;  %v1458_v53 = vmul.f32 %v1801_v51, %v3225_v0  ;;  %v1802_v54 = vadd.f32 %v3219_v1, %v904_v52  ;;  %v1354_v55 = vpop.f32.mrb[44].mxu0  ;;  %v906_v56 = vpop.f32.mrb[45].mxu1 }
 0x1f0   :  { %v1356_v57 = vpop.f32.mrb[45].mxu0 }
 0x1f1   :  { %v1490_v58 = vsel %vm1425_vm8, %v1801_v51, %v1458_v53  ;;  %v1803_v59 = vadd.f32 %v1802_v54, %v1354_v55 }
 0x1f2   :  { %1523 = vst.msk [vmem:[%s3421_s4 + $0xa8] sm:$0xff] %vm1501_vm2, %v1490_v58  ;;  %v909_v60 = vpop.f32.mrb[46].mxu1 }
 0x1f3   :  { %vm1426_vm9 = vcmp.ge.f32.partialorder %v1803_v59, 0.0  ;;  %v1459_v61 = vmul.f32 %v1803_v59, %v3225_v0  ;;  %v1804_v62 = vadd.f32 %v3219_v1, %v909_v60  ;;  %v1359_v63 = vpop.f32.mrb[46].mxu0  ;;  %v911_v2 = vpop.f32.mrb[47].mxu1 }
 0x1f4   :  { %v1361_v3 = vpop.f32.mrb[47].mxu0 }
 0x1f5   :  { %v1491_v4 = vsel %vm1426_vm9, %v1803_v59, %v1459_v61  ;;  %v1805_v5 = vadd.f32 %v1804_v62, %v1359_v63 }
 0x1f6   :  { %1524 = vst.msk [vmem:[%s3421_s4 + $0xb0] sm:$0xff] %vm1501_vm2, %v1491_v4  ;;  %v914_v6 = vpop.f32.mrb[48].mxu1 }
 0x1f7   :  { %vm1427_vm10 = vcmp.ge.f32.partialorder %v1805_v5, 0.0  ;;  %v1460_v7 = vmul.f32 %v1805_v5, %v3225_v0  ;;  %v1806_v8 = vadd.f32 %v3219_v1, %v914_v6  ;;  %v1364_v9 = vpop.f32.mrb[48].mxu0  ;;  %v916_v10 = vpop.f32.mrb[49].mxu1 }
 0x1f8   :  { %v1366_v11 = vpop.f32.mrb[49].mxu0 }
 0x1f9   :  { %v1492_v12 = vsel %vm1427_vm10, %v1805_v5, %v1460_v7  ;;  %v1807_v13 = vadd.f32 %v1806_v8, %v1364_v9 }
 0x1fa   :  { %1525 = vst.msk [vmem:[%s3421_s4 + $0xb8] sm:$0xff] %vm1501_vm2, %v1492_v12  ;;  %v919_v14 = vpop.f32.mrb[50].mxu1 }
 0x1fb   :  { %vm1428_vm11 = vcmp.ge.f32.partialorder %v1807_v13, 0.0  ;;  %v1461_v15 = vmul.f32 %v1807_v13, %v3225_v0  ;;  %v1808_v16 = vadd.f32 %v3219_v1, %v919_v14  ;;  %v1369_v17 = vpop.f32.mrb[50].mxu0  ;;  %v921_v18 = vpop.f32.mrb[51].mxu1 }
 0x1fc   :  { %v1371_v19 = vpop.f32.mrb[51].mxu0 }
 0x1fd   :  { %v1493_v20 = vsel %vm1428_vm11, %v1807_v13, %v1461_v15  ;;  %v1809_v21 = vadd.f32 %v1808_v16, %v1369_v17 }
 0x1fe   :  { %1526 = vst.msk [vmem:[%s3421_s4 + $0xc0] sm:$0xff] %vm1501_vm2, %v1493_v20  ;;  %v924_v22 = vpop.f32.mrb[52].mxu1 }
 0x1ff   :  { %vm1429_vm12 = vcmp.ge.f32.partialorder %v1809_v21, 0.0  ;;  %v1462_v23 = vmul.f32 %v1809_v21, %v3225_v0  ;;  %v1810_v24 = vadd.f32 %v3219_v1, %v924_v22  ;;  %v1374_v25 = vpop.f32.mrb[52].mxu0  ;;  %v926_v26 = vpop.f32.mrb[53].mxu1 }
 0x200   :  { %v1376_v27 = vpop.f32.mrb[53].mxu0 }
 0x201   :  { %v1494_v28 = vsel %vm1429_vm12, %v1809_v21, %v1462_v23  ;;  %v1811_v29 = vadd.f32 %v1810_v24, %v1374_v25 }
 0x202   :  { %1527 = vst.msk [vmem:[%s3421_s4 + $0xc8] sm:$0xff] %vm1501_vm2, %v1494_v28  ;;  %v929_v30 = vpop.f32.mrb[54].mxu1 }
 0x203   :  { %vm1430_vm13 = vcmp.ge.f32.partialorder %v1811_v29, 0.0  ;;  %v1463_v31 = vmul.f32 %v1811_v29, %v3225_v0  ;;  %v1812_v32 = vadd.f32 %v3219_v1, %v929_v30  ;;  %v1379_v33 = vpop.f32.mrb[54].mxu0  ;;  %v931_v34 = vpop.f32.mrb[55].mxu1 }
 0x204   :  { %v1381_v35 = vpop.f32.mrb[55].mxu0 }
 0x205   :  { %v1495_v36 = vsel %vm1430_vm13, %v1811_v29, %v1463_v31  ;;  %v1813_v37 = vadd.f32 %v1812_v32, %v1379_v33 }
 0x206   :  { %1528 = vst.msk [vmem:[%s3421_s4 + $0xd0] sm:$0xff] %vm1501_vm2, %v1495_v36  ;;  %v934_v38 = vpop.f32.mrb[56].mxu1 }
 0x207   :  { %vm1431_vm14 = vcmp.ge.f32.partialorder %v1813_v37, 0.0  ;;  %v1464_v39 = vmul.f32 %v1813_v37, %v3225_v0  ;;  %v1814_v40 = vadd.f32 %v3219_v1, %v934_v38  ;;  %v1384_v41 = vpop.f32.mrb[56].mxu0  ;;  %v936_v42 = vpop.f32.mrb[57].mxu1 }
 0x208   :  { %v1386_v43 = vpop.f32.mrb[57].mxu0 }
 0x209   :  { %v1496_v44 = vsel %vm1431_vm14, %v1813_v37, %v1464_v39  ;;  %v1815_v45 = vadd.f32 %v1814_v40, %v1384_v41 }
 0x20a   :  { %1529 = vst.msk [vmem:[%s3421_s4 + $0xd8] sm:$0xff] %vm1501_vm2, %v1496_v44  ;;  %v939_v46 = vpop.f32.mrb[58].mxu1 }
 0x20b   :  { %vm1432_vm15 = vcmp.ge.f32.partialorder %v1815_v45, 0.0  ;;  %v1465_v47 = vmul.f32 %v1815_v45, %v3225_v0  ;;  %v1816_v48 = vadd.f32 %v3219_v1, %v939_v46  ;;  %v1389_v49 = vpop.f32.mrb[58].mxu0  ;;  %v941_v50 = vpop.f32.mrb[59].mxu1 }
 0x20c   :  { %v1391_v51 = vpop.f32.mrb[59].mxu0 }
 0x20d   :  { %v1497_v52 = vsel %vm1432_vm15, %v1815_v45, %v1465_v47  ;;  %v1817_v53 = vadd.f32 %v1816_v48, %v1389_v49 }
 0x20e   :  { %1530 = vst.msk [vmem:[%s3421_s4 + $0xe0] sm:$0xff] %vm1501_vm2, %v1497_v52  ;;  %v944_v54 = vpop.f32.mrb[60].mxu1 }
 0x20f   :  { %vm1433_vm0 = vcmp.ge.f32.partialorder %v1817_v53, 0.0  ;;  %v1466_v55 = vmul.f32 %v1817_v53, %v3225_v0  ;;  %v1818_v56 = vadd.f32 %v3219_v1, %v944_v54  ;;  %v1394_v57 = vpop.f32.mrb[60].mxu0  ;;  %v946_v58 = vpop.f32.mrb[61].mxu1 }
 0x210   :  { %v1396_v59 = vpop.f32.mrb[61].mxu0 }
 0x211   :  { %v1498_v60 = vsel %vm1433_vm0, %v1817_v53, %v1466_v55  ;;  %v1819_v61 = vadd.f32 %v1818_v56, %v1394_v57 }
 0x212   :  { %1531 = vst.msk [vmem:[%s3421_s4 + $0xe8] sm:$0xff] %vm1501_vm2, %v1498_v60  ;;  %v949_v62 = vpop.f32.mrb[62].mxu1 }
 0x213   :  { %vm1434_vm1 = vcmp.ge.f32.partialorder %v1819_v61, 0.0  ;;  %v1467_v63 = vmul.f32 %v1819_v61, %v3225_v0  ;;  %v1820_v2 = vadd.f32 %v3219_v1, %v949_v62  ;;  %v1399_v3 = vpop.f32.mrb[62].mxu0  ;;  %v951_v4 = vpop.f32.mrb[63].mxu1 }
 0x214   :  { %v1401_v5 = vpop.f32.mrb[63].mxu0 }
 0x215   :  { %v1499_v6 = vsel %vm1434_vm1, %v1819_v61, %v1467_v63  ;;  %v1821_v7 = vadd.f32 %v1820_v2, %v1399_v3 }
 0x216   :  { %1532 = vst.msk [vmem:[%s3421_s4 + $0xf0] sm:$0xff] %vm1501_vm2, %v1499_v6 }
 0x217   :  { %vm1435_vm3 = vcmp.ge.f32.partialorder %v1821_v7, 0.0  ;;  %v1468_v8 = vmul.f32 %v1821_v7, %v3225_v0 }
 0x219   :  { %v1500_v9 = vsel %vm1435_vm3, %v1821_v7, %v1468_v8 }
 0x21a   :  { %1534 = vst.msk [vmem:[%s3421_s4 + $0xf8] sm:$0x3] %vm1533_vm4, %v1500_v9 }

// kernel: voxel_encoder3_forward.5
= control target key start
LH: loop header
LB: loop body
LE: loop exit
PB: predicated region body
PF: predicated region fallthrough
CT: control target
= control target key end

     0   :  { %13 = vsyncpa [#allocation4], 0  ;;  %s2779_s0 = inlined_call_operand.vmem [shape: f32[2,2000], index: 0, kind: input, shape index: {}]   ;;  %s2780_s1 = inlined_call_operand.vmem [shape: f32[2000,32], index: 1, kind: input, shape index: {}]   ;;  %s2781_s2 = inlined_call_operand.vmem [shape: f32[1,32], index: 2, kind: input, shape index: {}]   ;;  %s2782_s3 = inlined_call_operand.vmem [shape: f32[32,128], index: 3, kind: input, shape index: {}]   ;;  %s2783_s4 = inlined_call_operand.vmem [shape: f32[1,128], index: 4, kind: input, shape index: {}]   ;;  %s2784_s5 = inlined_call_operand.vmem [shape: f32[128,32], index: 5, kind: input, shape index: {}]   ;;  %s2785_s6 = inlined_call_operand.vmem [shape: f32[1,32], index: 6, kind: input, shape index: {}]   ;;  %s2786_s7 = inlined_call_operand.vmem [shape: f32[2], index: 7, kind: input, shape index: {}]   ;;  %s2787_s8 = inlined_call_operand.hbm [shape: f32[2,32], index: 8, kind: output, shape index: {}]  }
   0x1   :  { %14 = vsyncpa [#allocation3], 0  ;;  %s35_s29 = sshll.u32 %s2786_s7, 4  ;;  %s36_s29 = int_to_ptr.vmem [resolvable:$true] %s35_s29 }
   0x2   :  { %s1781_s30 = scalar_lea.vmem %s36_s29, 16  ;;  %p1786_p1 = scmp.lt.s32.totalorder %s36_s29, %s36_s29 }
   0x3   :  { %p1782_p0 = scmp.ne.s32.totalorder %s36_s29, %s1781_s30  ;;  %p1787_p2 = scmp.lt.s32.totalorder %s1781_s30, %s1781_s30 }
   0x5   :  { %p1788_p3 = por %p1787_p2, %p1786_p1 }
   0x7   :  { %p1789_p4 = pnand %p1788_p3, %p1782_p0 }
   0x9   :  { %1792 = shalt.err (!%p1789_p4)
}
   0xa   :  { %s1819_s9 = smov [#allocation2]  }
   0xb   :  { %38 = dma.vmem_to_smem %s36_s29, 16, %s1819_s9, [#allocation4]  }
   0xc   :  { %1815 = dma.done.wait [#allocation4], 16  }
   0xd   :  { %1816 = vsyncadd [#allocation4], 4294967280 }
   0xe   :  { %42 = sfence }
   0xf   :  { %v65_v0 = vld [vmem:[%s2780_s1 + $0x80] sm:$0xff]  ;;  %v66_v1 = vld [vmem:[%s2780_s1 + $0x88] sm:$0xff]  ;;  %v67_v11 = vld [vmem:[%s2780_s1 + $0x90] sm:$0xff]  ;;  %v1820_v47 = vmov 1983009808   ;;  %v314_v49 = vlaneseq  ;;  %vm393_vm0 = vcmask 654336  }
  0x10   :  { %v97_v2 = vld [vmem:[%s2780_s1 + $0x180] sm:$0xff]  ;;  %v1478_v3 = vpack.c.bf16 %v66_v1, %v65_v0  ;;  %v98_v4 = vld [vmem:[%s2780_s1 + $0x188] sm:$0xff]  ;;  %v68_v13 = vld [vmem:[%s2780_s1 + $0x98] sm:$0xff]  ;;  %v312_v48 = vunpack.c.l.s4 %v1820_v47  ;;  %vm1822_vm1 = vmmov 0   ;;  %s43_s16 = sld [smem:[#allocation2]]  ;;  %vm971_vm3 = vcmask 261120  }
  0x11   :  { %v49_v5 = vld [vmem:[%s2780_s1] sm:$0xff]  ;;  %v50_v6 = vld [vmem:[%s2780_s1 + $0x8] sm:$0xff]  ;;  %v1510_v7 = vpack.c.bf16 %v98_v4, %v97_v2  ;;  %v99_v14 = vld [vmem:[%s2780_s1 + $0x190] sm:$0xff]  ;;  %v1482_v16 = vpack.c.bf16 %v68_v13, %v67_v11  ;;  %v315_v0 = vshrl.u32 %v314_v49, 7  ;;  %vm1142_vm5 = vcmask 254976  }
  0x12   :  { %v1480_v8 = vpack.c.bf16 %v50_v6, %v49_v5  ;;  %v81_v9 = vld [vmem:[%s2780_s1 + $0x100] sm:$0xff]  ;;  %v82_v10 = vld [vmem:[%s2780_s1 + $0x108] sm:$0xff]  ;;  %1479 = vmatprep.subr.bf16.mxu0 %v1478_v3  ;;  %v100_v15 = vld [vmem:[%s2780_s1 + $0x198] sm:$0xff]  ;;  %v313_v63 = vunpack.c.0.s8 %v312_v48 }
  0x13   :  { %v1512_v12 = vpack.c.bf16 %v82_v10, %v81_v9  ;;  %1511 = vmatprep.subr.bf16.mxu1 %v1510_v7  ;;  %v1514_v17 = vpack.c.bf16 %v100_v15, %v99_v14  ;;  %v51_v18 = vld [vmem:[%s2780_s1 + $0x10] sm:$0xff]  ;;  %v52_v19 = vld [vmem:[%s2780_s1 + $0x18] sm:$0xff]  ;;  %v69_v23 = vld [vmem:[%s2780_s1 + $0xa0] sm:$0xff] }
  0x14   :  { %1481 = vmatpush3.bf16.msra.mxu0 %v1480_v8  ;;  %v83_v20 = vld [vmem:[%s2780_s1 + $0x110] sm:$0xff]  ;;  %v1484_v21 = vpack.c.bf16 %v52_v19, %v51_v18  ;;  %v84_v22 = vld [vmem:[%s2780_s1 + $0x118] sm:$0xff]  ;;  %v70_v24 = vld [vmem:[%s2780_s1 + $0xa8] sm:$0xff]  ;;  %v2023_v13 = vsub.s32 %v313_v63, %v315_v0 }
  0x15   :  { %1513 = vmatpush3.bf16.msra.mxu1 %v1512_v12  ;;  %1483 = vmatprep.subr.bf16.mxu0 %v1482_v16  ;;  %v1516_v25 = vpack.c.bf16 %v84_v22, %v83_v20  ;;  %v1486_v26 = vpack.c.bf16 %v70_v24, %v69_v23  ;;  %v101_v27 = vld [vmem:[%s2780_s1 + $0x1a0] sm:$0xff]  ;;  %v102_v28 = vld [vmem:[%s2780_s1 + $0x1a8] sm:$0xff]  ;;  %v71_v35 = vld [vmem:[%s2780_s1 + $0xb0] sm:$0xff] }
  0x16   :  { %1515 = vmatprep.subr.bf16.mxu1 %v1514_v17  ;;  %v53_v29 = vld [vmem:[%s2780_s1 + $0x20] sm:$0xff]  ;;  %v1518_v30 = vpack.c.bf16 %v102_v28, %v101_v27  ;;  %v54_v31 = vld [vmem:[%s2780_s1 + $0x28] sm:$0xff]  ;;  %v72_v36 = vld [vmem:[%s2780_s1 + $0xb8] sm:$0xff] }
  0x17   :  { %v85_v32 = vld [vmem:[%s2780_s1 + $0x120] sm:$0xff]  ;;  %v86_v33 = vld [vmem:[%s2780_s1 + $0x128] sm:$0xff]  ;;  %v1488_v34 = vpack.c.bf16 %v54_v31, %v53_v29  ;;  %v103_v37 = vld [vmem:[%s2780_s1 + $0x1b0] sm:$0xff]  ;;  %v1490_v39 = vpack.c.bf16 %v72_v36, %v71_v35 }
  0x18   :  { %1485 = vmatpush3.bf16.msra.mxu0 %v1484_v21  ;;  %v1520_v38 = vpack.c.bf16 %v86_v33, %v85_v32  ;;  %v104_v40 = vld [vmem:[%s2780_s1 + $0x1b8] sm:$0xff]  ;;  %v55_v41 = vld [vmem:[%s2780_s1 + $0x30] sm:$0xff]  ;;  %v73_v46 = vld [vmem:[%s2780_s1 + $0xc0] sm:$0xff] }
  0x19   :  { %1517 = vmatpush3.bf16.msra.mxu1 %v1516_v25  ;;  %1487 = vmatprep.subr.bf16.mxu0 %v1486_v26  ;;  %v56_v42 = vld [vmem:[%s2780_s1 + $0x38] sm:$0xff]  ;;  %v1522_v43 = vpack.c.bf16 %v104_v40, %v103_v37  ;;  %v87_v44 = vld [vmem:[%s2780_s1 + $0x130] sm:$0xff]  ;;  %v74_v50 = vld [vmem:[%s2780_s1 + $0xc8] sm:$0xff] }
  0x1a   :  { %1519 = vmatprep.subr.bf16.mxu1 %v1518_v30  ;;  %v88_v45 = vld [vmem:[%s2780_s1 + $0x138] sm:$0xff]  ;;  %v105_v51 = vld [vmem:[%s2780_s1 + $0x1c0] sm:$0xff]  ;;  %v106_v52 = vld [vmem:[%s2780_s1 + $0x1c8] sm:$0xff]  ;;  %v1492_v53 = vpack.c.bf16 %v56_v42, %v55_v41  ;;  %v1494_v55 = vpack.c.bf16 %v74_v50, %v73_v46 }
  0x1b   :  { %v1524_v54 = vpack.c.bf16 %v88_v45, %v87_v44  ;;  %v57_v56 = vld [vmem:[%s2780_s1 + $0x40] sm:$0xff]  ;;  %v58_v57 = vld [vmem:[%s2780_s1 + $0x48] sm:$0xff]  ;;  %v1526_v59 = vpack.c.bf16 %v106_v52, %v105_v51  ;;  %v75_v61 = vld [vmem:[%s2780_s1 + $0xd0] sm:$0xff] }
  0x1c   :  { %1489 = vmatpush3.bf16.msra.mxu0 %v1488_v34  ;;  %v89_v58 = vld [vmem:[%s2780_s1 + $0x140] sm:$0xff]  ;;  %v90_v60 = vld [vmem:[%s2780_s1 + $0x148] sm:$0xff]  ;;  %v76_v62 = vld [vmem:[%s2780_s1 + $0xd8] sm:$0xff]  ;;  %v1496_v3 = vpack.c.bf16 %v58_v57, %v57_v56 }
  0x1d   :  { %1521 = vmatpush3.bf16.msra.mxu1 %v1520_v38  ;;  %1491 = vmatprep.subr.bf16.mxu0 %v1490_v39  ;;  %v107_v1 = vld [vmem:[%s2780_s1 + $0x1d0] sm:$0xff]  ;;  %v108_v2 = vld [vmem:[%s2780_s1 + $0x1d8] sm:$0xff]  ;;  %v1528_v4 = vpack.c.bf16 %v90_v60, %v89_v58  ;;  %v1498_v5 = vpack.c.bf16 %v76_v62, %v75_v61  ;;  %v77_v11 = vld [vmem:[%s2780_s1 + $0xe0] sm:$0xff] }
  0x1e   :  { %1523 = vmatprep.subr.bf16.mxu1 %v1522_v43  ;;  %v59_v6 = vld [vmem:[%s2780_s1 + $0x50] sm:$0xff]  ;;  %v60_v7 = vld [vmem:[%s2780_s1 + $0x58] sm:$0xff]  ;;  %v1530_v9 = vpack.c.bf16 %v108_v2, %v107_v1  ;;  %v78_v12 = vld [vmem:[%s2780_s1 + $0xe8] sm:$0xff] }
  0x1f   :  { %v91_v8 = vld [vmem:[%s2780_s1 + $0x150] sm:$0xff]  ;;  %v92_v10 = vld [vmem:[%s2780_s1 + $0x158] sm:$0xff]  ;;  %v109_v14 = vld [vmem:[%s2780_s1 + $0x1e0] sm:$0xff]  ;;  %v1500_v16 = vpack.c.bf16 %v60_v7, %v59_v6  ;;  %v1502_v19 = vpack.c.bf16 %v78_v12, %v77_v11 }
  0x20   :  { %1493 = vmatpush3.bf16.msra.mxu0 %v1492_v53  ;;  %v110_v15 = vld [vmem:[%s2780_s1 + $0x1e8] sm:$0xff]  ;;  %v61_v17 = vld [vmem:[%s2780_s1 + $0x60] sm:$0xff]  ;;  %v1532_v18 = vpack.c.bf16 %v92_v10, %v91_v8  ;;  %v79_v25 = vld [vmem:[%s2780_s1 + $0xf0] sm:$0xff] }
  0x21   :  { %1525 = vmatpush3.bf16.msra.mxu1 %v1524_v54  ;;  %1495 = vmatprep.subr.bf16.mxu0 %v1494_v55  ;;  %v62_v20 = vld [vmem:[%s2780_s1 + $0x68] sm:$0xff]  ;;  %v93_v21 = vld [vmem:[%s2780_s1 + $0x160] sm:$0xff]  ;;  %v1534_v23 = vpack.c.bf16 %v110_v15, %v109_v14  ;;  %v80_v26 = vld [vmem:[%s2780_s1 + $0xf8] sm:$0xff] }
  0x22   :  { %1527 = vmatprep.subr.bf16.mxu1 %v1526_v59  ;;  %v45_v22 = vld [vmem:[%s2779_s0] sm:$0xff]  ;;  %v94_v24 = vld [vmem:[%s2780_s1 + $0x168] sm:$0xff]  ;;  %v111_v29 = vld [vmem:[%s2780_s1 + $0x1f0] sm:$0xff]  ;;  %v1504_v31 = vpack.c.bf16 %v62_v20, %v61_v17  ;;  %v1506_v35 = vpack.c.bf16 %v80_v26, %v79_v25 }
  0x23   :  { %v317_v27 = vrot.slane %v45_v22, %v2023_v13  ;;  %v310_v28 = vcombine.high %v45_v22, %v45_v22  ;;  %v112_v30 = vld [vmem:[%s2780_s1 + $0x1f8] sm:$0xff]  ;;  %v1536_v34 = vpack.c.bf16 %v94_v24, %v93_v21  ;;  %v63_v36 = vld [vmem:[%s2780_s1 + $0x70] sm:$0xff]  ;;  %v129_v42 = vld [vmem:[%s2780_s1 + $0x280] sm:$0xff] }
  0x24   :  { %1497 = vmatpush3.bf16.msra.mxu0 %v1496_v3  ;;  %v64_v37 = vld [vmem:[%s2780_s1 + $0x78] sm:$0xff]  ;;  %v95_v38 = vld [vmem:[%s2780_s1 + $0x170] sm:$0xff]  ;;  %v1538_v39 = vpack.c.bf16 %v112_v30, %v111_v29  ;;  %v130_v43 = vld [vmem:[%s2780_s1 + $0x288] sm:$0xff] }
  0x25   :  { %1529 = vmatpush3.bf16.msra.mxu1 %v1528_v4  ;;  %1499 = vmatprep.subr.bf16.mxu0 %v1498_v5  ;;  %v325_v32 = vcombine.high %v317_v27, %v317_v27  ;;  %v324_v33 = vrot.slane %v310_v28, %v2023_v13  ;;  %v96_v40 = vld [vmem:[%s2780_s1 + $0x178] sm:$0xff]  ;;  %v161_v44 = vld [vmem:[%s2780_s1 + $0x380] sm:$0xff]  ;;  %v162_v45 = vld [vmem:[%s2780_s1 + $0x388] sm:$0xff]  ;;  %v1508_v46 = vpack.c.bf16 %v64_v37, %v63_v36 }
  0x26   :  { %1531 = vmatprep.subr.bf16.mxu1 %v1530_v9  ;;  %v1540_v47 = vpack.c.bf16 %v96_v40, %v95_v38  ;;  %v1542_v48 = vpack.c.bf16 %v130_v43, %v129_v42  ;;  %v113_v49 = vld [vmem:[%s2780_s1 + $0x200] sm:$0xff]  ;;  %v114_v50 = vld [vmem:[%s2780_s1 + $0x208] sm:$0xff]  ;;  %v1574_v52 = vpack.c.bf16 %v162_v45, %v161_v44  ;;  %v131_v54 = vld [vmem:[%s2780_s1 + $0x290] sm:$0xff] }
  0x27   :  { %460 = vmatprep.mubr.f32.mxu0 %v325_v32  ;;  %v326_v41 = vcombine.high %v324_v33, %v324_v33  ;;  %v145_v51 = vld [vmem:[%s2780_s1 + $0x300] sm:$0xff]  ;;  %v146_v53 = vld [vmem:[%s2780_s1 + $0x308] sm:$0xff]  ;;  %v132_v55 = vld [vmem:[%s2780_s1 + $0x298] sm:$0xff]  ;;  %v1544_v58 = vpack.c.bf16 %v114_v50, %v113_v49 }
  0x28   :  { %1501 = vmatpush3.bf16.msra.mxu0 %v1500_v16  ;;  %v163_v56 = vld [vmem:[%s2780_s1 + $0x390] sm:$0xff]  ;;  %v164_v57 = vld [vmem:[%s2780_s1 + $0x398] sm:$0xff]  ;;  %v1576_v59 = vpack.c.bf16 %v146_v53, %v145_v51  ;;  %v1546_v60 = vpack.c.bf16 %v132_v55, %v131_v54  ;;  %v133_v2 = vld [vmem:[%s2780_s1 + $0x2a0] sm:$0xff] }
  0x29   :  { %1533 = vmatpush3.bf16.msra.mxu1 %v1532_v18  ;;  %1503 = vmatprep.subr.bf16.mxu0 %v1502_v19  ;;  %v115_v61 = vld [vmem:[%s2780_s1 + $0x210] sm:$0xff]  ;;  %v116_v62 = vld [vmem:[%s2780_s1 + $0x218] sm:$0xff]  ;;  %v1578_v0 = vpack.c.bf16 %v164_v57, %v163_v56  ;;  %v134_v3 = vld [vmem:[%s2780_s1 + $0x2a8] sm:$0xff] }
  0x2a   :  { %1535 = vmatprep.subr.bf16.mxu1 %v1534_v23  ;;  %530 = vmatprep.mubr.f32.mxu1 %v326_v41  ;;  %v147_v63 = vld [vmem:[%s2780_s1 + $0x310] sm:$0xff]  ;;  %v148_v1 = vld [vmem:[%s2780_s1 + $0x318] sm:$0xff]  ;;  %v165_v4 = vld [vmem:[%s2780_s1 + $0x3a0] sm:$0xff]  ;;  %v1548_v6 = vpack.c.bf16 %v116_v62, %v115_v61  ;;  %v1550_v8 = vpack.c.bf16 %v134_v3, %v133_v2 }
  0x2b   :  { %v166_v5 = vld [vmem:[%s2780_s1 + $0x3a8] sm:$0xff]  ;;  %v1580_v7 = vpack.c.bf16 %v148_v1, %v147_v63  ;;  %v117_v9 = vld [vmem:[%s2780_s1 + $0x220] sm:$0xff]  ;;  %v135_v15 = vld [vmem:[%s2780_s1 + $0x2b0] sm:$0xff] }
  0x2c   :  { %1505 = vmatpush3.bf16.msra.mxu0 %v1504_v31  ;;  %v118_v10 = vld [vmem:[%s2780_s1 + $0x228] sm:$0xff]  ;;  %v149_v11 = vld [vmem:[%s2780_s1 + $0x320] sm:$0xff]  ;;  %v1582_v12 = vpack.c.bf16 %v166_v5, %v165_v4  ;;  %v136_v16 = vld [vmem:[%s2780_s1 + $0x2b8] sm:$0xff] }
  0x2d   :  { %1537 = vmatpush3.bf16.msra.mxu1 %v1536_v34  ;;  %1507 = vmatprep.subr.bf16.mxu0 %v1506_v35  ;;  %v150_v14 = vld [vmem:[%s2780_s1 + $0x328] sm:$0xff]  ;;  %v167_v17 = vld [vmem:[%s2780_s1 + $0x3b0] sm:$0xff]  ;;  %v168_v18 = vld [vmem:[%s2780_s1 + $0x3b8] sm:$0xff]  ;;  %v1552_v19 = vpack.c.bf16 %v118_v10, %v117_v9  ;;  %v1554_v21 = vpack.c.bf16 %v136_v16, %v135_v15 }
  0x2e   :  { %1539 = vmatprep.subr.bf16.mxu1 %v1538_v39  ;;  %v1584_v20 = vpack.c.bf16 %v150_v14, %v149_v11  ;;  %v119_v22 = vld [vmem:[%s2780_s1 + $0x230] sm:$0xff]  ;;  %v120_v23 = vld [vmem:[%s2780_s1 + $0x238] sm:$0xff]  ;;  %v1586_v25 = vpack.c.bf16 %v168_v18, %v167_v17  ;;  %v138_v28 = vld [vmem:[%s2780_s1 + $0x2c8] sm:$0xff] }
  0x2f   :  { %v151_v24 = vld [vmem:[%s2780_s1 + $0x330] sm:$0xff]  ;;  %v152_v26 = vld [vmem:[%s2780_s1 + $0x338] sm:$0xff]  ;;  %v169_v29 = vld [vmem:[%s2780_s1 + $0x3c0] sm:$0xff]  ;;  %v1556_v32 = vpack.c.bf16 %v120_v23, %v119_v22 }
  0x30   :  { %1509 = vmatpush3.bf16.msra.mxu0 %v1508_v46  ;;  %v170_v30 = vld [vmem:[%s2780_s1 + $0x3c8] sm:$0xff]  ;;  %v1588_v35 = vpack.c.bf16 %v152_v26, %v151_v24  ;;  %v121_v37 = vld [vmem:[%s2780_s1 + $0x240] sm:$0xff]  ;;  %v139_v42 = vld [vmem:[%s2780_s1 + $0x2d0] sm:$0xff] }
  0x31   :  { %1541 = vmatpush3.bf16.msra.mxu1 %v1540_v47  ;;  %1543 = vmatprep.subr.bf16.mxu0 %v1542_v48  ;;  %v46_v31 = vld [vmem:[%s2779_s0 + $0x8] sm:$0xff]  ;;  %v153_v39 = vld [vmem:[%s2780_s1 + $0x340] sm:$0xff]  ;;  %v1590_v40 = vpack.c.bf16 %v170_v30, %v169_v29  ;;  %v140_v43 = vld [vmem:[%s2780_s1 + $0x2d8] sm:$0xff] }
  0x32   :  { %1575 = vmatprep.subr.bf16.mxu1 %v1574_v52  ;;  %v327_v34 = vcombine.high %v46_v31, %v46_v31  ;;  %v122_v38 = vld [vmem:[%s2780_s1 + $0x248] sm:$0xff]  ;;  %v171_v46 = vld [vmem:[%s2780_s1 + $0x3d0] sm:$0xff]  ;;  %v172_v47 = vld [vmem:[%s2780_s1 + $0x3d8] sm:$0xff]  ;;  %v1562_v51 = vpack.c.bf16 %v140_v43, %v139_v42 }
  0x33   :  { %461 = vmatmul.mubr.f32.vlgmr.msra.gmra.mrb[0].mxu0 %v317_v27  ;;  %v137_v27 = vld [vmem:[%s2780_s1 + $0x2c0] sm:$0xff]  ;;  %v154_v41 = vld [vmem:[%s2780_s1 + $0x348] sm:$0xff]  ;;  %v1560_v48 = vpack.c.bf16 %v122_v38, %v121_v37  ;;  %v123_v52 = vld [vmem:[%s2780_s1 + $0x250] sm:$0xff]  ;;  %v1594_v55 = vpack.c.bf16 %v172_v47, %v171_v46 }
  0x34   :  { %531 = vmatmul.mubr.f32.vlgmr.msra.gmra.mrb[0].mxu1 %v324_v33  ;;  %1545 = vmatpush3.bf16.msra.mxu0 %v1544_v58  ;;  %v2184_v33 = vrot.slane %v46_v31, %v2023_v13  ;;  %v1558_v36 = vpack.c.bf16 %v138_v28, %v137_v27  ;;  %v2207_v45 = vrot.slane %v327_v34, %v2023_v13  ;;  %v124_v53 = vld [vmem:[%s2780_s1 + $0x258] sm:$0xff]  ;;  %v155_v54 = vld [vmem:[%s2780_s1 + $0x350] sm:$0xff]  ;;  %v141_v57 = vld [vmem:[%s2780_s1 + $0x2e0] sm:$0xff] }
  0x35   :  { %1577 = vmatpush3.bf16.msra.mxu1 %v1576_v59  ;;  %1547 = vmatprep.subr.bf16.mxu0 %v1546_v60  ;;  %v1592_v50 = vpack.c.bf16 %v154_v41, %v153_v39  ;;  %v156_v56 = vld [vmem:[%s2780_s1 + $0x358] sm:$0xff]  ;;  %v142_v58 = vld [vmem:[%s2780_s1 + $0x2e8] sm:$0xff]  ;;  %v173_v59 = vld [vmem:[%s2780_s1 + $0x3e0] sm:$0xff]  ;;  %v1564_v61 = vpack.c.bf16 %v124_v53, %v123_v52 }
  0x36   :  { %1579 = vmatprep.subr.bf16.mxu1 %v1578_v0  ;;  %v342_v44 = vcombine.high %v2184_v33, %v2184_v33  ;;  %v343_v49 = vcombine.high %v2207_v45, %v2207_v45  ;;  %v174_v60 = vld [vmem:[%s2780_s1 + $0x3e8] sm:$0xff]  ;;  %v1596_v62 = vpack.c.bf16 %v156_v56, %v155_v54  ;;  %v1566_v63 = vpack.c.bf16 %v142_v58, %v141_v57  ;;  %v125_v0 = vld [vmem:[%s2780_s1 + $0x260] sm:$0xff]  ;;  %v143_v5 = vld [vmem:[%s2780_s1 + $0x2f0] sm:$0xff] }
  0x37   :  { %v126_v1 = vld [vmem:[%s2780_s1 + $0x268] sm:$0xff]  ;;  %v157_v2 = vld [vmem:[%s2780_s1 + $0x360] sm:$0xff]  ;;  %v1598_v3 = vpack.c.bf16 %v174_v60, %v173_v59  ;;  %v128_v14 = vld [vmem:[%s2780_s1 + $0x278] sm:$0xff] }
  0x38   :  { %1549 = vmatpush3.bf16.msra.mxu0 %v1548_v6  ;;  %600 = vmatprep.mubr.f32.mxu0 %v342_v44  ;;  %v158_v4 = vld [vmem:[%s2780_s1 + $0x368] sm:$0xff]  ;;  %v144_v6 = vld [vmem:[%s2780_s1 + $0x2f8] sm:$0xff]  ;;  %v1568_v9 = vpack.c.bf16 %v126_v1, %v125_v0  ;;  %v159_v15 = vld [vmem:[%s2780_s1 + $0x370] sm:$0xff] }
  0x39   :  { %1581 = vmatpush3.bf16.msra.mxu1 %v1580_v7  ;;  %1551 = vmatprep.subr.bf16.mxu0 %v1550_v8  ;;  %v175_v7 = vld [vmem:[%s2780_s1 + $0x3f0] sm:$0xff]  ;;  %v176_v8 = vld [vmem:[%s2780_s1 + $0x3f8] sm:$0xff]  ;;  %v1600_v10 = vpack.c.bf16 %v158_v4, %v157_v2  ;;  %v1570_v11 = vpack.c.bf16 %v144_v6, %v143_v5  ;;  %v193_v18 = vld [vmem:[%s2780_s1 + $0x480] sm:$0xff] }
  0x3a   :  { %1583 = vmatprep.subr.bf16.mxu1 %v1582_v12  ;;  %670 = vmatprep.mubr.f32.mxu1 %v343_v49  ;;  %v127_v12 = vld [vmem:[%s2780_s1 + $0x270] sm:$0xff]  ;;  %v1602_v16 = vpack.c.bf16 %v176_v8, %v175_v7  ;;  %v160_v17 = vld [vmem:[%s2780_s1 + $0x378] sm:$0xff]  ;;  %v177_v23 = vld [vmem:[%s2780_s1 + $0x400] sm:$0xff] }
  0x3b   :  { %v1572_v22 = vpack.c.bf16 %v128_v14, %v127_v12  ;;  %v1604_v24 = vpack.c.bf16 %v160_v17, %v159_v15  ;;  %v178_v26 = vld [vmem:[%s2780_s1 + $0x408] sm:$0xff]  ;;  %v209_v27 = vld [vmem:[%s2780_s1 + $0x500] sm:$0xff]  ;;  %v195_v30 = vld [vmem:[%s2780_s1 + $0x490] sm:$0xff] }
  0x3c   :  { %1553 = vmatpush3.bf16.msra.mxu0 %v1552_v19  ;;  %v194_v19 = vld [vmem:[%s2780_s1 + $0x488] sm:$0xff]  ;;  %v196_v31 = vld [vmem:[%s2780_s1 + $0x498] sm:$0xff]  ;;  %v47_v37 = vld [vmem:[%s2779_s0 + $0x10] sm:$0xff] }
  0x3d   :  { %1585 = vmatpush3.bf16.msra.mxu1 %v1584_v20  ;;  %1555 = vmatprep.subr.bf16.mxu0 %v1554_v21  ;;  %v225_v20 = vld [vmem:[%s2780_s1 + $0x580] sm:$0xff]  ;;  %v226_v21 = vld [vmem:[%s2780_s1 + $0x588] sm:$0xff]  ;;  %v228_v34 = vld [vmem:[%s2780_s1 + $0x598] sm:$0xff]  ;;  %v1610_v38 = vpack.c.bf16 %v196_v31, %v195_v30  ;;  %v2326_v42 = vrot.slane %v47_v37, %v2023_v13  ;;  %v344_v43 = vcombine.high %v47_v37, %v47_v37 }
  0x3e   :  { %1587 = vmatprep.subr.bf16.mxu1 %v1586_v25  ;;  %v1606_v25 = vpack.c.bf16 %v194_v19, %v193_v18  ;;  %v210_v28 = vld [vmem:[%s2780_s1 + $0x508] sm:$0xff]  ;;  %v1638_v29 = vpack.c.bf16 %v226_v21, %v225_v20  ;;  %v179_v39 = vld [vmem:[%s2780_s1 + $0x410] sm:$0xff]  ;;  %v212_v46 = vld [vmem:[%s2780_s1 + $0x518] sm:$0xff] }
  0x3f   :  { %v211_v41 = vld [vmem:[%s2780_s1 + $0x510] sm:$0xff]  ;;  %v197_v47 = vld [vmem:[%s2780_s1 + $0x4a0] sm:$0xff]  ;;  %v2347_v52 = vrot.slane %v344_v43, %v2023_v13  ;;  %v182_v56 = vld [vmem:[%s2780_s1 + $0x428] sm:$0xff] }
  0x40   :  { %1557 = vmatpush3.bf16.msra.mxu0 %v1556_v32  ;;  %v227_v32 = vld [vmem:[%s2780_s1 + $0x590] sm:$0xff]  ;;  %v229_v49 = vld [vmem:[%s2780_s1 + $0x5a0] sm:$0xff]  ;;  %v214_v59 = vld [vmem:[%s2780_s1 + $0x528] sm:$0xff] }
  0x41   :  { %1589 = vmatpush3.bf16.msra.mxu1 %v1588_v35  ;;  %1559 = vmatprep.subr.bf16.mxu0 %v1558_v36  ;;  %v1608_v35 = vpack.c.bf16 %v178_v26, %v177_v23  ;;  %v1640_v36 = vpack.c.bf16 %v210_v28, %v209_v27  ;;  %v1642_v44 = vpack.c.bf16 %v228_v34, %v227_v32  ;;  %v213_v57 = vld [vmem:[%s2780_s1 + $0x520] sm:$0xff]  ;;  %v199_v60 = vld [vmem:[%s2780_s1 + $0x4b0] sm:$0xff]  ;;  %v184_v4 = vld [vmem:[%s2780_s1 + $0x438] sm:$0xff] }
  0x42   :  { %1591 = vmatprep.subr.bf16.mxu1 %v1590_v40  ;;  %v180_v40 = vld [vmem:[%s2780_s1 + $0x418] sm:$0xff]  ;;  %v1648_v1 = vpack.c.bf16 %v214_v59, %v213_v57  ;;  %v215_v5 = vld [vmem:[%s2780_s1 + $0x530] sm:$0xff]  ;;  %v201_v8 = vld [vmem:[%s2780_s1 + $0x4c0] sm:$0xff] }
  0x43   :  { %v1612_v53 = vpack.c.bf16 %v180_v40, %v179_v39  ;;  %v216_v7 = vld [vmem:[%s2780_s1 + $0x538] sm:$0xff]  ;;  %v186_v17 = vld [vmem:[%s2780_s1 + $0x448] sm:$0xff]  ;;  %v217_v18 = vld [vmem:[%s2780_s1 + $0x540] sm:$0xff] }
  0x44   :  { %1561 = vmatpush3.bf16.msra.mxu0 %v1560_v48  ;;  %v198_v48 = vld [vmem:[%s2780_s1 + $0x4a8] sm:$0xff]  ;;  %v1652_v14 = vpack.c.bf16 %v216_v7, %v215_v5  ;;  %v203_v21 = vld [vmem:[%s2780_s1 + $0x4d0] sm:$0xff]  ;;  %v220_v32 = vld [vmem:[%s2780_s1 + $0x558] sm:$0xff] }
  0x45   :  { %1593 = vmatpush3.bf16.msra.mxu1 %v1592_v50  ;;  %1563 = vmatprep.subr.bf16.mxu0 %v1562_v51  ;;  %v230_v50 = vld [vmem:[%s2780_s1 + $0x5a8] sm:$0xff]  ;;  %v359_v51 = vcombine.high %v2326_v42, %v2326_v42  ;;  %v1614_v54 = vpack.c.bf16 %v198_v48, %v197_v47  ;;  %v235_v23 = vld [vmem:[%s2780_s1 + $0x5d0] sm:$0xff]  ;;  %v205_v34 = vld [vmem:[%s2780_s1 + $0x4e0] sm:$0xff] }
  0x46   :  { %1595 = vmatprep.subr.bf16.mxu1 %v1594_v55  ;;  %v181_v55 = vld [vmem:[%s2780_s1 + $0x420] sm:$0xff]  ;;  %v1646_v58 = vpack.c.bf16 %v230_v50, %v229_v49  ;;  %v218_v20 = vld [vmem:[%s2780_s1 + $0x548] sm:$0xff]  ;;  %v187_v28 = vld [vmem:[%s2780_s1 + $0x450] sm:$0xff] }
  0x47   :  { %v1616_v0 = vpack.c.bf16 %v182_v56, %v181_v55  ;;  %v1656_v26 = vpack.c.bf16 %v218_v20, %v217_v18  ;;  %v219_v30 = vld [vmem:[%s2780_s1 + $0x550] sm:$0xff]  ;;  %v238_v37 = vld [vmem:[%s2780_s1 + $0x5e8] sm:$0xff]  ;;  %v208_v49 = vld [vmem:[%s2780_s1 + $0x4f8] sm:$0xff] }
  0x48   :  { %1565 = vmatpush3.bf16.msra.mxu0 %v1564_v61  ;;  %v200_v61 = vld [vmem:[%s2780_s1 + $0x4b8] sm:$0xff]  ;;  %v1660_v39 = vpack.c.bf16 %v220_v32, %v219_v30  ;;  %v190_v43 = vld [vmem:[%s2780_s1 + $0x468] sm:$0xff]  ;;  %v207_v48 = vld [vmem:[%s2780_s1 + $0x4f0] sm:$0xff] }
  0x49   :  { %1597 = vmatpush3.bf16.msra.mxu1 %v1596_v62  ;;  %1567 = vmatprep.subr.bf16.mxu0 %v1566_v63  ;;  %v231_v62 = vld [vmem:[%s2780_s1 + $0x5b0] sm:$0xff]  ;;  %v232_v63 = vld [vmem:[%s2780_s1 + $0x5b8] sm:$0xff]  ;;  %v1618_v2 = vpack.c.bf16 %v200_v61, %v199_v60  ;;  %v222_v47 = vld [vmem:[%s2780_s1 + $0x568] sm:$0xff]  ;;  %v1634_v55 = vpack.c.bf16 %v208_v49, %v207_v48 }
  0x4a   :  { %1599 = vmatprep.subr.bf16.mxu1 %v1598_v3  ;;  %v183_v3 = vld [vmem:[%s2780_s1 + $0x430] sm:$0xff]  ;;  %v1650_v6 = vpack.c.bf16 %v232_v63, %v231_v62  ;;  %v192_v56 = vld [vmem:[%s2780_s1 + $0x478] sm:$0xff]  ;;  %v257_v59 = vld [vmem:[%s2780_s1 + $0x680] sm:$0xff] }
  0x4b   :  { %v1620_v12 = vpack.c.bf16 %v184_v4, %v183_v3  ;;  %v239_v50 = vld [vmem:[%s2780_s1 + $0x5f0] sm:$0xff]  ;;  %v258_v60 = vld [vmem:[%s2780_s1 + $0x688] sm:$0xff]  ;;  %v48_v61 = vld [vmem:[%s2779_s0 + $0x18] sm:$0xff]  ;;  %s1159_s0 = sld [smem:[#allocation2 + $0x1]] }
  0x4c   :  { %1569 = vmatpush3.bf16.msra.mxu0 %v1568_v9  ;;  %v202_v9 = vld [vmem:[%s2780_s1 + $0x4c8] sm:$0xff]  ;;  %v223_v57 = vld [vmem:[%s2780_s1 + $0x570] sm:$0xff]  ;;  %v361_v62 = vcombine.high %v48_v61, %v48_v61  ;;  %v273_v4 = vld [vmem:[%s2780_s1 + $0x700] sm:$0xff] }
  0x4d   :  { %1601 = vmatpush3.bf16.msra.mxu1 %v1600_v10  ;;  %1571 = vmatprep.subr.bf16.mxu0 %v1570_v11  ;;  %v233_v10 = vld [vmem:[%s2780_s1 + $0x5c0] sm:$0xff]  ;;  %v234_v11 = vld [vmem:[%s2780_s1 + $0x5c8] sm:$0xff]  ;;  %v1622_v15 = vpack.c.bf16 %v202_v9, %v201_v8  ;;  %v260_v7 = vld [vmem:[%s2780_s1 + $0x698] sm:$0xff]  ;;  %v2512_v8 = vrot.slane %v48_v61, %v2023_v13 }
  0x4e   :  { %1603 = vmatprep.subr.bf16.mxu1 %v1602_v16  ;;  %v185_v16 = vld [vmem:[%s2780_s1 + $0x440] sm:$0xff]  ;;  %v1654_v19 = vpack.c.bf16 %v234_v11, %v233_v10  ;;  %v242_v3 = vld [vmem:[%s2780_s1 + $0x608] sm:$0xff]  ;;  %v2515_v9 = vrot.slane %v361_v62, %v2023_v13  ;;  %v1821_v13 = vmov 0.0|0.0   ;;  %v247_v32 = vld [vmem:[%s2780_s1 + $0x630] sm:$0xff] }
  0x4f   :  { %v274_v5 = vld [vmem:[%s2780_s1 + $0x708] sm:$0xff]  ;;  %v261_v18 = vld [vmem:[%s2780_s1 + $0x6a0] sm:$0xff]  ;;  %v376_v20 = vcombine.high %v2512_v8, %v2512_v8  ;;  %v267_v48 = vld [vmem:[%s2780_s1 + $0x6d0] sm:$0xff] }
  0x50   :  { %1573 = vmatpush3.bf16.msra.mxu0 %v1572_v22  ;;  %v204_v22 = vld [vmem:[%s2780_s1 + $0x4d8] sm:$0xff]  ;;  %v1703_v11 = vpack.c.bf16 %v274_v5, %v273_v4  ;;  %v253_v61 = vld [vmem:[%s2780_s1 + $0x660] sm:$0xff]  ;;  %v254_v62 = vld [vmem:[%s2780_s1 + $0x668] sm:$0xff] }
  0x51   :  { %1605 = vmatpush3.bf16.msra.mxu1 %v1604_v24  ;;  %1607 = vmatprep.subr.bf16.mxu0 %v1606_v25  ;;  %v236_v24 = vld [vmem:[%s2780_s1 + $0x5d8] sm:$0xff]  ;;  %v1624_v25 = vpack.c.bf16 %v186_v17, %v185_v16  ;;  %v1626_v27 = vpack.c.bf16 %v204_v22, %v203_v21  ;;  %v275_v16 = vld [vmem:[%s2780_s1 + $0x710] sm:$0xff]  ;;  %v377_v21 = vcombine.high %v2515_v9, %v2515_v9 }
  0x52   :  { %1639 = vmatprep.subr.bf16.mxu1 %v1638_v29  ;;  %v188_v29 = vld [vmem:[%s2780_s1 + $0x458] sm:$0xff]  ;;  %v1658_v31 = vpack.c.bf16 %v236_v24, %v235_v23 }
  0x53   :  { %601 = vmatmul.mubr.f32.vlgmr.msra.gmra.mrb[2].mxu0 %v2184_v33  ;;  %v1644_v33 = vpack.c.bf16 %v212_v46, %v211_v41  ;;  %v189_v41 = vld [vmem:[%s2780_s1 + $0x460] sm:$0xff]  ;;  %v276_v17 = vld [vmem:[%s2780_s1 + $0x718] sm:$0xff] }
  0x54   :  { %671 = vmatmul.mubr.f32.vlgmr.msra.gmra.mrb[2].mxu1 %v2207_v45  ;;  %1609 = vmatpush3.bf16.msra.mxu0 %v1608_v35  ;;  %v360_v45 = vcombine.high %v2347_v52, %v2347_v52  ;;  %v206_v35 = vld [vmem:[%s2780_s1 + $0x4e8] sm:$0xff]  ;;  %v1706_v23 = vpack.c.bf16 %v276_v17, %v275_v16  ;;  %v268_v49 = vld [vmem:[%s2780_s1 + $0x6d8] sm:$0xff] }
  0x55   :  { %1641 = vmatpush3.bf16.msra.mxu1 %v1640_v36  ;;  %1611 = vmatprep.subr.bf16.mxu0 %v1610_v38  ;;  %v237_v36 = vld [vmem:[%s2780_s1 + $0x5e0] sm:$0xff]  ;;  %v1628_v38 = vpack.c.bf16 %v188_v29, %v187_v28  ;;  %v1630_v40 = vpack.c.bf16 %v206_v35, %v205_v34  ;;  %v264_v28 = vld [vmem:[%s2780_s1 + $0x6b8] sm:$0xff]  ;;  %v279_v35 = vld [vmem:[%s2780_s1 + $0x730] sm:$0xff] }
  0x56   :  { %1643 = vmatprep.subr.bf16.mxu1 %v1642_v44  ;;  %740 = vmatprep.mubr.f32.mxu0 %v359_v51  ;;  %v221_v44 = vld [vmem:[%s2780_s1 + $0x560] sm:$0xff]  ;;  %v1662_v46 = vpack.c.bf16 %v238_v37, %v237_v36  ;;  %v240_v51 = vld [vmem:[%s2780_s1 + $0x5f8] sm:$0xff]  ;;  %v290_v16 = vld [vmem:[%s2780_s1 + $0x788] sm:$0xff] }
  0x57   :  { %810 = vmatprep.mubr.f32.mxu1 %v360_v45  ;;  %v224_v45 = vld [vmem:[%s2780_s1 + $0x578] sm:$0xff]  ;;  %v265_v37 = vld [vmem:[%s2780_s1 + $0x6c0] sm:$0xff] }
  0x58   :  { %1613 = vmatpush3.bf16.msra.mxu0 %v1612_v53  ;;  %v1632_v53 = vpack.c.bf16 %v190_v43, %v189_v41  ;;  %v248_v34 = vld [vmem:[%s2780_s1 + $0x638] sm:$0xff]  ;;  %v249_v43 = vld [vmem:[%s2780_s1 + $0x640] sm:$0xff] }
  0x59   :  { %1645 = vmatpush3.bf16.msra.mxu1 %v1644_v33  ;;  %1615 = vmatprep.subr.bf16.mxu0 %v1614_v54  ;;  %v191_v33 = vld [vmem:[%s2780_s1 + $0x470] sm:$0xff]  ;;  %v1664_v54 = vpack.c.bf16 %v222_v47, %v221_v44  ;;  %v280_v36 = vld [vmem:[%s2780_s1 + $0x738] sm:$0xff]  ;;  %v250_v44 = vld [vmem:[%s2780_s1 + $0x648] sm:$0xff] }
  0x5a   :  { %1647 = vmatprep.subr.bf16.mxu1 %v1646_v58  ;;  %v1666_v58 = vpack.c.bf16 %v240_v51, %v239_v50  ;;  %v1636_v63 = vpack.c.bf16 %v192_v56, %v191_v33  ;;  %v282_v47 = vld [vmem:[%s2780_s1 + $0x748] sm:$0xff]  ;;  %v1688_v50 = vpack.c.bf16 %v250_v44, %v249_v43  ;;  %v251_v33 = vld [vmem:[%s2780_s1 + $0x650] sm:$0xff]  ;;  %v284_v56 = vld [vmem:[%s2780_s1 + $0x758] sm:$0xff] }
  0x5c   :  { %1617 = vmatpush3.bf16.msra.mxu0 %v1616_v0  ;;  %v1668_v0 = vpack.c.bf16 %v224_v45, %v223_v57  ;;  %v269_v57 = vld [vmem:[%s2780_s1 + $0x6e0] sm:$0xff]  ;;  %v270_v45 = vld [vmem:[%s2780_s1 + $0x6e8] sm:$0xff] }
  0x5d   :  { %1649 = vmatpush3.bf16.msra.mxu1 %v1648_v1  ;;  %1619 = vmatprep.subr.bf16.mxu0 %v1618_v2  ;;  %v1670_v1 = vpack.c.bf16 %v258_v60, %v257_v59  ;;  %v241_v2 = vld [vmem:[%s2780_s1 + $0x600] sm:$0xff]  ;;  %v1694_v60 = vpack.c.bf16 %v270_v45, %v269_v57  ;;  %v1058_v45 = vld [vmem:[%s2784_s5 + $0x48] sm:$0xff] }
  0x5e   :  { %1651 = vmatprep.subr.bf16.mxu1 %v1650_v6  ;;  %v259_v6 = vld [vmem:[%s2780_s1 + $0x690] sm:$0xff]  ;;  %v1672_v10 = vpack.c.bf16 %v242_v3, %v241_v2  ;;  %v272_v2 = vld [vmem:[%s2780_s1 + $0x6f8] sm:$0xff]  ;;  %v1696_v3 = vpack.c.bf16 %v254_v62, %v253_v61  ;;  %v1057_v57 = vld [vmem:[%s2784_s5 + $0x40] sm:$0xff] }
  0x5f   :  { %v1061_v62 = vld [vmem:[%s2784_s5 + $0x60] sm:$0xff] }
  0x60   :  { %1621 = vmatpush3.bf16.msra.mxu0 %v1620_v12  ;;  %v1674_v12 = vpack.c.bf16 %v260_v7, %v259_v6  ;;  %v255_v6 = vld [vmem:[%s2780_s1 + $0x670] sm:$0xff]  ;;  %v256_v7 = vld [vmem:[%s2780_s1 + $0x678] sm:$0xff] }
  0x61   :  { %1653 = vmatpush3.bf16.msra.mxu1 %v1652_v14  ;;  %1623 = vmatprep.subr.bf16.mxu0 %v1622_v15  ;;  %v243_v14 = vld [vmem:[%s2780_s1 + $0x610] sm:$0xff]  ;;  %v244_v15 = vld [vmem:[%s2780_s1 + $0x618] sm:$0xff] }
  0x62   :  { %1655 = vmatprep.subr.bf16.mxu1 %v1654_v19  ;;  %v262_v19 = vld [vmem:[%s2780_s1 + $0x6a8] sm:$0xff]  ;;  %v1676_v22 = vpack.c.bf16 %v244_v15, %v243_v14  ;;  %v289_v15 = vld [vmem:[%s2780_s1 + $0x780] sm:$0xff] }
  0x63   :  { %v1678_v24 = vpack.c.bf16 %v262_v19, %v261_v18  ;;  %v1727_v17 = vpack.c.bf16 %v290_v16, %v289_v15  ;;  %v291_v18 = vld [vmem:[%s2780_s1 + $0x790] sm:$0xff]  ;;  %v292_v19 = vld [vmem:[%s2780_s1 + $0x798] sm:$0xff] }
  0x64   :  { %1625 = vmatpush3.bf16.msra.mxu0 %v1624_v25  ;;  %v245_v25 = vld [vmem:[%s2780_s1 + $0x620] sm:$0xff] }
  0x65   :  { %1657 = vmatpush3.bf16.msra.mxu1 %v1656_v26  ;;  %1627 = vmatprep.subr.bf16.mxu0 %v1626_v27  ;;  %v277_v26 = vld [vmem:[%s2780_s1 + $0x720] sm:$0xff]  ;;  %v263_v27 = vld [vmem:[%s2780_s1 + $0x6b0] sm:$0xff] }
  0x66   :  { %1659 = vmatprep.subr.bf16.mxu1 %v1658_v31  ;;  %v1682_v31 = vpack.c.bf16 %v264_v28, %v263_v27  ;;  %v960_v27 = vld [vmem:[%s2782_s3] sm:$0xff]  ;;  %v961_v28 = vld [vmem:[%s2782_s3 + $0x8] sm:$0xff] }
  0x68   :  { %1629 = vmatpush3.bf16.msra.mxu0 %v1628_v38  ;;  %v266_v38 = vld [vmem:[%s2780_s1 + $0x6c8] sm:$0xff] }
  0x69   :  { %1661 = vmatpush3.bf16.msra.mxu1 %v1660_v39  ;;  %1631 = vmatprep.subr.bf16.mxu0 %v1630_v40  ;;  %v1684_v39 = vpack.c.bf16 %v248_v34, %v247_v32  ;;  %v1712_v40 = vpack.c.bf16 %v280_v36, %v279_v35  ;;  %v1686_v41 = vpack.c.bf16 %v266_v38, %v265_v37  ;;  %v1823_v32 = vmov 0.0   ;;  %v1049_v34 = vld [vmem:[%s2784_s5] sm:$0xff]  ;;  %v1050_v35 = vld [vmem:[%s2784_s5 + $0x8] sm:$0xff]  ;;  %v1051_v36 = vld [vmem:[%s2784_s5 + $0x10] sm:$0xff] }
  0x6a   :  { %1663 = vmatprep.subr.bf16.mxu1 %v1662_v46  ;;  %v281_v46 = vld [vmem:[%s2780_s1 + $0x740] sm:$0xff]  ;;  %v1748_v37 = vpack.c.bf16 %v1050_v35, %v1049_v34  ;;  %v1052_v38 = vld [vmem:[%s2784_s5 + $0x18] sm:$0xff] }
  0x6b   :  { %v1715_v51 = vpack.c.bf16 %v282_v47, %v281_v46  ;;  %v1160_v46 = vld [vmem:[%s2781_s2] ss:$0 sm:$0xff] }
  0x6c   :  { %1633 = vmatpush3.bf16.msra.mxu0 %v1632_v53  ;;  %v1690_v53 = vpack.c.bf16 %v268_v49, %v267_v48 }
  0x6d   :  { %1665 = vmatpush3.bf16.msra.mxu1 %v1664_v54  ;;  %1635 = vmatprep.subr.bf16.mxu0 %v1634_v55  ;;  %v252_v54 = vld [vmem:[%s2780_s1 + $0x658] sm:$0xff]  ;;  %v283_v55 = vld [vmem:[%s2780_s1 + $0x750] sm:$0xff] }
  0x6e   :  { %1667 = vmatprep.subr.bf16.mxu1 %v1666_v58  ;;  %v1692_v58 = vpack.c.bf16 %v252_v54, %v251_v33  ;;  %v1718_v59 = vpack.c.bf16 %v284_v56, %v283_v55  ;;  %v1056_v33 = vld [vmem:[%s2784_s5 + $0x38] sm:$0xff] }
  0x70   :  { %1637 = vmatpush3.bf16.msra.mxu0 %v1636_v63  ;;  %v285_v63 = vld [vmem:[%s2780_s1 + $0x760] sm:$0xff] }
  0x71   :  { %1669 = vmatpush3.bf16.msra.mxu1 %v1668_v0  ;;  %1671 = vmatprep.subr.bf16.mxu0 %v1670_v1  ;;  %v286_v0 = vld [vmem:[%s2780_s1 + $0x768] sm:$0xff]  ;;  %v271_v1 = vld [vmem:[%s2780_s1 + $0x6f0] sm:$0xff] }
  0x72   :  { %1702 = vmatprep.subr.bf16.mxu1 %v1821_v13  ;;  %v1721_v4 = vpack.c.bf16 %v286_v0, %v285_v63  ;;  %v1698_v5 = vpack.c.bf16 %v272_v2, %v271_v1  ;;  %v1062_v63 = vld [vmem:[%s2784_s5 + $0x68] sm:$0xff] }
  0x73   :  { %741 = vmatmul.mubr.f32.vlgmr.msra.gmra.mrb[4].mxu0 %v2326_v42  ;;  %v246_v42 = vld [vmem:[%s2780_s1 + $0x628] sm:$0xff]  ;;  %v1766_v0 = vpack.c.bf16 %v1062_v63, %v1061_v62 }
  0x74   :  { %811 = vmatmul.mubr.f32.vlgmr.msra.gmra.mrb[4].mxu1 %v2347_v52  ;;  %1673 = vmatpush3.bf16.msra.mxu0 %v1672_v10  ;;  %v278_v52 = vld [vmem:[%s2780_s1 + $0x728] sm:$0xff]  ;;  %v1680_v29 = vpack.c.bf16 %v246_v42, %v245_v25  ;;  %v287_v10 = vld [vmem:[%s2780_s1 + $0x770] sm:$0xff]  ;;  %v297_v42 = vld [vmem:[%s2780_s1 + $0x7c0] sm:$0xff] }
  0x75   :  { %1704 = vmatpush1.bf16.msra.mxu1 %v1703_v11  ;;  %1675 = vmatprep.subr.bf16.mxu0 %v1674_v12  ;;  %v1709_v30 = vpack.c.bf16 %v278_v52, %v277_v26  ;;  %v288_v11 = vld [vmem:[%s2780_s1 + $0x778] sm:$0xff]  ;;  %v1700_v12 = vpack.c.bf16 %v256_v7, %v255_v6  ;;  %v298_v26 = vld [vmem:[%s2780_s1 + $0x7c8] sm:$0xff] }
  0x76   :  { %1705 = vmatprep.subr.bf16.mxu1 %v1821_v13  ;;  %880 = vmatprep.mubr.f32.mxu0 %v376_v20  ;;  %v1724_v14 = vpack.c.bf16 %v288_v11, %v287_v10  ;;  %v1730_v20 = vpack.c.bf16 %v292_v19, %v291_v18  ;;  %v1739_v52 = vpack.c.bf16 %v298_v26, %v297_v42 }
  0x77   :  { %1161 = vmatprep.mubr.msk.f32.mxu1 %vm393_vm0, %v377_v21  ;;  %v293_v21 = vld [vmem:[%s2780_s1 + $0x7a0] sm:$0xff] }
  0x78   :  { %1677 = vmatpush3.bf16.msra.mxu0 %v1676_v22  ;;  %v294_v22 = vld [vmem:[%s2780_s1 + $0x7a8] sm:$0xff] }
  0x79   :  { %1707 = vmatpush1.bf16.msra.mxu1 %v1706_v23  ;;  %1679 = vmatprep.subr.bf16.mxu0 %v1678_v24  ;;  %v1733_v23 = vpack.c.bf16 %v294_v22, %v293_v21  ;;  %v296_v24 = vld [vmem:[%s2780_s1 + $0x7b8] sm:$0xff] }
  0x7a   :  { %1708 = vmatprep.subr.bf16.mxu1 %v1821_v13 }
  0x7c   :  { %1681 = vmatpush3.bf16.msra.mxu0 %v1680_v29  ;;  %v1742_v29 = vpack.c.bf16 %v961_v28, %v960_v27  ;;  %v1064_v27 = vld [vmem:[%s2784_s5 + $0x78] sm:$0xff] }
  0x7d   :  { %1710 = vmatpush1.bf16.msra.mxu1 %v1709_v30  ;;  %1683 = vmatprep.subr.bf16.mxu0 %v1682_v31  ;;  %v962_v30 = vld [vmem:[%s2782_s3 + $0x10] sm:$0xff] }
  0x7e   :  { %1711 = vmatprep.subr.bf16.mxu1 %v1821_v13 }
  0x80   :  { %1685 = vmatpush3.bf16.msra.mxu0 %v1684_v39  ;;  %v1751_v39 = vpack.c.bf16 %v1052_v38, %v1051_v36  ;;  %v1164_v36 = vld [vmem:[%s2785_s6] ss:$0 sm:$0xff] }
  0x81   :  { %1713 = vmatpush1.bf16.msra.mxu1 %v1712_v40  ;;  %1687 = vmatprep.subr.bf16.mxu0 %v1686_v41  ;;  %v1053_v40 = vld [vmem:[%s2784_s5 + $0x20] sm:$0xff]  ;;  %v1054_v41 = vld [vmem:[%s2784_s5 + $0x28] sm:$0xff] }
  0x82   :  { %1714 = vmatprep.subr.bf16.mxu1 %v1821_v13 }
  0x84   :  { %1689 = vmatpush3.bf16.msra.mxu0 %v1688_v50  ;;  %v1754_v50 = vpack.c.bf16 %v1054_v41, %v1053_v40 }
  0x85   :  { %1716 = vmatpush1.bf16.msra.mxu1 %v1715_v51  ;;  %1691 = vmatprep.subr.bf16.mxu0 %v1690_v53  ;;  %v1055_v53 = vld [vmem:[%s2784_s5 + $0x30] sm:$0xff] }
  0x86   :  { %1717 = vmatprep.subr.bf16.mxu1 %v1821_v13  ;;  %v1757_v56 = vpack.c.bf16 %v1056_v33, %v1055_v53 }
  0x88   :  { %1693 = vmatpush3.bf16.msra.mxu0 %v1692_v58  ;;  %v1760_v58 = vpack.c.bf16 %v1058_v45, %v1057_v57 }
  0x89   :  { %1719 = vmatpush1.bf16.msra.mxu1 %v1718_v59  ;;  %1695 = vmatprep.subr.bf16.mxu0 %v1694_v60  ;;  %v1059_v59 = vld [vmem:[%s2784_s5 + $0x50] sm:$0xff]  ;;  %v1060_v60 = vld [vmem:[%s2784_s5 + $0x58] sm:$0xff] }
  0x8a   :  { %1720 = vmatprep.subr.bf16.mxu1 %v1821_v13  ;;  %v1763_v61 = vpack.c.bf16 %v1060_v60, %v1059_v59 }
  0x8c   :  { %1697 = vmatpush3.bf16.msra.mxu0 %v1696_v3 }
  0x8d   :  { %1722 = vmatpush1.bf16.msra.mxu1 %v1721_v4  ;;  %1699 = vmatprep.subr.bf16.mxu0 %v1698_v5 }
  0x8e   :  { %1723 = vmatprep.subr.bf16.mxu1 %v1821_v13 }
  0x90   :  { %1701 = vmatpush3.bf16.msra.mxu0 %v1700_v12 }
  0x91   :  { %1725 = vmatpush1.bf16.msra.mxu1 %v1724_v14  ;;  %1747 = vmatprep.subr.bf16.mxu0 %v1821_v13 }
  0x92   :  { %1726 = vmatprep.subr.bf16.mxu1 %v1821_v13 }
  0x93   :  { %881 = vmatmul.mubr.f32.vlgmr.msra.gmra.mrb[6].mxu0 %v2512_v8  ;;  %v295_v8 = vld [vmem:[%s2780_s1 + $0x7b0] sm:$0xff] }
  0x94   :  { %v1736_v25 = vpack.c.bf16 %v296_v24, %v295_v8  ;;  %1475 = vmatprep.mubr.msk.f32.mxu0 %vm1822_vm1, %v1823_v32  ;;  %1749 = vmatpush3.bf16.msra.mxu0 %v1748_v37  ;;  %v957_v8 = vstv %s43_s16 }
  0x95   :  { %1728 = vmatpush1.bf16.msra.mxu1 %v1727_v17  ;;  %1750 = vmatprep.subr.bf16.mxu0 %v1821_v13 }
  0x96   :  { %1729 = vmatprep.subr.bf16.mxu1 %v1821_v13 }
  0x98   :  { %1752 = vmatpush3.bf16.msra.mxu0 %v1751_v39 }
  0x99   :  { %1731 = vmatpush1.bf16.msra.mxu1 %v1730_v20  ;;  %1753 = vmatprep.subr.bf16.mxu0 %v1821_v13 }
  0x9a   :  { %1732 = vmatprep.subr.bf16.mxu1 %v1821_v13 }
  0x9c   :  { %1755 = vmatpush3.bf16.msra.mxu0 %v1754_v50 }
  0x9d   :  { %1734 = vmatpush1.bf16.msra.mxu1 %v1733_v23  ;;  %1756 = vmatprep.subr.bf16.mxu0 %v1821_v13 }
  0x9e   :  { %1735 = vmatprep.subr.bf16.mxu1 %v1821_v13 }
  0xa0   :  { %1758 = vmatpush3.bf16.msra.mxu0 %v1757_v56 }
  0xa1   :  { %1737 = vmatpush1.bf16.msra.mxu1 %v1736_v25  ;;  %1759 = vmatprep.subr.bf16.mxu0 %v1821_v13 }
  0xa2   :  { %1738 = vmatprep.subr.bf16.mxu1 %v1821_v13 }
  0xa4   :  { %1761 = vmatpush3.bf16.msra.mxu0 %v1760_v58 }
  0xa5   :  { %1740 = vmatpush1.bf16.msra.mxu1 %v1739_v52  ;;  %1762 = vmatprep.subr.bf16.mxu0 %v1821_v13  ;;  %v1063_v52 = vld [vmem:[%s2784_s5 + $0x70] sm:$0xff]  ;;  %s1824_s5 = smov [#allocation5]  }
  0xa6   :  { %1741 = vmatprep.subr.bf16.mxu1 %v1821_v13  ;;  %v1769_v28 = vpack.c.bf16 %v1064_v27, %v1063_v52  ;;  %s1150_s24 = sshll.u32 %s1824_s5, 4  ;;  %s1151_s24 = int_to_ptr.vmem [resolvable:$true] %s1150_s24 }
  0xa7   :  { %p1798_p6 = scmp.lt.s32.totalorder %s1151_s24, %s1151_s24 }
  0xa8   :  { %951 = vmatmul.mubr.f32.vlgmr.msra.gmra.mrb[6].mxu1 %v2515_v9  ;;  %v963_v9 = vld [vmem:[%s2782_s3 + $0x18] sm:$0xff]  ;;  %1764 = vmatpush3.bf16.msra.mxu0 %v1763_v61 }
  0xa9   :  { %1743 = vmatpush3.bf16.msra.mxu1 %v1742_v29  ;;  %v1745_v31 = vpack.c.bf16 %v963_v9, %v962_v30  ;;  %1440 = vmatprep.mubr.msk.f32.mxu1 %vm1822_vm1, %v1823_v32  ;;  %v1162_v29 = vld [vmem:[%s2783_s4] ss:$0 sm:$0xff]  ;;  %v1046_v9 = vstv %s1159_s0  ;;  %s1793_s4 = scalar_lea.vmem %s1151_s24, 32 }
  0xaa   :  { %1744 = vmatprep.subr.bf16.mxu1 %v1821_v13  ;;  %1765 = vmatprep.subr.bf16.mxu0 %v1821_v13  ;;  %p1794_p5 = scmp.ne.s32.totalorder %s1151_s24, %s1793_s4  ;;  %p1799_p7 = scmp.lt.s32.totalorder %s1793_s4, %s1793_s4 }
  0xac   :  { %1767 = vmatpush3.bf16.msra.mxu0 %v1766_v0  ;;  %p1800_p8 = por %p1799_p7, %p1798_p6 }
  0xad   :  { %1746 = vmatpush3.bf16.msra.mxu1 %v1745_v31  ;;  %1768 = vmatprep.subr.bf16.mxu0 %v1821_v13 }
  0xae   :  { %p1801_p9 = pnand %p1800_p8, %p1794_p5 }
  0xb0   :  { %1770 = vmatpush3.bf16.msra.mxu0 %v1769_v28 }
 0x106   :  { %v1197_v43 = vpop.f32.mrb[0].mxu0 }
 0x107   :  { %v1232_v44 = vpop.f32.mrb[0].mxu1  ;;  %v1198_v47 = vpop.f32.mrb[1].mxu0 }
 0x108   :  { %v1199_v48 = vadd.f32 %v1198_v47, %v1197_v43  ;;  %v1233_v49 = vpop.f32.mrb[1].mxu1 }
 0x109   :  { %v1234_v51 = vadd.f32 %v1233_v49, %v1232_v44 }
 0x10a   :  { %v463_v54 = vadd.f32 %v1199_v48, %v1160_v46 }
 0x10c   :  { %v533_v55 = vadd.f32 %v1234_v51, %v463_v54 }
 0x126   :  { %v1267_v1 = vpop.f32.mrb[2].mxu0 }
 0x127   :  { %v1302_v2 = vpop.f32.mrb[2].mxu1  ;;  %v1268_v3 = vpop.f32.mrb[3].mxu0 }
 0x128   :  { %v1269_v4 = vadd.f32 %v1268_v3, %v1267_v1  ;;  %v1303_v5 = vpop.f32.mrb[3].mxu1 }
 0x129   :  { %v1304_v6 = vadd.f32 %v1303_v5, %v1302_v2 }
 0x12a   :  { %v603_v7 = vadd.f32 %v1269_v4, %v533_v55 }
 0x12c   :  { %v673_v10 = vadd.f32 %v1304_v6, %v603_v7 }
 0x146   :  { %v1337_v11 = vpop.f32.mrb[4].mxu0 }
 0x147   :  { %v1372_v12 = vpop.f32.mrb[4].mxu1  ;;  %v1338_v14 = vpop.f32.mrb[5].mxu0 }
 0x148   :  { %v1339_v15 = vadd.f32 %v1338_v14, %v1337_v11  ;;  %v1373_v16 = vpop.f32.mrb[5].mxu1 }
 0x149   :  { %v1374_v17 = vadd.f32 %v1373_v16, %v1372_v12 }
 0x14a   :  { %v743_v18 = vadd.f32 %v1339_v15, %v673_v10 }
 0x14c   :  { %v813_v19 = vadd.f32 %v1374_v17, %v743_v18 }
 0x166   :  { %v1407_v20 = vpop.f32.mrb[6].mxu0 }
 0x167   :  { %v1408_v21 = vpop.f32.mrb[7].mxu0 }
 0x168   :  { %v1409_v22 = vadd.f32 %v1408_v21, %v1407_v20 }
 0x16a   :  { %v883_v13 = vadd.f32 %v1409_v22, %v813_v19 }
 0x17b   :  { %v952_v23 = vpop.f32.mrb[6].mxu1 }
 0x17c   :  { %v953_v24 = vadd.f32 %v952_v23, %v883_v13  ;;  %v954_v25 = vpop.f32.mrb[7].mxu1 }
 0x17e   :  { %vm956_vm2 = vcmp.ge.f32.partialorder %v953_v24, 0.0  ;;  %v958_v42 = vmul.f32 %v957_v8, %v953_v24 }
 0x180   :  { %v959_v26 = vsel %vm956_vm2, %v953_v24, %v958_v42 }
 0x181   :  { %1441 = vmatmul.mubr.msk.f32.vlgmr.msra.gmra.mrb[8].mxu1 %vm971_vm3, %v959_v26 }
 0x254   :  { %v1041_v30 = vpop.f32.mrb[8].mxu1 }
 0x255   :  { %v1042_v31 = vadd.f32 %v1162_v29, %v1041_v30  ;;  %v1442_v32 = vpop.f32.mrb[9].mxu1 }
 0x257   :  { %vm1045_vm4 = vcmp.ge.f32.partialorder %v1042_v31, 0.0  ;;  %v1047_v34 = vmul.f32 %v1046_v9, %v1042_v31 }
 0x259   :  { %v1048_v35 = vsel %vm1045_vm4, %v1042_v31, %v1047_v34 }
 0x25a   :  { %1476 = vmatmul.mubr.f32.vlgmr.msra.gmra.mrb[8].mxu0 %v1048_v35 }
 0x32d   :  { %v1138_v37 = vpop.f32.mrb[8].mxu0 }
 0x32e   :  { %v1139_v38 = vadd.f32 %v1164_v36, %v1138_v37  ;;  %v1477_v39 = vpop.f32.mrb[9].mxu0 }
 0x330   :  { %1143 = vst.msk [vmem:[#allocation5] sm:$0x3] %vm1142_vm5, %v1139_v38 }
 0x331   :  { %1804 = shalt.err (!%p1801_p9)
}
 0x332   :  { %s1805_s27 = scalar_lea.hbm %s2787_s8, 32 }
 0x333   :  { %p1806_p10 = scmp.ne.s32.totalorder %s2787_s8, %s1805_s27  ;;  %p1809_p11 = scmp.lt.u32.totalorder %s1805_s27, %s2787_s8 }
 0x335   :  { %p1811_p12 = pnand %p1809_p11, %p1806_p10 }
 0x337   :  { %1814 = shalt.err (!%p1811_p12)
}
 0x338   :  { %1153 = dma.vmem_to_hbm [thread:$0]  %s1151_s24, 32, %s2787_s8, [#allocation3]  }
 0x339   :  { %1817 = dma.done.wait [#allocation3], 32  }
 0x33a   :  { %1818 = vsyncadd [#allocation3], 4294967264 }
 0x33b   :  { %1157 = vsyncpa [#allocation3], 1 }
 0x33c   :  { %1158 = vsyncpa [#allocation4], 1 }

</bundles_post_ra>
